<compile_context>
chip_gen: v5e
topology: v5e:2x2
jax: 0.10.0
libtpu: 0.0.40
codegen_flags: <defaults>
</compile_context>

<pallas_src>
from functools import partial

import jax
import jax.numpy as jnp
from jax.experimental import pallas as pl
from jax.experimental.pallas import tpu as pltpu

_VMEM_LIMIT = 32 * 1024 * 1024  # safe on v5e/v6e (128 MiB) and v7x (64 MiB)


def _pick_batch_tile(B):
    """Images per grid step.  Keeps >= 2 grid blocks whenever B >= 2 (v7x)."""
    if B <= 2:
        return 1
    return max(1, min(16, B // 2))


# ----------------------------------------------------------------------------
# The fused kernel (one grid step = tb images through the whole network).
#
# Layout inside the kernel: activations are 2-D matrices with the batch tile
# on the LANE axis:
#   x_ref   : (1, 4, 4, 7, 7*tb)   space-to-depth input, x[b, 4r+gy, 4c+gx]
#   A1[p]   : (48, 6*tb)           rows = r*8 + c   (r in [0,6), c in [0,8))
#                                  lanes = s*tb + b; value = relu(pool(conv1))
#                                  at spatial (2r+py, 2s+px)
#   A2      : (64, 4*tb)           rows = c2*4 + i2, lanes = j2*tb + b
#   fc*     : (128, tb)
# ----------------------------------------------------------------------------
def _lenet_kernel(x_ref, w1t_ref, b1_ref, w2t_ref, b2_ref,
                  wf1_ref, bf1_ref, wf2_ref, bf2_ref, wf3_ref, bf3_ref,
                  o_ref, *, tb):
    f32 = jnp.float32

    # ---- load the 16 space-to-depth groups of this batch tile -------------
    groups = {}
    for gy in range(4):
        for gx in range(4):
            groups[(gy, gx)] = x_ref[0, gy, gx]                    # (7, 7*tb)

    # ---- conv1: one GEMM over all 4 parity blocks x 4 pooling corners ------
    # slab(oy, ox)[r', s*tb+b] = x[b, 4r'+oy, 4s+ox]
    slab1 = {}
    for oy in range(8):
        for ox in range(8):
            g = groups[(oy % 4, ox % 4)]
            r0, c0 = oy // 4, ox // 4
            slab1[(oy, ox)] = g[r0:r0 + 6, c0 * tb:(c0 + 6) * tb]  # (6, 6*tb)

    combos = [(py, px, dy, dx) for py in (0, 1) for px in (0, 1)
              for dy in (0, 1) for dx in (0, 1)]
    row_blocks = []
    for ki in range(5):
        for kj in range(5):
            pieces = [slab1[(2 * py + dy + ki, 2 * px + dx + kj)]
                      for (py, px, dy, dx) in combos]
            row_blocks.append(jnp.concatenate(pieces, axis=1))     # (6, 96*tb)
    p1 = jnp.concatenate(row_blocks, axis=0)                       # (150, 96*tb)

    out1 = jnp.dot(w1t_ref[...], p1, preferred_element_type=f32)   # (48, 96*tb)

    blk1 = 6 * tb
    a1 = {}
    for py in (0, 1):
        for px in (0, 1):
            base = (py * 2 + px) * 4 * blk1
            m = out1[:, base:base + blk1]
            for cr in range(1, 4):                                 # 2x2 max-pool
                m = jnp.maximum(m, out1[:, base + cr * blk1:base + (cr + 1) * blk1])
            a1[(py, px)] = jnp.maximum(m + b1_ref[...], 0.0)       # (48, 6*tb)

    # ---- conv2: one GEMM over the 4 pooling corners -------------------------
    # slab(oy2, ox2)[i2'*8+ci, j2*tb+b] = conv1pooled[b, ci, 2i2'+oy2, 2j2+ox2]
    slab2 = {}
    for oy2 in range(6):
        for ox2 in range(6):
            py, r0 = oy2 % 2, oy2 // 2
            px, s0 = ox2 % 2, ox2 // 2
            slab2[(oy2, ox2)] = a1[(py, px)][8 * r0:8 * r0 + 32,
                                             s0 * tb:(s0 + 4) * tb]  # (32, 4*tb)

    corners = [(dy, dx) for dy in (0, 1) for dx in (0, 1)]
    row_blocks2 = []
    for ki in range(5):
        for kj in range(5):
            pieces = [slab2[(dy + ki, dx + kj)] for (dy, dx) in corners]
            row_blocks2.append(jnp.concatenate(pieces, axis=1))    # (32, 16*tb)
    p2 = jnp.concatenate(row_blocks2, axis=0)                      # (800, 16*tb)

    out2 = jnp.dot(w2t_ref[...], p2, preferred_element_type=f32)   # (64, 16*tb)

    blk2 = 4 * tb
    m = out2[:, 0:blk2]
    for cr in range(1, 4):                                         # 2x2 max-pool
        m = jnp.maximum(m, out2[:, cr * blk2:(cr + 1) * blk2])
    a2 = jnp.maximum(m + b2_ref[...], 0.0)                         # (64, 4*tb)

    # ---- fc1 -> fc2 -> fc3 (weights pre-permuted/padded, see prepare_params)
    pfc = jnp.concatenate([a2[:, j2 * tb:(j2 + 1) * tb] for j2 in range(4)],
                          axis=0)                                  # (256, tb)

    h1 = jnp.maximum(jnp.dot(wf1_ref[...], pfc, preferred_element_type=f32)
                     + bf1_ref[...], 0.0)                          # (128, tb)
    h2 = jnp.maximum(jnp.dot(wf2_ref[...], h1, preferred_element_type=f32)
                     + bf2_ref[...], 0.0)                          # (128, tb)
    y = jnp.dot(wf3_ref[...], h2, preferred_element_type=f32) + bf3_ref[...]
    o_ref[0] = y.astype(o_ref.dtype)                               # (128, tb)


# ----------------------------------------------------------------------------
# Parameters (torch layout) and one-time kernel-friendly repack.
# ----------------------------------------------------------------------------
def init_params(key):
    ks = jax.random.split(key, 10)

    def u(k, shape, fan_in):
        bound = 1.0 / (fan_in ** 0.5)
        return jax.random.uniform(k, shape, jnp.float32, -bound, bound)

    return {
        "conv1_w": u(ks[0], (6, 1, 5, 5), 1 * 5 * 5),
        "conv1_b": u(ks[1], (6,), 1 * 5 * 5),
        "conv2_w": u(ks[2], (16, 6, 5, 5), 6 * 5 * 5),
        "conv2_b": u(ks[3], (16,), 6 * 5 * 5),
        "fc1_w": u(ks[4], (120, 256), 256),
        "fc1_b": u(ks[5], (120,), 256),
        "fc2_w": u(ks[6], (84, 120), 120),
        "fc2_b": u(ks[7], (84,), 120),
        "fc3_w": u(ks[8], (10, 84), 84),
        "fc3_b": u(ks[9], (10,), 84),
    }


def prepare_params(p):
    """One-time repack into the in-kernel GEMM layouts (all zero-padding is
    exact: zero weight rows/columns produce zero activations)."""
    f32 = jnp.float32

    # conv1: W1T[r*8 + c, k*6 + r'] = w1[c, k] * [r == r'],  Cout 6 -> 8.
    w1 = jnp.pad(p["conv1_w"].astype(f32).reshape(6, 25), ((0, 2), (0, 0)))
    eye6 = jnp.eye(6, dtype=f32)
    w1t = (w1[None, :, :, None] * eye6[:, None, None, :]).reshape(48, 150)
    b1c = jnp.tile(jnp.pad(p["conv1_b"].astype(f32), (0, 2)), 6).reshape(48, 1)

    # conv2: W2T[c2*4 + i2, (k*4 + i2')*8 + ci] = w2[c2, ci, k] * [i2 == i2'].
    w2 = jnp.pad(p["conv2_w"].astype(f32), ((0, 0), (0, 2), (0, 0), (0, 0)))
    w2 = w2.transpose(0, 2, 3, 1).reshape(16, 25, 8)           # (c2, k, ci)
    eye4 = jnp.eye(4, dtype=f32)
    w2t = (w2[:, None, :, None, :] * eye4[None, :, None, :, None]).reshape(64, 800)
    b2c = jnp.repeat(p["conv2_b"].astype(f32), 4).reshape(64, 1)

    # fc1: columns reordered (c2, i2, j2) -> (j2, c2, i2); rows 120 -> 128.
    wf1 = p["fc1_w"].astype(f32).reshape(120, 16, 4, 4).transpose(0, 3, 1, 2)
    wf1 = jnp.pad(wf1.reshape(120, 256), ((0, 8), (0, 0)))     # (128, 256)
    bf1 = jnp.pad(p["fc1_b"].astype(f32), (0, 8)).reshape(128, 1)

    # fc2 / fc3: padded to (128, 128) lane/sublane-dense GEMMs.
    wf2 = jnp.pad(p["fc2_w"].astype(f32), ((0, 44), (0, 8)))   # (128, 128)
    bf2 = jnp.pad(p["fc2_b"].astype(f32), (0, 44)).reshape(128, 1)
    wf3 = jnp.pad(p["fc3_w"].astype(f32), ((0, 118), (0, 44))) # (128, 128)
    bf3 = jnp.pad(p["fc3_b"].astype(f32), (0, 118)).reshape(128, 1)

    return {"w1t": w1t, "b1c": b1c, "w2t": w2t, "b2c": b2c,
            "wf1": wf1, "bf1": bf1, "wf2": wf2, "bf2": bf2,
            "wf3": wf3, "bf3": bf3}


# ----------------------------------------------------------------------------
# Forward: XLA only does a cheap space-to-depth permutation of the raw input
# (no HBM amplification); everything else is the single Pallas kernel.
# ----------------------------------------------------------------------------
@jax.jit
def lenet_forward(prep, x):
    B = x.shape[0]
    assert x.shape[1:] == (1, 28, 28), "LeNet geometry needs (B, 1, 28, 28)"
    x = x.astype(jnp.float32)

    tb = _pick_batch_tile(B)
    nblk = pl.cdiv(B, tb)
    Bpad = nblk * tb

    xp = x.reshape(B, 28, 28)
    if Bpad != B:
        xp = jnp.pad(xp, ((0, Bpad - B), (0, 0), (0, 0)))
    # x_prep[blk, gy, gx, ri, ci*tb + b] = x[blk*tb + b, 4*ri + gy, 4*ci + gx]
    xp = xp.reshape(nblk, tb, 7, 4, 7, 4).transpose(0, 3, 5, 2, 4, 1)
    xp = xp.reshape(nblk, 4, 4, 7, 7 * tb)

    flops_per_image = 2 * (48 * 150 * 96 + 64 * 800 * 16 + 128 * 256 + 2 * 128 * 128)
    param_elems = (48 * 150 + 48 + 64 * 800 + 64 + 128 * 256 + 128
                   + 2 * (128 * 128 + 128))

    out = pl.pallas_call(
        partial(_lenet_kernel, tb=tb),
        out_shape=jax.ShapeDtypeStruct((nblk, 128, tb), jnp.float32),
        grid=(nblk,),
        in_specs=[
            pl.BlockSpec((1, 4, 4, 7, 7 * tb), lambda i: (i, 0, 0, 0, 0)),
            pl.BlockSpec((48, 150), lambda i: (0, 0)),
            pl.BlockSpec((48, 1), lambda i: (0, 0)),
            pl.BlockSpec((64, 800), lambda i: (0, 0)),
            pl.BlockSpec((64, 1), lambda i: (0, 0)),
            pl.BlockSpec((128, 256), lambda i: (0, 0)),
            pl.BlockSpec((128, 1), lambda i: (0, 0)),
            pl.BlockSpec((128, 128), lambda i: (0, 0)),
            pl.BlockSpec((128, 1), lambda i: (0, 0)),
            pl.BlockSpec((128, 128), lambda i: (0, 0)),
            pl.BlockSpec((128, 1), lambda i: (0, 0)),
        ],
        out_specs=pl.BlockSpec((1, 128, tb), lambda i: (i, 0, 0)),
        compiler_params=pltpu.CompilerParams(
            dimension_semantics=("parallel",),
            vmem_limit_bytes=_VMEM_LIMIT),
        cost_estimate=pl.CostEstimate(
            flops=flops_per_image * Bpad,
            transcendentals=0,
            bytes_accessed=4 * (Bpad * (784 + 128) + param_elems)),
    )(xp, prep["w1t"], prep["b1c"], prep["w2t"], prep["b2c"],
      prep["wf1"], prep["bf1"], prep["wf2"], prep["bf2"],
      prep["wf3"], prep["bf3"])

    # (nblk, 128, tb) -> (Bpad, 128) -> (B, 10)
    logits = out.transpose(0, 2, 1).reshape(Bpad, 128)
    return logits[:B, :10]


# ----------------------------------------------------------------------------
# Pure-JAX reference (torch semantics) for a correctness sanity check.
# ----------------------------------------------------------------------------
def lenet_reference(p, x):
    def conv(x, w, b):
        y = jax.lax.conv_general_dilated(
            x, w, (1, 1), "VALID", dimension_numbers=("NCHW", "OIHW", "NCHW"))
        return y + b[None, :, None, None]

    def pool2(y):
        b, c, h, w = y.shape
        return y.reshape(b, c, h // 2, 2, w // 2, 2).max(axis=(3, 5))

    y = jax.nn.relu(pool2(conv(x, p["conv1_w"], p["conv1_b"])))
    y = jax.nn.relu(pool2(conv(y, p["conv2_w"], p["conv2_b"])))
    y = y.reshape(x.shape[0], 16 * 4 * 4)
    y = jax.nn.relu(y @ p["fc1_w"].T + p["fc1_b"])
    y = jax.nn.relu(y @ p["fc2_w"].T + p["fc2_b"])
    return y @ p["fc3_w"].T + p["fc3_b"]


if __name__ == "__main__":
    import numpy as np

    key = jax.random.PRNGKey(0)
    pkey, xkey = jax.random.split(key)
    params = init_params(pkey)
    prep = prepare_params(params)

    # LeNet geometry requires 28x28 single-channel inputs; small batch of 2.
    x = jax.random.normal(xkey, (2, 1, 28, 28), jnp.float32)

    out = jax.block_until_ready(lenet_forward(prep, x))
    assert out.shape == (2, 10), out.shape

    ref = jax.block_until_ready(lenet_reference(params, x))
    np.testing.assert_allclose(np.asarray(out), np.asarray(ref),
                               rtol=5e-2, atol=5e-2)
    print("KERNEL_OK")
</pallas_src>

<mosaic_0001>
module attributes {stable_mosaic.version = 11 : i64} {
  func.func @_lenet_kernel(%arg0: i32, %arg1: memref<1x4x4x7x7xf32, #tpu.memory_space<vmem>>, %arg2: memref<48x150xf32, #tpu.memory_space<vmem>>, %arg3: memref<48x1xf32, #tpu.memory_space<vmem>>, %arg4: memref<64x800xf32, #tpu.memory_space<vmem>>, %arg5: memref<64x1xf32, #tpu.memory_space<vmem>>, %arg6: memref<128x256xf32, #tpu.memory_space<vmem>>, %arg7: memref<128x1xf32, #tpu.memory_space<vmem>>, %arg8: memref<128x128xf32, #tpu.memory_space<vmem>>, %arg9: memref<128x1xf32, #tpu.memory_space<vmem>>, %arg10: memref<128x128xf32, #tpu.memory_space<vmem>>, %arg11: memref<128x1xf32, #tpu.memory_space<vmem>>, %arg12: memref<1x128x1xf32, #tpu.memory_space<vmem>>) attributes {dimension_semantics = [#tpu.dimension_semantics<parallel>], iteration_bounds = array<i64: 2>, scalar_prefetch = 0 : i64, scratch_operands = 0 : i64, tpu.core_type = #tpu.core_type<tc>, window_params = [{transform_indices = @transform_0, window_bounds = array<i64: 1, 4, 4, 7, 7>}, {pipeline_mode = #tpu.pipeline_mode<synchronous>, transform_indices = @transform_1, window_bounds = array<i64: 48, 150>}, {pipeline_mode = #tpu.pipeline_mode<synchronous>, transform_indices = @transform_2, window_bounds = array<i64: 48, 1>}, {pipeline_mode = #tpu.pipeline_mode<synchronous>, transform_indices = @transform_3, window_bounds = array<i64: 64, 800>}, {pipeline_mode = #tpu.pipeline_mode<synchronous>, transform_indices = @transform_4, window_bounds = array<i64: 64, 1>}, {pipeline_mode = #tpu.pipeline_mode<synchronous>, transform_indices = @transform_5, window_bounds = array<i64: 128, 256>}, {pipeline_mode = #tpu.pipeline_mode<synchronous>, transform_indices = @transform_6, window_bounds = array<i64: 128, 1>}, {pipeline_mode = #tpu.pipeline_mode<synchronous>, transform_indices = @transform_7, window_bounds = array<i64: 128, 128>}, {pipeline_mode = #tpu.pipeline_mode<synchronous>, transform_indices = @transform_8, window_bounds = array<i64: 128, 1>}, {pipeline_mode = #tpu.pipeline_mode<synchronous>, transform_indices = @transform_9, window_bounds = array<i64: 128, 128>}, {pipeline_mode = #tpu.pipeline_mode<synchronous>, transform_indices = @transform_10, window_bounds = array<i64: 128, 1>}, {transform_indices = @transform_11, window_bounds = array<i64: 1, 128, 1>}]} {
    %c0 = arith.constant 0 : index
    %c0_0 = arith.constant 0 : index
    %c0_1 = arith.constant 0 : index
    %c0_2 = arith.constant 0 : index
    %c0_3 = arith.constant 0 : index
    %0 = vector.load %arg1[%c0, %c0_0, %c0_1, %c0_2, %c0_3] : memref<1x4x4x7x7xf32, #tpu.memory_space<vmem>>, vector<1x1x1x7x7xf32>
    %1 = vector.shape_cast %0 : vector<1x1x1x7x7xf32> to vector<7x7xf32>
    %c0_4 = arith.constant 0 : index
    %c0_5 = arith.constant 0 : index
    %c1 = arith.constant 1 : index
    %c0_6 = arith.constant 0 : index
    %c0_7 = arith.constant 0 : index
    %2 = vector.load %arg1[%c0_4, %c0_5, %c1, %c0_6, %c0_7] : memref<1x4x4x7x7xf32, #tpu.memory_space<vmem>>, vector<1x1x1x7x7xf32>
    %3 = vector.shape_cast %2 : vector<1x1x1x7x7xf32> to vector<7x7xf32>
    %c0_8 = arith.constant 0 : index
    %c0_9 = arith.constant 0 : index
    %c2 = arith.constant 2 : index
    %c0_10 = arith.constant 0 : index
    %c0_11 = arith.constant 0 : index
    %4 = vector.load %arg1[%c0_8, %c0_9, %c2, %c0_10, %c0_11] : memref<1x4x4x7x7xf32, #tpu.memory_space<vmem>>, vector<1x1x1x7x7xf32>
    %5 = vector.shape_cast %4 : vector<1x1x1x7x7xf32> to vector<7x7xf32>
    %c0_12 = arith.constant 0 : index
    %c0_13 = arith.constant 0 : index
    %c3 = arith.constant 3 : index
    %c0_14 = arith.constant 0 : index
    %c0_15 = arith.constant 0 : index
    %6 = vector.load %arg1[%c0_12, %c0_13, %c3, %c0_14, %c0_15] : memref<1x4x4x7x7xf32, #tpu.memory_space<vmem>>, vector<1x1x1x7x7xf32>
    %7 = vector.shape_cast %6 : vector<1x1x1x7x7xf32> to vector<7x7xf32>
    %c0_16 = arith.constant 0 : index
    %c1_17 = arith.constant 1 : index
    %c0_18 = arith.constant 0 : index
    %c0_19 = arith.constant 0 : index
    %c0_20 = arith.constant 0 : index
    %8 = vector.load %arg1[%c0_16, %c1_17, %c0_18, %c0_19, %c0_20] : memref<1x4x4x7x7xf32, #tpu.memory_space<vmem>>, vector<1x1x1x7x7xf32>
    %9 = vector.shape_cast %8 : vector<1x1x1x7x7xf32> to vector<7x7xf32>
    %c0_21 = arith.constant 0 : index
    %c1_22 = arith.constant 1 : index
    %c1_23 = arith.constant 1 : index
    %c0_24 = arith.constant 0 : index
    %c0_25 = arith.constant 0 : index
    %10 = vector.load %arg1[%c0_21, %c1_22, %c1_23, %c0_24, %c0_25] : memref<1x4x4x7x7xf32, #tpu.memory_space<vmem>>, vector<1x1x1x7x7xf32>
    %11 = vector.shape_cast %10 : vector<1x1x1x7x7xf32> to vector<7x7xf32>
    %c0_26 = arith.constant 0 : index
    %c1_27 = arith.constant 1 : index
    %c2_28 = arith.constant 2 : index
    %c0_29 = arith.constant 0 : index
    %c0_30 = arith.constant 0 : index
    %12 = vector.load %arg1[%c0_26, %c1_27, %c2_28, %c0_29, %c0_30] : memref<1x4x4x7x7xf32, #tpu.memory_space<vmem>>, vector<1x1x1x7x7xf32>
    %13 = vector.shape_cast %12 : vector<1x1x1x7x7xf32> to vector<7x7xf32>
    %c0_31 = arith.constant 0 : index
    %c1_32 = arith.constant 1 : index
    %c3_33 = arith.constant 3 : index
    %c0_34 = arith.constant 0 : index
    %c0_35 = arith.constant 0 : index
    %14 = vector.load %arg1[%c0_31, %c1_32, %c3_33, %c0_34, %c0_35] : memref<1x4x4x7x7xf32, #tpu.memory_space<vmem>>, vector<1x1x1x7x7xf32>
    %15 = vector.shape_cast %14 : vector<1x1x1x7x7xf32> to vector<7x7xf32>
    %c0_36 = arith.constant 0 : index
    %c2_37 = arith.constant 2 : index
    %c0_38 = arith.constant 0 : index
    %c0_39 = arith.constant 0 : index
    %c0_40 = arith.constant 0 : index
    %16 = vector.load %arg1[%c0_36, %c2_37, %c0_38, %c0_39, %c0_40] : memref<1x4x4x7x7xf32, #tpu.memory_space<vmem>>, vector<1x1x1x7x7xf32>
    %17 = vector.shape_cast %16 : vector<1x1x1x7x7xf32> to vector<7x7xf32>
    %c0_41 = arith.constant 0 : index
    %c2_42 = arith.constant 2 : index
    %c1_43 = arith.constant 1 : index
    %c0_44 = arith.constant 0 : index
    %c0_45 = arith.constant 0 : index
    %18 = vector.load %arg1[%c0_41, %c2_42, %c1_43, %c0_44, %c0_45] : memref<1x4x4x7x7xf32, #tpu.memory_space<vmem>>, vector<1x1x1x7x7xf32>
    %19 = vector.shape_cast %18 : vector<1x1x1x7x7xf32> to vector<7x7xf32>
    %c0_46 = arith.constant 0 : index
    %c2_47 = arith.constant 2 : index
    %c2_48 = arith.constant 2 : index
    %c0_49 = arith.constant 0 : index
    %c0_50 = arith.constant 0 : index
    %20 = vector.load %arg1[%c0_46, %c2_47, %c2_48, %c0_49, %c0_50] : memref<1x4x4x7x7xf32, #tpu.memory_space<vmem>>, vector<1x1x1x7x7xf32>
    %21 = vector.shape_cast %20 : vector<1x1x1x7x7xf32> to vector<7x7xf32>
    %c0_51 = arith.constant 0 : index
    %c2_52 = arith.constant 2 : index
    %c3_53 = arith.constant 3 : index
    %c0_54 = arith.constant 0 : index
    %c0_55 = arith.constant 0 : index
    %22 = vector.load %arg1[%c0_51, %c2_52, %c3_53, %c0_54, %c0_55] : memref<1x4x4x7x7xf32, #tpu.memory_space<vmem>>, vector<1x1x1x7x7xf32>
    %23 = vector.shape_cast %22 : vector<1x1x1x7x7xf32> to vector<7x7xf32>
    %c0_56 = arith.constant 0 : index
    %c3_57 = arith.constant 3 : index
    %c0_58 = arith.constant 0 : index
    %c0_59 = arith.constant 0 : index
    %c0_60 = arith.constant 0 : index
    %24 = vector.load %arg1[%c0_56, %c3_57, %c0_58, %c0_59, %c0_60] : memref<1x4x4x7x7xf32, #tpu.memory_space<vmem>>, vector<1x1x1x7x7xf32>
    %25 = vector.shape_cast %24 : vector<1x1x1x7x7xf32> to vector<7x7xf32>
    %c0_61 = arith.constant 0 : index
    %c3_62 = arith.constant 3 : index
    %c1_63 = arith.constant 1 : index
    %c0_64 = arith.constant 0 : index
    %c0_65 = arith.constant 0 : index
    %26 = vector.load %arg1[%c0_61, %c3_62, %c1_63, %c0_64, %c0_65] : memref<1x4x4x7x7xf32, #tpu.memory_space<vmem>>, vector<1x1x1x7x7xf32>
    %27 = vector.shape_cast %26 : vector<1x1x1x7x7xf32> to vector<7x7xf32>
    %c0_66 = arith.constant 0 : index
    %c3_67 = arith.constant 3 : index
    %c2_68 = arith.constant 2 : index
    %c0_69 = arith.constant 0 : index
    %c0_70 = arith.constant 0 : index
    %28 = vector.load %arg1[%c0_66, %c3_67, %c2_68, %c0_69, %c0_70] : memref<1x4x4x7x7xf32, #tpu.memory_space<vmem>>, vector<1x1x1x7x7xf32>
    %29 = vector.shape_cast %28 : vector<1x1x1x7x7xf32> to vector<7x7xf32>
    %c0_71 = arith.constant 0 : index
    %c3_72 = arith.constant 3 : index
    %c3_73 = arith.constant 3 : index
    %c0_74 = arith.constant 0 : index
    %c0_75 = arith.constant 0 : index
    %30 = vector.load %arg1[%c0_71, %c3_72, %c3_73, %c0_74, %c0_75] : memref<1x4x4x7x7xf32, #tpu.memory_space<vmem>>, vector<1x1x1x7x7xf32>
    %31 = vector.shape_cast %30 : vector<1x1x1x7x7xf32> to vector<7x7xf32>
    %32 = vector.extract_strided_slice %1 {offsets = [0, 0], sizes = [6, 6], strides = [1, 1]} : vector<7x7xf32> to vector<6x6xf32>
    %33 = vector.extract_strided_slice %3 {offsets = [0, 0], sizes = [6, 6], strides = [1, 1]} : vector<7x7xf32> to vector<6x6xf32>
    %34 = vector.extract_strided_slice %5 {offsets = [0, 0], sizes = [6, 6], strides = [1, 1]} : vector<7x7xf32> to vector<6x6xf32>
    %35 = vector.extract_strided_slice %7 {offsets = [0, 0], sizes = [6, 6], strides = [1, 1]} : vector<7x7xf32> to vector<6x6xf32>
    %36 = vector.extract_strided_slice %1 {offsets = [0, 1], sizes = [6, 6], strides = [1, 1]} : vector<7x7xf32> to vector<6x6xf32>
    %37 = vector.extract_strided_slice %3 {offsets = [0, 1], sizes = [6, 6], strides = [1, 1]} : vector<7x7xf32> to vector<6x6xf32>
    %38 = vector.extract_strided_slice %5 {offsets = [0, 1], sizes = [6, 6], strides = [1, 1]} : vector<7x7xf32> to vector<6x6xf32>
    %39 = vector.extract_strided_slice %7 {offsets = [0, 1], sizes = [6, 6], strides = [1, 1]} : vector<7x7xf32> to vector<6x6xf32>
    %40 = vector.extract_strided_slice %9 {offsets = [0, 0], sizes = [6, 6], strides = [1, 1]} : vector<7x7xf32> to vector<6x6xf32>
    %41 = vector.extract_strided_slice %11 {offsets = [0, 0], sizes = [6, 6], strides = [1, 1]} : vector<7x7xf32> to vector<6x6xf32>
    %42 = vector.extract_strided_slice %13 {offsets = [0, 0], sizes = [6, 6], strides = [1, 1]} : vector<7x7xf32> to vector<6x6xf32>
    %43 = vector.extract_strided_slice %15 {offsets = [0, 0], sizes = [6, 6], strides = [1, 1]} : vector<7x7xf32> to vector<6x6xf32>
    %44 = vector.extract_strided_slice %9 {offsets = [0, 1], sizes = [6, 6], strides = [1, 1]} : vector<7x7xf32> to vector<6x6xf32>
    %45 = vector.extract_strided_slice %11 {offsets = [0, 1], sizes = [6, 6], strides = [1, 1]} : vector<7x7xf32> to vector<6x6xf32>
    %46 = vector.extract_strided_slice %13 {offsets = [0, 1], sizes = [6, 6], strides = [1, 1]} : vector<7x7xf32> to vector<6x6xf32>
    %47 = vector.extract_strided_slice %15 {offsets = [0, 1], sizes = [6, 6], strides = [1, 1]} : vector<7x7xf32> to vector<6x6xf32>
    %48 = vector.extract_strided_slice %17 {offsets = [0, 0], sizes = [6, 6], strides = [1, 1]} : vector<7x7xf32> to vector<6x6xf32>
    %49 = vector.extract_strided_slice %19 {offsets = [0, 0], sizes = [6, 6], strides = [1, 1]} : vector<7x7xf32> to vector<6x6xf32>
    %50 = vector.extract_strided_slice %21 {offsets = [0, 0], sizes = [6, 6], strides = [1, 1]} : vector<7x7xf32> to vector<6x6xf32>
    %51 = vector.extract_strided_slice %23 {offsets = [0, 0], sizes = [6, 6], strides = [1, 1]} : vector<7x7xf32> to vector<6x6xf32>
    %52 = vector.extract_strided_slice %17 {offsets = [0, 1], sizes = [6, 6], strides = [1, 1]} : vector<7x7xf32> to vector<6x6xf32>
    %53 = vector.extract_strided_slice %19 {offsets = [0, 1], sizes = [6, 6], strides = [1, 1]} : vector<7x7xf32> to vector<6x6xf32>
    %54 = vector.extract_strided_slice %21 {offsets = [0, 1], sizes = [6, 6], strides = [1, 1]} : vector<7x7xf32> to vector<6x6xf32>
    %55 = vector.extract_strided_slice %23 {offsets = [0, 1], sizes = [6, 6], strides = [1, 1]} : vector<7x7xf32> to vector<6x6xf32>
    %56 = vector.extract_strided_slice %25 {offsets = [0, 0], sizes = [6, 6], strides = [1, 1]} : vector<7x7xf32> to vector<6x6xf32>
    %57 = vector.extract_strided_slice %27 {offsets = [0, 0], sizes = [6, 6], strides = [1, 1]} : vector<7x7xf32> to vector<6x6xf32>
    %58 = vector.extract_strided_slice %29 {offsets = [0, 0], sizes = [6, 6], strides = [1, 1]} : vector<7x7xf32> to vector<6x6xf32>
    %59 = vector.extract_strided_slice %31 {offsets = [0, 0], sizes = [6, 6], strides = [1, 1]} : vector<7x7xf32> to vector<6x6xf32>
    %60 = vector.extract_strided_slice %25 {offsets = [0, 1], sizes = [6, 6], strides = [1, 1]} : vector<7x7xf32> to vector<6x6xf32>
    %61 = vector.extract_strided_slice %27 {offsets = [0, 1], sizes = [6, 6], strides = [1, 1]} : vector<7x7xf32> to vector<6x6xf32>
    %62 = vector.extract_strided_slice %29 {offsets = [0, 1], sizes = [6, 6], strides = [1, 1]} : vector<7x7xf32> to vector<6x6xf32>
    %63 = vector.extract_strided_slice %31 {offsets = [0, 1], sizes = [6, 6], strides = [1, 1]} : vector<7x7xf32> to vector<6x6xf32>
    %64 = vector.extract_strided_slice %1 {offsets = [1, 0], sizes = [6, 6], strides = [1, 1]} : vector<7x7xf32> to vector<6x6xf32>
    %65 = vector.extract_strided_slice %3 {offsets = [1, 0], sizes = [6, 6], strides = [1, 1]} : vector<7x7xf32> to vector<6x6xf32>
    %66 = vector.extract_strided_slice %5 {offsets = [1, 0], sizes = [6, 6], strides = [1, 1]} : vector<7x7xf32> to vector<6x6xf32>
    %67 = vector.extract_strided_slice %7 {offsets = [1, 0], sizes = [6, 6], strides = [1, 1]} : vector<7x7xf32> to vector<6x6xf32>
    %68 = vector.extract_strided_slice %1 {offsets = [1, 1], sizes = [6, 6], strides = [1, 1]} : vector<7x7xf32> to vector<6x6xf32>
    %69 = vector.extract_strided_slice %3 {offsets = [1, 1], sizes = [6, 6], strides = [1, 1]} : vector<7x7xf32> to vector<6x6xf32>
    %70 = vector.extract_strided_slice %5 {offsets = [1, 1], sizes = [6, 6], strides = [1, 1]} : vector<7x7xf32> to vector<6x6xf32>
    %71 = vector.extract_strided_slice %7 {offsets = [1, 1], sizes = [6, 6], strides = [1, 1]} : vector<7x7xf32> to vector<6x6xf32>
    %72 = vector.extract_strided_slice %9 {offsets = [1, 0], sizes = [6, 6], strides = [1, 1]} : vector<7x7xf32> to vector<6x6xf32>
    %73 = vector.extract_strided_slice %11 {offsets = [1, 0], sizes = [6, 6], strides = [1, 1]} : vector<7x7xf32> to vector<6x6xf32>
    %74 = vector.extract_strided_slice %13 {offsets = [1, 0], sizes = [6, 6], strides = [1, 1]} : vector<7x7xf32> to vector<6x6xf32>
    %75 = vector.extract_strided_slice %15 {offsets = [1, 0], sizes = [6, 6], strides = [1, 1]} : vector<7x7xf32> to vector<6x6xf32>
    %76 = vector.extract_strided_slice %9 {offsets = [1, 1], sizes = [6, 6], strides = [1, 1]} : vector<7x7xf32> to vector<6x6xf32>
    %77 = vector.extract_strided_slice %11 {offsets = [1, 1], sizes = [6, 6], strides = [1, 1]} : vector<7x7xf32> to vector<6x6xf32>
    %78 = vector.extract_strided_slice %13 {offsets = [1, 1], sizes = [6, 6], strides = [1, 1]} : vector<7x7xf32> to vector<6x6xf32>
    %79 = vector.extract_strided_slice %15 {offsets = [1, 1], sizes = [6, 6], strides = [1, 1]} : vector<7x7xf32> to vector<6x6xf32>
    %80 = vector.extract_strided_slice %17 {offsets = [1, 0], sizes = [6, 6], strides = [1, 1]} : vector<7x7xf32> to vector<6x6xf32>
    %81 = vector.extract_strided_slice %19 {offsets = [1, 0], sizes = [6, 6], strides = [1, 1]} : vector<7x7xf32> to vector<6x6xf32>
    %82 = vector.extract_strided_slice %21 {offsets = [1, 0], sizes = [6, 6], strides = [1, 1]} : vector<7x7xf32> to vector<6x6xf32>
    %83 = vector.extract_strided_slice %23 {offsets = [1, 0], sizes = [6, 6], strides = [1, 1]} : vector<7x7xf32> to vector<6x6xf32>
    %84 = vector.extract_strided_slice %17 {offsets = [1, 1], sizes = [6, 6], strides = [1, 1]} : vector<7x7xf32> to vector<6x6xf32>
    %85 = vector.extract_strided_slice %19 {offsets = [1, 1], sizes = [6, 6], strides = [1, 1]} : vector<7x7xf32> to vector<6x6xf32>
    %86 = vector.extract_strided_slice %21 {offsets = [1, 1], sizes = [6, 6], strides = [1, 1]} : vector<7x7xf32> to vector<6x6xf32>
    %87 = vector.extract_strided_slice %23 {offsets = [1, 1], sizes = [6, 6], strides = [1, 1]} : vector<7x7xf32> to vector<6x6xf32>
    %88 = vector.extract_strided_slice %25 {offsets = [1, 0], sizes = [6, 6], strides = [1, 1]} : vector<7x7xf32> to vector<6x6xf32>
    %89 = vector.extract_strided_slice %27 {offsets = [1, 0], sizes = [6, 6], strides = [1, 1]} : vector<7x7xf32> to vector<6x6xf32>
    %90 = vector.extract_strided_slice %29 {offsets = [1, 0], sizes = [6, 6], strides = [1, 1]} : vector<7x7xf32> to vector<6x6xf32>
    %91 = vector.extract_strided_slice %31 {offsets = [1, 0], sizes = [6, 6], strides = [1, 1]} : vector<7x7xf32> to vector<6x6xf32>
    %92 = vector.extract_strided_slice %25 {offsets = [1, 1], sizes = [6, 6], strides = [1, 1]} : vector<7x7xf32> to vector<6x6xf32>
    %93 = vector.extract_strided_slice %27 {offsets = [1, 1], sizes = [6, 6], strides = [1, 1]} : vector<7x7xf32> to vector<6x6xf32>
    %94 = vector.extract_strided_slice %29 {offsets = [1, 1], sizes = [6, 6], strides = [1, 1]} : vector<7x7xf32> to vector<6x6xf32>
    %95 = vector.extract_strided_slice %31 {offsets = [1, 1], sizes = [6, 6], strides = [1, 1]} : vector<7x7xf32> to vector<6x6xf32>
    %96 = tpu.concatenate %32, %33, %40, %41, %34, %35, %42, %43, %48, %49, %56, %57, %50, %51, %58, %59 in 1 : vector<6x6xf32>, vector<6x6xf32>, vector<6x6xf32>, vector<6x6xf32>, vector<6x6xf32>, vector<6x6xf32>, vector<6x6xf32>, vector<6x6xf32>, vector<6x6xf32>, vector<6x6xf32>, vector<6x6xf32>, vector<6x6xf32>, vector<6x6xf32>, vector<6x6xf32>, vector<6x6xf32>, vector<6x6xf32> -> vector<6x96xf32>
    %97 = tpu.concatenate %33, %34, %41, %42, %35, %36, %43, %44, %49, %50, %57, %58, %51, %52, %59, %60 in 1 : vector<6x6xf32>, vector<6x6xf32>, vector<6x6xf32>, vector<6x6xf32>, vector<6x6xf32>, vector<6x6xf32>, vector<6x6xf32>, vector<6x6xf32>, vector<6x6xf32>, vector<6x6xf32>, vector<6x6xf32>, vector<6x6xf32>, vector<6x6xf32>, vector<6x6xf32>, vector<6x6xf32>, vector<6x6xf32> -> vector<6x96xf32>
    %98 = tpu.concatenate %34, %35, %42, %43, %36, %37, %44, %45, %50, %51, %58, %59, %52, %53, %60, %61 in 1 : vector<6x6xf32>, vector<6x6xf32>, vector<6x6xf32>, vector<6x6xf32>, vector<6x6xf32>, vector<6x6xf32>, vector<6x6xf32>, vector<6x6xf32>, vector<6x6xf32>, vector<6x6xf32>, vector<6x6xf32>, vector<6x6xf32>, vector<6x6xf32>, vector<6x6xf32>, vector<6x6xf32>, vector<6x6xf32> -> vector<6x96xf32>
    %99 = tpu.concatenate %35, %36, %43, %44, %37, %38, %45, %46, %51, %52, %59, %60, %53, %54, %61, %62 in 1 : vector<6x6xf32>, vector<6x6xf32>, vector<6x6xf32>, vector<6x6xf32>, vector<6x6xf32>, vector<6x6xf32>, vector<6x6xf32>, vector<6x6xf32>, vector<6x6xf32>, vector<6x6xf32>, vector<6x6xf32>, vector<6x6xf32>, vector<6x6xf32>, vector<6x6xf32>, vector<6x6xf32>, vector<6x6xf32> -> vector<6x96xf32>
    %100 = tpu.concatenate %36, %37, %44, %45, %38, %39, %46, %47, %52, %53, %60, %61, %54, %55, %62, %63 in 1 : vector<6x6xf32>, vector<6x6xf32>, vector<6x6xf32>, vector<6x6xf32>, vector<6x6xf32>, vector<6x6xf32>, vector<6x6xf32>, vector<6x6xf32>, vector<6x6xf32>, vector<6x6xf32>, vector<6x6xf32>, vector<6x6xf32>, vector<6x6xf32>, vector<6x6xf32>, vector<6x6xf32>, vector<6x6xf32> -> vector<6x96xf32>
    %101 = tpu.concatenate %40, %41, %48, %49, %42, %43, %50, %51, %56, %57, %64, %65, %58, %59, %66, %67 in 1 : vector<6x6xf32>, vector<6x6xf32>, vector<6x6xf32>, vector<6x6xf32>, vector<6x6xf32>, vector<6x6xf32>, vector<6x6xf32>, vector<6x6xf32>, vector<6x6xf32>, vector<6x6xf32>, vector<6x6xf32>, vector<6x6xf32>, vector<6x6xf32>, vector<6x6xf32>, vector<6x6xf32>, vector<6x6xf32> -> vector<6x96xf32>
    %102 = tpu.concatenate %41, %42, %49, %50, %43, %44, %51, %52, %57, %58, %65, %66, %59, %60, %67, %68 in 1 : vector<6x6xf32>, vector<6x6xf32>, vector<6x6xf32>, vector<6x6xf32>, vector<6x6xf32>, vector<6x6xf32>, vector<6x6xf32>, vector<6x6xf32>, vector<6x6xf32>, vector<6x6xf32>, vector<6x6xf32>, vector<6x6xf32>, vector<6x6xf32>, vector<6x6xf32>, vector<6x6xf32>, vector<6x6xf32> -> vector<6x96xf32>
    %103 = tpu.concatenate %42, %43, %50, %51, %44, %45, %52, %53, %58, %59, %66, %67, %60, %61, %68, %69 in 1 : vector<6x6xf32>, vector<6x6xf32>, vector<6x6xf32>, vector<6x6xf32>, vector<6x6xf32>, vector<6x6xf32>, vector<6x6xf32>, vector<6x6xf32>, vector<6x6xf32>, vector<6x6xf32>, vector<6x6xf32>, vector<6x6xf32>, vector<6x6xf32>, vector<6x6xf32>, vector<6x6xf32>, vector<6x6xf32> -> vector<6x96xf32>
    %104 = tpu.concatenate %43, %44, %51, %52, %45, %46, %53, %54, %59, %60, %67, %68, %61, %62, %69, %70 in 1 : vector<6x6xf32>, vector<6x6xf32>, vector<6x6xf32>, vector<6x6xf32>, vector<6x6xf32>, vector<6x6xf32>, vector<6x6xf32>, vector<6x6xf32>, vector<6x6xf32>, vector<6x6xf32>, vector<6x6xf32>, vector<6x6xf32>, vector<6x6xf32>, vector<6x6xf32>, vector<6x6xf32>, vector<6x6xf32> -> vector<6x96xf32>
    %105 = tpu.concatenate %44, %45, %52, %53, %46, %47, %54, %55, %60, %61, %68, %69, %62, %63, %70, %71 in 1 : vector<6x6xf32>, vector<6x6xf32>, vector<6x6xf32>, vector<6x6xf32>, vector<6x6xf32>, vector<6x6xf32>, vector<6x6xf32>, vector<6x6xf32>, vector<6x6xf32>, vector<6x6xf32>, vector<6x6xf32>, vector<6x6xf32>, vector<6x6xf32>, vector<6x6xf32>, vector<6x6xf32>, vector<6x6xf32> -> vector<6x96xf32>
    %106 = tpu.concatenate %48, %49, %56, %57, %50, %51, %58, %59, %64, %65, %72, %73, %66, %67, %74, %75 in 1 : vector<6x6xf32>, vector<6x6xf32>, vector<6x6xf32>, vector<6x6xf32>, vector<6x6xf32>, vector<6x6xf32>, vector<6x6xf32>, vector<6x6xf32>, vector<6x6xf32>, vector<6x6xf32>, vector<6x6xf32>, vector<6x6xf32>, vector<6x6xf32>, vector<6x6xf32>, vector<6x6xf32>, vector<6x6xf32> -> vector<6x96xf32>
    %107 = tpu.concatenate %49, %50, %57, %58, %51, %52, %59, %60, %65, %66, %73, %74, %67, %68, %75, %76 in 1 : vector<6x6xf32>, vector<6x6xf32>, vector<6x6xf32>, vector<6x6xf32>, vector<6x6xf32>, vector<6x6xf32>, vector<6x6xf32>, vector<6x6xf32>, vector<6x6xf32>, vector<6x6xf32>, vector<6x6xf32>, vector<6x6xf32>, vector<6x6xf32>, vector<6x6xf32>, vector<6x6xf32>, vector<6x6xf32> -> vector<6x96xf32>
    %108 = tpu.concatenate %50, %51, %58, %59, %52, %53, %60, %61, %66, %67, %74, %75, %68, %69, %76, %77 in 1 : vector<6x6xf32>, vector<6x6xf32>, vector<6x6xf32>, vector<6x6xf32>, vector<6x6xf32>, vector<6x6xf32>, vector<6x6xf32>, vector<6x6xf32>, vector<6x6xf32>, vector<6x6xf32>, vector<6x6xf32>, vector<6x6xf32>, vector<6x6xf32>, vector<6x6xf32>, vector<6x6xf32>, vector<6x6xf32> -> vector<6x96xf32>
    %109 = tpu.concatenate %51, %52, %59, %60, %53, %54, %61, %62, %67, %68, %75, %76, %69, %70, %77, %78 in 1 : vector<6x6xf32>, vector<6x6xf32>, vector<6x6xf32>, vector<6x6xf32>, vector<6x6xf32>, vector<6x6xf32>, vector<6x6xf32>, vector<6x6xf32>, vector<6x6xf32>, vector<6x6xf32>, vector<6x6xf32>, vector<6x6xf32>, vector<6x6xf32>, vector<6x6xf32>, vector<6x6xf32>, vector<6x6xf32> -> vector<6x96xf32>
    %110 = tpu.concatenate %52, %53, %60, %61, %54, %55, %62, %63, %68, %69, %76, %77, %70, %71, %78, %79 in 1 : vector<6x6xf32>, vector<6x6xf32>, vector<6x6xf32>, vector<6x6xf32>, vector<6x6xf32>, vector<6x6xf32>, vector<6x6xf32>, vector<6x6xf32>, vector<6x6xf32>, vector<6x6xf32>, vector<6x6xf32>, vector<6x6xf32>, vector<6x6xf32>, vector<6x6xf32>, vector<6x6xf32>, vector<6x6xf32> -> vector<6x96xf32>
    %111 = tpu.concatenate %56, %57, %64, %65, %58, %59, %66, %67, %72, %73, %80, %81, %74, %75, %82, %83 in 1 : vector<6x6xf32>, vector<6x6xf32>, vector<6x6xf32>, vector<6x6xf32>, vector<6x6xf32>, vector<6x6xf32>, vector<6x6xf32>, vector<6x6xf32>, vector<6x6xf32>, vector<6x6xf32>, vector<6x6xf32>, vector<6x6xf32>, vector<6x6xf32>, vector<6x6xf32>, vector<6x6xf32>, vector<6x6xf32> -> vector<6x96xf32>
    %112 = tpu.concatenate %57, %58, %65, %66, %59, %60, %67, %68, %73, %74, %81, %82, %75, %76, %83, %84 in 1 : vector<6x6xf32>, vector<6x6xf32>, vector<6x6xf32>, vector<6x6xf32>, vector<6x6xf32>, vector<6x6xf32>, vector<6x6xf32>, vector<6x6xf32>, vector<6x6xf32>, vector<6x6xf32>, vector<6x6xf32>, vector<6x6xf32>, vector<6x6xf32>, vector<6x6xf32>, vector<6x6xf32>, vector<6x6xf32> -> vector<6x96xf32>
    %113 = tpu.concatenate %58, %59, %66, %67, %60, %61, %68, %69, %74, %75, %82, %83, %76, %77, %84, %85 in 1 : vector<6x6xf32>, vector<6x6xf32>, vector<6x6xf32>, vector<6x6xf32>, vector<6x6xf32>, vector<6x6xf32>, vector<6x6xf32>, vector<6x6xf32>, vector<6x6xf32>, vector<6x6xf32>, vector<6x6xf32>, vector<6x6xf32>, vector<6x6xf32>, vector<6x6xf32>, vector<6x6xf32>, vector<6x6xf32> -> vector<6x96xf32>
    %114 = tpu.concatenate %59, %60, %67, %68, %61, %62, %69, %70, %75, %76, %83, %84, %77, %78, %85, %86 in 1 : vector<6x6xf32>, vector<6x6xf32>, vector<6x6xf32>, vector<6x6xf32>, vector<6x6xf32>, vector<6x6xf32>, vector<6x6xf32>, vector<6x6xf32>, vector<6x6xf32>, vector<6x6xf32>, vector<6x6xf32>, vector<6x6xf32>, vector<6x6xf32>, vector<6x6xf32>, vector<6x6xf32>, vector<6x6xf32> -> vector<6x96xf32>
    %115 = tpu.concatenate %60, %61, %68, %69, %62, %63, %70, %71, %76, %77, %84, %85, %78, %79, %86, %87 in 1 : vector<6x6xf32>, vector<6x6xf32>, vector<6x6xf32>, vector<6x6xf32>, vector<6x6xf32>, vector<6x6xf32>, vector<6x6xf32>, vector<6x6xf32>, vector<6x6xf32>, vector<6x6xf32>, vector<6x6xf32>, vector<6x6xf32>, vector<6x6xf32>, vector<6x6xf32>, vector<6x6xf32>, vector<6x6xf32> -> vector<6x96xf32>
    %116 = tpu.concatenate %64, %65, %72, %73, %66, %67, %74, %75, %80, %81, %88, %89, %82, %83, %90, %91 in 1 : vector<6x6xf32>, vector<6x6xf32>, vector<6x6xf32>, vector<6x6xf32>, vector<6x6xf32>, vector<6x6xf32>, vector<6x6xf32>, vector<6x6xf32>, vector<6x6xf32>, vector<6x6xf32>, vector<6x6xf32>, vector<6x6xf32>, vector<6x6xf32>, vector<6x6xf32>, vector<6x6xf32>, vector<6x6xf32> -> vector<6x96xf32>
    %117 = tpu.concatenate %65, %66, %73, %74, %67, %68, %75, %76, %81, %82, %89, %90, %83, %84, %91, %92 in 1 : vector<6x6xf32>, vector<6x6xf32>, vector<6x6xf32>, vector<6x6xf32>, vector<6x6xf32>, vector<6x6xf32>, vector<6x6xf32>, vector<6x6xf32>, vector<6x6xf32>, vector<6x6xf32>, vector<6x6xf32>, vector<6x6xf32>, vector<6x6xf32>, vector<6x6xf32>, vector<6x6xf32>, vector<6x6xf32> -> vector<6x96xf32>
    %118 = tpu.concatenate %66, %67, %74, %75, %68, %69, %76, %77, %82, %83, %90, %91, %84, %85, %92, %93 in 1 : vector<6x6xf32>, vector<6x6xf32>, vector<6x6xf32>, vector<6x6xf32>, vector<6x6xf32>, vector<6x6xf32>, vector<6x6xf32>, vector<6x6xf32>, vector<6x6xf32>, vector<6x6xf32>, vector<6x6xf32>, vector<6x6xf32>, vector<6x6xf32>, vector<6x6xf32>, vector<6x6xf32>, vector<6x6xf32> -> vector<6x96xf32>
    %119 = tpu.concatenate %67, %68, %75, %76, %69, %70, %77, %78, %83, %84, %91, %92, %85, %86, %93, %94 in 1 : vector<6x6xf32>, vector<6x6xf32>, vector<6x6xf32>, vector<6x6xf32>, vector<6x6xf32>, vector<6x6xf32>, vector<6x6xf32>, vector<6x6xf32>, vector<6x6xf32>, vector<6x6xf32>, vector<6x6xf32>, vector<6x6xf32>, vector<6x6xf32>, vector<6x6xf32>, vector<6x6xf32>, vector<6x6xf32> -> vector<6x96xf32>
    %120 = tpu.concatenate %68, %69, %76, %77, %70, %71, %78, %79, %84, %85, %92, %93, %86, %87, %94, %95 in 1 : vector<6x6xf32>, vector<6x6xf32>, vector<6x6xf32>, vector<6x6xf32>, vector<6x6xf32>, vector<6x6xf32>, vector<6x6xf32>, vector<6x6xf32>, vector<6x6xf32>, vector<6x6xf32>, vector<6x6xf32>, vector<6x6xf32>, vector<6x6xf32>, vector<6x6xf32>, vector<6x6xf32>, vector<6x6xf32> -> vector<6x96xf32>
    %121 = tpu.concatenate %96, %97, %98, %99, %100, %101, %102, %103, %104, %105, %106, %107, %108, %109, %110, %111 in 0 : vector<6x96xf32>, vector<6x96xf32>, vector<6x96xf32>, vector<6x96xf32>, vector<6x96xf32>, vector<6x96xf32>, vector<6x96xf32>, vector<6x96xf32>, vector<6x96xf32>, vector<6x96xf32>, vector<6x96xf32>, vector<6x96xf32>, vector<6x96xf32>, vector<6x96xf32>, vector<6x96xf32>, vector<6x96xf32> -> vector<96x96xf32>
    %122 = tpu.concatenate %112, %113, %114, %115, %116, %117, %118, %119, %120 in 0 : vector<6x96xf32>, vector<6x96xf32>, vector<6x96xf32>, vector<6x96xf32>, vector<6x96xf32>, vector<6x96xf32>, vector<6x96xf32>, vector<6x96xf32>, vector<6x96xf32> -> vector<54x96xf32>
    %123 = tpu.concatenate %121, %122 in 0 : vector<96x96xf32>, vector<54x96xf32> -> vector<150x96xf32>
    %c0_76 = arith.constant 0 : index
    %c0_77 = arith.constant 0 : index
    %124 = vector.load %arg2[%c0_76, %c0_77] : memref<48x150xf32, #tpu.memory_space<vmem>>, vector<48x150xf32>
    %cst = arith.constant dense<0.000000e+00> : vector<48x96xf32>
    %125 = tpu.matmul %124, %123, %cst {dimension_numbers = #tpu.dot_dimension_numbers<[1], [0], [0], [1], [0, 0, 1, 1], [], []>} : vector<48x150xf32>, vector<150x96xf32>, vector<48x96xf32> -> vector<48x96xf32>
    %126 = vector.extract_strided_slice %125 {offsets = [0, 0], sizes = [48, 6], strides = [1, 1]} : vector<48x96xf32> to vector<48x6xf32>
    %127 = vector.extract_strided_slice %125 {offsets = [0, 6], sizes = [48, 6], strides = [1, 1]} : vector<48x96xf32> to vector<48x6xf32>
    %128 = arith.maximumf %126, %127 : vector<48x6xf32>
    %129 = vector.extract_strided_slice %125 {offsets = [0, 12], sizes = [48, 6], strides = [1, 1]} : vector<48x96xf32> to vector<48x6xf32>
    %130 = arith.maximumf %128, %129 : vector<48x6xf32>
    %131 = vector.extract_strided_slice %125 {offsets = [0, 18], sizes = [48, 6], strides = [1, 1]} : vector<48x96xf32> to vector<48x6xf32>
    %132 = arith.maximumf %130, %131 : vector<48x6xf32>
    %c0_78 = arith.constant 0 : index
    %c0_79 = arith.constant 0 : index
    %133 = vector.load %arg3[%c0_78, %c0_79] : memref<48x1xf32, #tpu.memory_space<vmem>>, vector<48x1xf32>
    %134 = vector.broadcast %133 : vector<48x1xf32> to vector<48x6xf32>
    %135 = arith.addf %132, %134 : vector<48x6xf32>
    %cst_80 = arith.constant 0.000000e+00 : f32
    %136 = vector.broadcast %cst_80 : f32 to vector<48x6xf32>
    %137 = arith.maximumf %135, %136 : vector<48x6xf32>
    %138 = vector.extract_strided_slice %125 {offsets = [0, 24], sizes = [48, 6], strides = [1, 1]} : vector<48x96xf32> to vector<48x6xf32>
    %139 = vector.extract_strided_slice %125 {offsets = [0, 30], sizes = [48, 6], strides = [1, 1]} : vector<48x96xf32> to vector<48x6xf32>
    %140 = arith.maximumf %138, %139 : vector<48x6xf32>
    %141 = vector.extract_strided_slice %125 {offsets = [0, 36], sizes = [48, 6], strides = [1, 1]} : vector<48x96xf32> to vector<48x6xf32>
    %142 = arith.maximumf %140, %141 : vector<48x6xf32>
    %143 = vector.extract_strided_slice %125 {offsets = [0, 42], sizes = [48, 6], strides = [1, 1]} : vector<48x96xf32> to vector<48x6xf32>
    %144 = arith.maximumf %142, %143 : vector<48x6xf32>
    %c0_81 = arith.constant 0 : index
    %c0_82 = arith.constant 0 : index
    %145 = vector.load %arg3[%c0_81, %c0_82] : memref<48x1xf32, #tpu.memory_space<vmem>>, vector<48x1xf32>
    %146 = vector.broadcast %145 : vector<48x1xf32> to vector<48x6xf32>
    %147 = arith.addf %144, %146 : vector<48x6xf32>
    %cst_83 = arith.constant 0.000000e+00 : f32
    %148 = vector.broadcast %cst_83 : f32 to vector<48x6xf32>
    %149 = arith.maximumf %147, %148 : vector<48x6xf32>
    %150 = vector.extract_strided_slice %125 {offsets = [0, 48], sizes = [48, 6], strides = [1, 1]} : vector<48x96xf32> to vector<48x6xf32>
    %151 = vector.extract_strided_slice %125 {offsets = [0, 54], sizes = [48, 6], strides = [1, 1]} : vector<48x96xf32> to vector<48x6xf32>
    %152 = arith.maximumf %150, %151 : vector<48x6xf32>
    %153 = vector.extract_strided_slice %125 {offsets = [0, 60], sizes = [48, 6], strides = [1, 1]} : vector<48x96xf32> to vector<48x6xf32>
    %154 = arith.maximumf %152, %153 : vector<48x6xf32>
    %155 = vector.extract_strided_slice %125 {offsets = [0, 66], sizes = [48, 6], strides = [1, 1]} : vector<48x96xf32> to vector<48x6xf32>
    %156 = arith.maximumf %154, %155 : vector<48x6xf32>
    %c0_84 = arith.constant 0 : index
    %c0_85 = arith.constant 0 : index
    %157 = vector.load %arg3[%c0_84, %c0_85] : memref<48x1xf32, #tpu.memory_space<vmem>>, vector<48x1xf32>
    %158 = vector.broadcast %157 : vector<48x1xf32> to vector<48x6xf32>
    %159 = arith.addf %156, %158 : vector<48x6xf32>
    %cst_86 = arith.constant 0.000000e+00 : f32
    %160 = vector.broadcast %cst_86 : f32 to vector<48x6xf32>
    %161 = arith.maximumf %159, %160 : vector<48x6xf32>
    %162 = vector.extract_strided_slice %125 {offsets = [0, 72], sizes = [48, 6], strides = [1, 1]} : vector<48x96xf32> to vector<48x6xf32>
    %163 = vector.extract_strided_slice %125 {offsets = [0, 78], sizes = [48, 6], strides = [1, 1]} : vector<48x96xf32> to vector<48x6xf32>
    %164 = arith.maximumf %162, %163 : vector<48x6xf32>
    %165 = vector.extract_strided_slice %125 {offsets = [0, 84], sizes = [48, 6], strides = [1, 1]} : vector<48x96xf32> to vector<48x6xf32>
    %166 = arith.maximumf %164, %165 : vector<48x6xf32>
    %167 = vector.extract_strided_slice %125 {offsets = [0, 90], sizes = [48, 6], strides = [1, 1]} : vector<48x96xf32> to vector<48x6xf32>
    %168 = arith.maximumf %166, %167 : vector<48x6xf32>
    %c0_87 = arith.constant 0 : index
    %c0_88 = arith.constant 0 : index
    %169 = vector.load %arg3[%c0_87, %c0_88] : memref<48x1xf32, #tpu.memory_space<vmem>>, vector<48x1xf32>
    %170 = vector.broadcast %169 : vector<48x1xf32> to vector<48x6xf32>
    %171 = arith.addf %168, %170 : vector<48x6xf32>
    %cst_89 = arith.constant 0.000000e+00 : f32
    %172 = vector.broadcast %cst_89 : f32 to vector<48x6xf32>
    %173 = arith.maximumf %171, %172 : vector<48x6xf32>
    %174 = vector.extract_strided_slice %137 {offsets = [0, 0], sizes = [32, 4], strides = [1, 1]} : vector<48x6xf32> to vector<32x4xf32>
    %175 = vector.extract_strided_slice %149 {offsets = [0, 0], sizes = [32, 4], strides = [1, 1]} : vector<48x6xf32> to vector<32x4xf32>
    %176 = vector.extract_strided_slice %137 {offsets = [0, 1], sizes = [32, 4], strides = [1, 1]} : vector<48x6xf32> to vector<32x4xf32>
    %177 = vector.extract_strided_slice %149 {offsets = [0, 1], sizes = [32, 4], strides = [1, 1]} : vector<48x6xf32> to vector<32x4xf32>
    %178 = vector.extract_strided_slice %137 {offsets = [0, 2], sizes = [32, 4], strides = [1, 1]} : vector<48x6xf32> to vector<32x4xf32>
    %179 = vector.extract_strided_slice %149 {offsets = [0, 2], sizes = [32, 4], strides = [1, 1]} : vector<48x6xf32> to vector<32x4xf32>
    %180 = vector.extract_strided_slice %161 {offsets = [0, 0], sizes = [32, 4], strides = [1, 1]} : vector<48x6xf32> to vector<32x4xf32>
    %181 = vector.extract_strided_slice %173 {offsets = [0, 0], sizes = [32, 4], strides = [1, 1]} : vector<48x6xf32> to vector<32x4xf32>
    %182 = vector.extract_strided_slice %161 {offsets = [0, 1], sizes = [32, 4], strides = [1, 1]} : vector<48x6xf32> to vector<32x4xf32>
    %183 = vector.extract_strided_slice %173 {offsets = [0, 1], sizes = [32, 4], strides = [1, 1]} : vector<48x6xf32> to vector<32x4xf32>
    %184 = vector.extract_strided_slice %161 {offsets = [0, 2], sizes = [32, 4], strides = [1, 1]} : vector<48x6xf32> to vector<32x4xf32>
    %185 = vector.extract_strided_slice %173 {offsets = [0, 2], sizes = [32, 4], strides = [1, 1]} : vector<48x6xf32> to vector<32x4xf32>
    %186 = vector.extract_strided_slice %137 {offsets = [8, 0], sizes = [32, 4], strides = [1, 1]} : vector<48x6xf32> to vector<32x4xf32>
    %187 = vector.extract_strided_slice %149 {offsets = [8, 0], sizes = [32, 4], strides = [1, 1]} : vector<48x6xf32> to vector<32x4xf32>
    %188 = vector.extract_strided_slice %137 {offsets = [8, 1], sizes = [32, 4], strides = [1, 1]} : vector<48x6xf32> to vector<32x4xf32>
    %189 = vector.extract_strided_slice %149 {offsets = [8, 1], sizes = [32, 4], strides = [1, 1]} : vector<48x6xf32> to vector<32x4xf32>
    %190 = vector.extract_strided_slice %137 {offsets = [8, 2], sizes = [32, 4], strides = [1, 1]} : vector<48x6xf32> to vector<32x4xf32>
    %191 = vector.extract_strided_slice %149 {offsets = [8, 2], sizes = [32, 4], strides = [1, 1]} : vector<48x6xf32> to vector<32x4xf32>
    %192 = vector.extract_strided_slice %161 {offsets = [8, 0], sizes = [32, 4], strides = [1, 1]} : vector<48x6xf32> to vector<32x4xf32>
    %193 = vector.extract_strided_slice %173 {offsets = [8, 0], sizes = [32, 4], strides = [1, 1]} : vector<48x6xf32> to vector<32x4xf32>
    %194 = vector.extract_strided_slice %161 {offsets = [8, 1], sizes = [32, 4], strides = [1, 1]} : vector<48x6xf32> to vector<32x4xf32>
    %195 = vector.extract_strided_slice %173 {offsets = [8, 1], sizes = [32, 4], strides = [1, 1]} : vector<48x6xf32> to vector<32x4xf32>
    %196 = vector.extract_strided_slice %161 {offsets = [8, 2], sizes = [32, 4], strides = [1, 1]} : vector<48x6xf32> to vector<32x4xf32>
    %197 = vector.extract_strided_slice %173 {offsets = [8, 2], sizes = [32, 4], strides = [1, 1]} : vector<48x6xf32> to vector<32x4xf32>
    %198 = vector.extract_strided_slice %137 {offsets = [16, 0], sizes = [32, 4], strides = [1, 1]} : vector<48x6xf32> to vector<32x4xf32>
    %199 = vector.extract_strided_slice %149 {offsets = [16, 0], sizes = [32, 4], strides = [1, 1]} : vector<48x6xf32> to vector<32x4xf32>
    %200 = vector.extract_strided_slice %137 {offsets = [16, 1], sizes = [32, 4], strides = [1, 1]} : vector<48x6xf32> to vector<32x4xf32>
    %201 = vector.extract_strided_slice %149 {offsets = [16, 1], sizes = [32, 4], strides = [1, 1]} : vector<48x6xf32> to vector<32x4xf32>
    %202 = vector.extract_strided_slice %137 {offsets = [16, 2], sizes = [32, 4], strides = [1, 1]} : vector<48x6xf32> to vector<32x4xf32>
    %203 = vector.extract_strided_slice %149 {offsets = [16, 2], sizes = [32, 4], strides = [1, 1]} : vector<48x6xf32> to vector<32x4xf32>
    %204 = vector.extract_strided_slice %161 {offsets = [16, 0], sizes = [32, 4], strides = [1, 1]} : vector<48x6xf32> to vector<32x4xf32>
    %205 = vector.extract_strided_slice %173 {offsets = [16, 0], sizes = [32, 4], strides = [1, 1]} : vector<48x6xf32> to vector<32x4xf32>
    %206 = vector.extract_strided_slice %161 {offsets = [16, 1], sizes = [32, 4], strides = [1, 1]} : vector<48x6xf32> to vector<32x4xf32>
    %207 = vector.extract_strided_slice %173 {offsets = [16, 1], sizes = [32, 4], strides = [1, 1]} : vector<48x6xf32> to vector<32x4xf32>
    %208 = vector.extract_strided_slice %161 {offsets = [16, 2], sizes = [32, 4], strides = [1, 1]} : vector<48x6xf32> to vector<32x4xf32>
    %209 = vector.extract_strided_slice %173 {offsets = [16, 2], sizes = [32, 4], strides = [1, 1]} : vector<48x6xf32> to vector<32x4xf32>
    %210 = tpu.concatenate %174, %175, %180, %181 in 1 : vector<32x4xf32>, vector<32x4xf32>, vector<32x4xf32>, vector<32x4xf32> -> vector<32x16xf32>
    %211 = tpu.concatenate %175, %176, %181, %182 in 1 : vector<32x4xf32>, vector<32x4xf32>, vector<32x4xf32>, vector<32x4xf32> -> vector<32x16xf32>
    %212 = tpu.concatenate %176, %177, %182, %183 in 1 : vector<32x4xf32>, vector<32x4xf32>, vector<32x4xf32>, vector<32x4xf32> -> vector<32x16xf32>
    %213 = tpu.concatenate %177, %178, %183, %184 in 1 : vector<32x4xf32>, vector<32x4xf32>, vector<32x4xf32>, vector<32x4xf32> -> vector<32x16xf32>
    %214 = tpu.concatenate %178, %179, %184, %185 in 1 : vector<32x4xf32>, vector<32x4xf32>, vector<32x4xf32>, vector<32x4xf32> -> vector<32x16xf32>
    %215 = tpu.concatenate %180, %181, %186, %187 in 1 : vector<32x4xf32>, vector<32x4xf32>, vector<32x4xf32>, vector<32x4xf32> -> vector<32x16xf32>
    %216 = tpu.concatenate %181, %182, %187, %188 in 1 : vector<32x4xf32>, vector<32x4xf32>, vector<32x4xf32>, vector<32x4xf32> -> vector<32x16xf32>
    %217 = tpu.concatenate %182, %183, %188, %189 in 1 : vector<32x4xf32>, vector<32x4xf32>, vector<32x4xf32>, vector<32x4xf32> -> vector<32x16xf32>
    %218 = tpu.concatenate %183, %184, %189, %190 in 1 : vector<32x4xf32>, vector<32x4xf32>, vector<32x4xf32>, vector<32x4xf32> -> vector<32x16xf32>
    %219 = tpu.concatenate %184, %185, %190, %191 in 1 : vector<32x4xf32>, vector<32x4xf32>, vector<32x4xf32>, vector<32x4xf32> -> vector<32x16xf32>
    %220 = tpu.concatenate %186, %187, %192, %193 in 1 : vector<32x4xf32>, vector<32x4xf32>, vector<32x4xf32>, vector<32x4xf32> -> vector<32x16xf32>
    %221 = tpu.concatenate %187, %188, %193, %194 in 1 : vector<32x4xf32>, vector<32x4xf32>, vector<32x4xf32>, vector<32x4xf32> -> vector<32x16xf32>
    %222 = tpu.concatenate %188, %189, %194, %195 in 1 : vector<32x4xf32>, vector<32x4xf32>, vector<32x4xf32>, vector<32x4xf32> -> vector<32x16xf32>
    %223 = tpu.concatenate %189, %190, %195, %196 in 1 : vector<32x4xf32>, vector<32x4xf32>, vector<32x4xf32>, vector<32x4xf32> -> vector<32x16xf32>
    %224 = tpu.concatenate %190, %191, %196, %197 in 1 : vector<32x4xf32>, vector<32x4xf32>, vector<32x4xf32>, vector<32x4xf32> -> vector<32x16xf32>
    %225 = tpu.concatenate %192, %193, %198, %199 in 1 : vector<32x4xf32>, vector<32x4xf32>, vector<32x4xf32>, vector<32x4xf32> -> vector<32x16xf32>
    %226 = tpu.concatenate %193, %194, %199, %200 in 1 : vector<32x4xf32>, vector<32x4xf32>, vector<32x4xf32>, vector<32x4xf32> -> vector<32x16xf32>
    %227 = tpu.concatenate %194, %195, %200, %201 in 1 : vector<32x4xf32>, vector<32x4xf32>, vector<32x4xf32>, vector<32x4xf32> -> vector<32x16xf32>
    %228 = tpu.concatenate %195, %196, %201, %202 in 1 : vector<32x4xf32>, vector<32x4xf32>, vector<32x4xf32>, vector<32x4xf32> -> vector<32x16xf32>
    %229 = tpu.concatenate %196, %197, %202, %203 in 1 : vector<32x4xf32>, vector<32x4xf32>, vector<32x4xf32>, vector<32x4xf32> -> vector<32x16xf32>
    %230 = tpu.concatenate %198, %199, %204, %205 in 1 : vector<32x4xf32>, vector<32x4xf32>, vector<32x4xf32>, vector<32x4xf32> -> vector<32x16xf32>
    %231 = tpu.concatenate %199, %200, %205, %206 in 1 : vector<32x4xf32>, vector<32x4xf32>, vector<32x4xf32>, vector<32x4xf32> -> vector<32x16xf32>
    %232 = tpu.concatenate %200, %201, %206, %207 in 1 : vector<32x4xf32>, vector<32x4xf32>, vector<32x4xf32>, vector<32x4xf32> -> vector<32x16xf32>
    %233 = tpu.concatenate %201, %202, %207, %208 in 1 : vector<32x4xf32>, vector<32x4xf32>, vector<32x4xf32>, vector<32x4xf32> -> vector<32x16xf32>
    %234 = tpu.concatenate %202, %203, %208, %209 in 1 : vector<32x4xf32>, vector<32x4xf32>, vector<32x4xf32>, vector<32x4xf32> -> vector<32x16xf32>
    %235 = tpu.concatenate %210, %211, %212, %213, %214, %215, %216, %217, %218, %219, %220, %221, %222, %223, %224, %225 in 0 : vector<32x16xf32>, vector<32x16xf32>, vector<32x16xf32>, vector<32x16xf32>, vector<32x16xf32>, vector<32x16xf32>, vector<32x16xf32>, vector<32x16xf32>, vector<32x16xf32>, vector<32x16xf32>, vector<32x16xf32>, vector<32x16xf32>, vector<32x16xf32>, vector<32x16xf32>, vector<32x16xf32>, vector<32x16xf32> -> vector<512x16xf32>
    %236 = tpu.concatenate %226, %227, %228, %229, %230, %231, %232, %233, %234 in 0 : vector<32x16xf32>, vector<32x16xf32>, vector<32x16xf32>, vector<32x16xf32>, vector<32x16xf32>, vector<32x16xf32>, vector<32x16xf32>, vector<32x16xf32>, vector<32x16xf32> -> vector<288x16xf32>
    %237 = tpu.concatenate %235, %236 in 0 : vector<512x16xf32>, vector<288x16xf32> -> vector<800x16xf32>
    %c0_90 = arith.constant 0 : index
    %c0_91 = arith.constant 0 : index
    %238 = vector.load %arg4[%c0_90, %c0_91] : memref<64x800xf32, #tpu.memory_space<vmem>>, vector<64x800xf32>
    %cst_92 = arith.constant dense<0.000000e+00> : vector<64x16xf32>
    %239 = tpu.matmul %238, %237, %cst_92 {dimension_numbers = #tpu.dot_dimension_numbers<[1], [0], [0], [1], [0, 0, 1, 1], [], []>} : vector<64x800xf32>, vector<800x16xf32>, vector<64x16xf32> -> vector<64x16xf32>
    %240 = vector.extract_strided_slice %239 {offsets = [0, 0], sizes = [64, 4], strides = [1, 1]} : vector<64x16xf32> to vector<64x4xf32>
    %241 = vector.extract_strided_slice %239 {offsets = [0, 4], sizes = [64, 4], strides = [1, 1]} : vector<64x16xf32> to vector<64x4xf32>
    %242 = arith.maximumf %240, %241 : vector<64x4xf32>
    %243 = vector.extract_strided_slice %239 {offsets = [0, 8], sizes = [64, 4], strides = [1, 1]} : vector<64x16xf32> to vector<64x4xf32>
    %244 = arith.maximumf %242, %243 : vector<64x4xf32>
    %245 = vector.extract_strided_slice %239 {offsets = [0, 12], sizes = [64, 4], strides = [1, 1]} : vector<64x16xf32> to vector<64x4xf32>
    %246 = arith.maximumf %244, %245 : vector<64x4xf32>
    %c0_93 = arith.constant 0 : index
    %c0_94 = arith.constant 0 : index
    %247 = vector.load %arg5[%c0_93, %c0_94] : memref<64x1xf32, #tpu.memory_space<vmem>>, vector<64x1xf32>
    %248 = vector.broadcast %247 : vector<64x1xf32> to vector<64x4xf32>
    %249 = arith.addf %246, %248 : vector<64x4xf32>
    %cst_95 = arith.constant 0.000000e+00 : f32
    %250 = vector.broadcast %cst_95 : f32 to vector<64x4xf32>
    %251 = arith.maximumf %249, %250 : vector<64x4xf32>
    %252 = vector.extract_strided_slice %251 {offsets = [0, 0], sizes = [64, 1], strides = [1, 1]} : vector<64x4xf32> to vector<64x1xf32>
    %253 = vector.extract_strided_slice %251 {offsets = [0, 1], sizes = [64, 1], strides = [1, 1]} : vector<64x4xf32> to vector<64x1xf32>
    %254 = vector.extract_strided_slice %251 {offsets = [0, 2], sizes = [64, 1], strides = [1, 1]} : vector<64x4xf32> to vector<64x1xf32>
    %255 = vector.extract_strided_slice %251 {offsets = [0, 3], sizes = [64, 1], strides = [1, 1]} : vector<64x4xf32> to vector<64x1xf32>
    %256 = tpu.concatenate %252, %253, %254, %255 in 0 : vector<64x1xf32>, vector<64x1xf32>, vector<64x1xf32>, vector<64x1xf32> -> vector<256x1xf32>
    %c0_96 = arith.constant 0 : index
    %c0_97 = arith.constant 0 : index
    %257 = vector.load %arg6[%c0_96, %c0_97] : memref<128x256xf32, #tpu.memory_space<vmem>>, vector<128x256xf32>
    %cst_98 = arith.constant dense<0.000000e+00> : vector<128x1xf32>
    %258 = tpu.matmul %257, %256, %cst_98 {dimension_numbers = #tpu.dot_dimension_numbers<[1], [0], [0], [1], [0, 0, 1, 1], [], []>} : vector<128x256xf32>, vector<256x1xf32>, vector<128x1xf32> -> vector<128x1xf32>
    %c0_99 = arith.constant 0 : index
    %c0_100 = arith.constant 0 : index
    %259 = vector.load %arg7[%c0_99, %c0_100] : memref<128x1xf32, #tpu.memory_space<vmem>>, vector<128x1xf32>
    %260 = arith.addf %258, %259 : vector<128x1xf32>
    %cst_101 = arith.constant 0.000000e+00 : f32
    %261 = vector.broadcast %cst_101 : f32 to vector<128x1xf32>
    %262 = arith.maximumf %260, %261 : vector<128x1xf32>
    %c0_102 = arith.constant 0 : index
    %c0_103 = arith.constant 0 : index
    %263 = vector.load %arg8[%c0_102, %c0_103] : memref<128x128xf32, #tpu.memory_space<vmem>>, vector<128x128xf32>
    %cst_104 = arith.constant dense<0.000000e+00> : vector<128x1xf32>
    %264 = tpu.matmul %263, %262, %cst_104 {dimension_numbers = #tpu.dot_dimension_numbers<[1], [0], [0], [1], [0, 0, 1, 1], [], []>} : vector<128x128xf32>, vector<128x1xf32>, vector<128x1xf32> -> vector<128x1xf32>
    %c0_105 = arith.constant 0 : index
    %c0_106 = arith.constant 0 : index
    %265 = vector.load %arg9[%c0_105, %c0_106] : memref<128x1xf32, #tpu.memory_space<vmem>>, vector<128x1xf32>
    %266 = arith.addf %264, %265 : vector<128x1xf32>
    %cst_107 = arith.constant 0.000000e+00 : f32
    %267 = vector.broadcast %cst_107 : f32 to vector<128x1xf32>
    %268 = arith.maximumf %266, %267 : vector<128x1xf32>
    %c0_108 = arith.constant 0 : index
    %c0_109 = arith.constant 0 : index
    %269 = vector.load %arg10[%c0_108, %c0_109] : memref<128x128xf32, #tpu.memory_space<vmem>>, vector<128x128xf32>
    %cst_110 = arith.constant dense<0.000000e+00> : vector<128x1xf32>
    %270 = tpu.matmul %269, %268, %cst_110 {dimension_numbers = #tpu.dot_dimension_numbers<[1], [0], [0], [1], [0, 0, 1, 1], [], []>} : vector<128x128xf32>, vector<128x1xf32>, vector<128x1xf32> -> vector<128x1xf32>
    %c0_111 = arith.constant 0 : index
    %c0_112 = arith.constant 0 : index
    %271 = vector.load %arg11[%c0_111, %c0_112] : memref<128x1xf32, #tpu.memory_space<vmem>>, vector<128x1xf32>
    %272 = arith.addf %270, %271 : vector<128x1xf32>
    %c0_113 = arith.constant 0 : index
    %c0_114 = arith.constant 0 : index
    %c0_115 = arith.constant 0 : index
    %273 = vector.load %arg12[%c0_113, %c0_114, %c0_115] : memref<1x128x1xf32, #tpu.memory_space<vmem>>, vector<1x128x1xf32>
    %274 = vector.shape_cast %273 : vector<1x128x1xf32> to vector<128x1xf32>
    %275 = vector.shape_cast %272 : vector<128x1xf32> to vector<1x128x1xf32>
    tpu.vector_store %arg12[%c0_113, %c0_114, %c0_115], %275 {strides = array<i32>} : memref<1x128x1xf32, #tpu.memory_space<vmem>>, vector<1x128x1xf32>,
    return
  }
  func.func @transform_0(%arg0: i32) -> (i32, i32, i32, i32, i32) {
    %c0_i32 = arith.constant 0 : i32
    %c0_i32_0 = arith.constant 0 : i32
    %c0_i32_1 = arith.constant 0 : i32
    %c0_i32_2 = arith.constant 0 : i32
    %c0_i32_3 = arith.constant 0 : i32
    return %arg0, %c0_i32, %c0_i32_0, %c0_i32_1, %c0_i32_2 : i32, i32, i32, i32, i32
  }
  func.func @transform_1(%arg0: i32) -> (i32, i32) {
    %c0_i32 = arith.constant 0 : i32
    %c0_i32_0 = arith.constant 0 : i32
    %c0_i32_1 = arith.constant 0 : i32
    return %c0_i32, %c0_i32_0 : i32, i32
  }
  func.func @transform_2(%arg0: i32) -> (i32, i32) {
    %c0_i32 = arith.constant 0 : i32
    %c0_i32_0 = arith.constant 0 : i32
    %c0_i32_1 = arith.constant 0 : i32
    return %c0_i32, %c0_i32_0 : i32, i32
  }
  func.func @transform_3(%arg0: i32) -> (i32, i32) {
    %c0_i32 = arith.constant 0 : i32
    %c0_i32_0 = arith.constant 0 : i32
    %c0_i32_1 = arith.constant 0 : i32
    return %c0_i32, %c0_i32_0 : i32, i32
  }
  func.func @transform_4(%arg0: i32) -> (i32, i32) {
    %c0_i32 = arith.constant 0 : i32
    %c0_i32_0 = arith.constant 0 : i32
    %c0_i32_1 = arith.constant 0 : i32
    return %c0_i32, %c0_i32_0 : i32, i32
  }
  func.func @transform_5(%arg0: i32) -> (i32, i32) {
    %c0_i32 = arith.constant 0 : i32
    %c0_i32_0 = arith.constant 0 : i32
    %c0_i32_1 = arith.constant 0 : i32
    return %c0_i32, %c0_i32_0 : i32, i32
  }
  func.func @transform_6(%arg0: i32) -> (i32, i32) {
    %c0_i32 = arith.constant 0 : i32
    %c0_i32_0 = arith.constant 0 : i32
    %c0_i32_1 = arith.constant 0 : i32
    return %c0_i32, %c0_i32_0 : i32, i32
  }
  func.func @transform_7(%arg0: i32) -> (i32, i32) {
    %c0_i32 = arith.constant 0 : i32
    %c0_i32_0 = arith.constant 0 : i32
    %c0_i32_1 = arith.constant 0 : i32
    return %c0_i32, %c0_i32_0 : i32, i32
  }
  func.func @transform_8(%arg0: i32) -> (i32, i32) {
    %c0_i32 = arith.constant 0 : i32
    %c0_i32_0 = arith.constant 0 : i32
    %c0_i32_1 = arith.constant 0 : i32
    return %c0_i32, %c0_i32_0 : i32, i32
  }
  func.func @transform_9(%arg0: i32) -> (i32, i32) {
    %c0_i32 = arith.constant 0 : i32
    %c0_i32_0 = arith.constant 0 : i32
    %c0_i32_1 = arith.constant 0 : i32
    return %c0_i32, %c0_i32_0 : i32, i32
  }
  func.func @transform_10(%arg0: i32) -> (i32, i32) {
    %c0_i32 = arith.constant 0 : i32
    %c0_i32_0 = arith.constant 0 : i32
    %c0_i32_1 = arith.constant 0 : i32
    return %c0_i32, %c0_i32_0 : i32, i32
  }
  func.func @transform_11(%arg0: i32) -> (i32, i32, i32) {
    %c0_i32 = arith.constant 0 : i32
    %c0_i32_0 = arith.constant 0 : i32
    %c0_i32_1 = arith.constant 0 : i32
    return %arg0, %c0_i32, %c0_i32_0 : i32, i32, i32
  }
}

</mosaic_0001>

<bundles_post_ra>
// kernel: lenet_forward.1
= control target key start
LH: loop header
LB: loop body
LE: loop exit
PB: predicated region body
PF: predicated region fallthrough
CT: control target
= control target key end

     0   :  { %s5342_s17 = smov 0   ;;  %s8458_s0 = inlined_call_operand.vmem [shape: f32[2,4,4,7,7], index: 0, kind: input, shape index: {}]   ;;  %s8459_s1 = inlined_call_operand.vmem [shape: f32[48,150], index: 1, kind: input, shape index: {}]   ;;  %s8460_s2 = inlined_call_operand.vmem [shape: f32[48,1], index: 2, kind: input, shape index: {}]   ;;  %s8461_s3 = inlined_call_operand.vmem [shape: f32[64,800], index: 3, kind: input, shape index: {}]   ;;  %s8462_s4 = inlined_call_operand.vmem [shape: f32[64,1], index: 4, kind: input, shape index: {}]   ;;  %s8463_s5 = inlined_call_operand.vmem [shape: f32[128,256], index: 5, kind: input, shape index: {}]   ;;  %s8464_s6 = inlined_call_operand.vmem [shape: f32[128,1], index: 6, kind: input, shape index: {}]   ;;  %s8465_s7 = inlined_call_operand.vmem [shape: f32[128,128], index: 7, kind: input, shape index: {}]   ;;  %s8466_s8 = inlined_call_operand.vmem [shape: f32[128,1], index: 8, kind: input, shape index: {}]   ;;  %s8467_s9 = inlined_call_operand.vmem [shape: f32[128,128], index: 9, kind: input, shape index: {}]   ;;  %s8468_s10 = inlined_call_operand.vmem [shape: f32[128,1], index: 10, kind: input, shape index: {}]   ;;  %s8469_s11 = inlined_call_operand.vmem [shape: f32[2,128,1], index: 11, kind: output, shape index: {}]  }
   0x1   :  { %8598 = sst [smem:[#allocation47_spill]] %s8458_s0 }
   0x2   :  { %8599 = sst [smem:[#allocation48_spill]] %s8466_s8 }
   0x3   :  { %8600 = sst [smem:[#allocation49_spill]] %s8467_s9 }
   0x4   :  { %8601 = sst [smem:[#allocation50_spill]] %s8468_s10 }
   0x5   :  { %8602 = sst [smem:[#allocation51_spill]] %s8469_s11 }
   0x6 LB: > { %8603 = sst [smem:[#allocation2_spill]] %s5213_s17  ;;  %s3886_s18 = sadd.s32 4294967295, %s5213_s17   ;;  %s5213_s17 = sphi %s5342_s17, %s21_s17  }
   0x7   : > { %p3890_p0 = scmp.ge.s32.totalorder %s5213_s17, 1  ;;  %p337_p1 = scmp.lt.s32.totalorder %s5213_s17, 3 }
   0x9   : > { %p338_p2 = pnand %p3890_p0, %p337_p1 }
   0xb   : > { %341 = sbr.rel (%p338_p2) target bundleno = 2707 (0xa93), region = 64 }
  0x10   : > { %p377_p3 = scmp.lt.s32.totalorder %s3886_s18, 1  ;;  %s8605_s0 = sld [smem:[#allocation47_spill]]  ;;  %vm478_vm0 = vcmask 48128   ;;  %vm480_vm1 = vcmask 97280   ;;  %vm482_vm2 = vcmask 146432   ;;  %vm484_vm3 = vcmask 195584  }
  0x11   : > { %s8479_s23 = smov 18   ;;  %s8472_s24 = smov 30   ;;  %vm486_vm4 = vcmask 244736   ;;  %vm488_vm5 = vcmask 293888   ;;  %vm490_vm6 = vcmask 343040   ;;  %vm492_vm7 = vcmask 392192  }
  0x12   : > { %s8820_s18 = smov (!%p377_p3, %s3886_s18), 1  ;;  %s8483_s25 = smov 6   ;;  %vm494_vm8 = vcmask 441344   ;;  %vm496_vm9 = vcmask 490496   ;;  %vm8572_vm10 = vcmask 539648   ;;  %vm8580_vm11 = vcmask 588800  }
  0x13   : > { %8604 = sst [smem:[#allocation3_spill]] %s8820_s18  ;;  %s8470_s19 = sshll.u32 %s8820_s18, 7  ;;  %vm8535_vm12 = vcmask 637952   ;;  %vm504_vm13 = vcmask 687104   ;;  %vm8536_vm14 = vcmask 736256   ;;  %vm8519_vm15 = vcmask 1045504  }
  0x14   : > { %s8526_s26 = smov 24   ;;  %s8507_s27 = smov 36  }
  0x15   : > { %s8493_s28 = smov 12   ;;  %s8487_s29 = smov 48  }
  0x16   : > { %s5358_s22 = scalar_lea.vmem %s8605_s0, %s8470_s19  ;;  %s8481_s30 = smov 54  }
  0x17   : > { %v5361_v0 = vld [vmem:[%s5358_s22 + $0x28] sm:$0x7f]  ;;  %v5364_v1 = vld [vmem:[%s5358_s22 + $0x30] sm:$0x7f]  ;;  %v5367_v2 = vld [vmem:[%s5358_s22 + $0x18] sm:$0x7f] }
  0x18   : > { %v4030_v3 = vpack.i.bf16 %v5364_v1, %v5361_v0  ;;  %v5372_v4 = vld [vmem:[%s5358_s22 + $0x38] sm:$0x7f]  ;;  %v5375_v5 = vld [vmem:[%s5358_s22 + $0x8] sm:$0x7f]  ;;  %v5380_v7 = vld [vmem:[%s5358_s22 + $0x10] sm:$0x7f]  ;;  %v4115_v33 = vpack.i.bf16 %v5361_v0, %v5367_v2 }
  0x19   : > { %v4040_v6 = vpack.i.bf16 %v5372_v4, %v5367_v2  ;;  %v4020_v8 = vpack.i.bf16 %v5380_v7, %v5375_v5  ;;  %v5388_v9 = vld [vmem:[%s5358_s22 + $0x20] sm:$0x7f]  ;;  %v4035_v10 = vpack.i.bf16 %v5367_v2, %v5380_v7  ;;  %v5394_v11 = vpack.i.bf16 %v5372_v4, %v5364_v1  ;;  %v5402_v13 = vld [vmem:[%s5358_s22 + $0x48] sm:$0x7f]  ;;  %v5409_v15 = vld [vmem:[%s5358_s22 + $0x50] sm:$0x7f] }
  0x1a   : > { %4031 = vrot.lane.b32.xlu1 %v4030_v3, %s8479_s23  ;;  %v4025_v12 = vpack.i.bf16 %v5361_v0, %v5388_v9  ;;  %v5405_v14 = vld [vmem:[%s5358_s22 + $0x40] sm:$0x7f]  ;;  %v5412_v16 = vld [vmem:[%s5358_s22 + $0x58] sm:$0x7f]  ;;  %v5420_v18 = vpack.i.bf16 %v5409_v15, %v5402_v13  ;;  %v5429_v20 = vld [vmem:[%s5358_s22 + $0x68] sm:$0x7f]  ;;  %v4125_v34 = vpack.i.bf16 %v5402_v13, %v5372_v4  ;;  %v4180_v40 = vpack.i.bf16 %v5388_v9, %v5380_v7 }
  0x1b   : > { %4041 = vrot.lane.b32.xlu2 %v4040_v6, %s8472_s24  ;;  %4021 = vrot.lane.b32.xlu0 %v4020_v8, %s8483_s25  ;;  %v5416_v17 = vpack.i.bf16 %v5402_v13, %v5405_v14  ;;  %v4050_v19 = vpack.i.bf16 %v5412_v16, %v5372_v4  ;;  %v5432_v21 = vld [vmem:[%s5358_s22 + $0x70] sm:$0x7f]  ;;  %s8471_s12 = smov 42   ;;  %v5436_v22 = vld [vmem:[%s5358_s22 + $0x60] sm:$0x7f]  ;;  %v5444_v24 = vpack.i.bf16 %v5412_v16, %v5409_v15  ;;  %s8485_s13 = smov 66  }
  0x1c   : > { %v5440_v23 = vpack.i.bf16 %v5432_v21, %v5429_v20  ;;  %v4065_v25 = vpack.i.bf16 %v5429_v20, %v5436_v22  ;;  %v5451_v26 = vrot.slane %v5367_v2, 1  ;;  %s8489_s14 = smov 72   ;;  %v5456_v27 = vld [vmem:[%s5358_s22 + $0x78] sm:$0x7f]  ;;  %s8491_s15 = smov 60   ;;  %v4145_v35 = vpack.i.bf16 %v5429_v20, %v5412_v16 }
  0x1d   : > { %v5461_v28 = vpack.i.bf16 %v5456_v27, %v5432_v21  ;;  %v4080_v30 = vpack.i.bf16 %v5456_v27, %v5412_v16  ;;  %s8477_s16 = smov 84   ;;  %s8473_s20 = smov 90   ;;  %v5472_v31 = vld [vmem:[%s5358_s22] sm:$0x7f]  ;;  %v5497_v36 = vrot.slane %v5375_v5, 1  ;;  %v5518_v42 = vrot.slane %v5388_v9, 1 }
  0x1e   : > { %v4090_v29 = vpack.i.bf16 %v5451_v26, %v5456_v27  ;;  %s8475_s21 = smov 78   ;;  %v4095_v32 = vpack.i.bf16 %v5375_v5, %v5472_v31  ;;  %s8532_s19 = smov 41   ;;  %v5504_v38 = vrot.slane %v5472_v31, 1  ;;  %v4170_v41 = vpack.i.bf16 %v5436_v22, %v5472_v31 }
  0x1f   : > { %s8497_s24 = smov 29   ;;  %v4155_v37 = vpack.i.bf16 %v5497_v36, %v5456_v27  ;;  %v5522_v43 = vrot.slane %v5405_v14, 1  ;;  %v5525_v44 = vrot.slane %v5380_v7, 1  ;;  %v4190_v45 = vpack.i.bf16 %v5518_v42, %v5405_v14  ;;  %s8640_s0 = smov 66  }
  0x20   : > { %v4175_v39 = vpack.i.bf16 %v5504_v38, %v5388_v9  ;;  %v5536_v48 = vrot.slane %v5409_v15, 1  ;;  %v5541_v49 = vrot.slane %v5364_v1, 1  ;;  %s8641_s17 = smov 41   ;;  %s8648_s11 = smov 77  }
  0x21   : > { %v4195_v46 = vpack.i.bf16 %v5522_v43, %v5436_v22  ;;  %v4185_v47 = vpack.i.bf16 %v5525_v44, %v5364_v1  ;;  %s8651_s10 = smov 83   ;;  %s8653_s18 = smov 127  }
  0x22   : > { %4036 = vrot.lane.b32.xlu1 %v4035_v10, %s8526_s26  ;;  %v4205_v51 = vpack.i.bf16 %v5536_v48, %v5432_v21  ;;  %v4200_v52 = vpack.i.bf16 %v5541_v49, %v5409_v15  ;;  %s8657_s9 = smov 24   ;;  %s8659_s8 = smov 23  }
  0x23   : > { %4046 = vrot.lane.b32.xlu2 %v5394_v11, %s8507_s27  ;;  %4026 = vrot.lane.b32.xlu0 %v4025_v12, %s8493_s28 }
  0x2a   : > { %4056 = vrot.lane.b32.xlu1 %v5416_v17, %s8487_s29 }
  0x2b   : > { %4061 = vrot.lane.b32.xlu2 %v5420_v18, %s8481_s30  ;;  %4051 = vrot.lane.b32.xlu0 %v4050_v19, %s8471_s12  ;;  %s8503_s12 = smov 77  }
  0x32   : > { %4071 = vrot.lane.b32.xlu1 %v5440_v23, %s8485_s13 }
  0x33   : > { %4076 = vrot.lane.b32.xlu2 %v5444_v24, %s8489_s14  ;;  %4066 = vrot.lane.b32.xlu0 %v4065_v25, %s8491_s15  ;;  %s8509_s14 = smov 65  }
  0x3a   : > { %4086 = vrot.lane.b32.xlu1 %v5461_v28, %s8477_s16  ;;  %s8527_s16 = smov 35  }
  0x3b   : > { %4091 = vrot.lane.b32.xlu2 %v4090_v29, %s8473_s20  ;;  %4081 = vrot.lane.b32.xlu0 %v4080_v30, %s8475_s21  ;;  %s8499_s20 = smov 89   ;;  %s8530_s21 = smov 23  }
  0x42   : > { %4101 = vrot.lane.b32.xlu1 %v4025_v12, %s8532_s19 }
  0x43   : > { %4106 = vrot.lane.b32.xlu2 %v5416_v17, %s8503_s12  ;;  %4096 = vrot.lane.b32.xlu0 %v4095_v32, %s8497_s24 }
  0x4a   : > { %4116 = vrot.lane.b32.xlu1 %v4115_v33, %s8483_s25  ;;  %s8515_s25 = smov 17   ;;  %v4220_v33 = vpack.i.bf16 %v5525_v44, %v5409_v15 }
  0x4b   : > { %4121 = vrot.lane.b32.xlu2 %v5394_v11, %s8493_s28  ;;  %4111 = vrot.lane.b32.xlu0 %v4065_v25, %s8499_s20  ;;  %s8495_s28 = smov 11  }
  0x52   : > { %4131 = vrot.lane.b32.xlu1 %v4095_v32, %s8530_s21 }
  0x53   : > { %4136 = vrot.lane.b32.xlu2 %v4025_v12, %s8527_s16  ;;  %4126 = vrot.lane.b32.xlu0 %v4125_v34, %s8479_s23  ;;  %s8505_s23 = smov 71  }
  0x5a   : > { %4146 = vrot.lane.b32.xlu1 %v4145_v35, %s8481_s30  ;;  %s8501_s30 = smov 83  }
  0x5b   : > { %4151 = vrot.lane.b32.xlu2 %v5461_v28, %s8491_s15  ;;  %4141 = vrot.lane.b32.xlu0 %v5444_v24, %s8487_s29  ;;  %s8524_s29 = smov 53   ;;  %s8513_s15 = smov 127  }
  0x62   : > { %4161 = vrot.lane.b32.xlu1 %v5416_v17, %s8505_s23 }
  0x63   : > { %4166 = vrot.lane.b32.xlu2 %v4065_v25, %s8501_s30  ;;  %4156 = vrot.lane.b32.xlu0 %v4155_v37, %s8485_s13  ;;  %s8523_s13 = smov 5  }
  0x6a   : > { %4176 = vrot.lane.b32.xlu1 %v4175_v39, %s8515_s25  ;;  %v5622_v39 = vrot.slane %v5412_v16, 1 }
  0x6b   : > { %4181 = vrot.lane.b32.xlu2 %v4180_v40, %s8497_s24  ;;  %4171 = vrot.lane.b32.xlu0 %v4170_v41, %s8523_s13 }
  0x72   : > { %4191 = vrot.lane.b32.xlu1 %v4190_v45, %s8524_s29  ;;  %v5631_v45 = vrot.slane %v5372_v4, 1 }
  0x73   : > { %4196 = vrot.lane.b32.xlu2 %v4195_v46, %s8509_s14  ;;  %4186 = vrot.lane.b32.xlu0 %v4185_v47, %s8532_s19 }
  0x75   : > { %v5543_v50 = vpop.permute.xlu2 %4041 }
  0x76   : > { %8606 = vst [vmem:[#allocation4_spill] sm:$0xff] %v5543_v50  ;;  %v4043_v34 = vunpack.i.l.bf16 %v5543_v50 }
  0x7a   : > { %4206 = vrot.lane.b32.xlu1 %v4205_v51, %s8499_s20 }
  0x7b   : > { %689 = vrot.lane.b32.xlu2 %v5472_v31, %s8513_s15  ;;  %4201 = vrot.lane.b32.xlu0 %v4200_v52, %s8503_s12 }
  0x7d   : > { %v5553_v53 = vpop.permute.xlu2 %4046 }
  0x7e   : > { %v4048_v40 = vunpack.i.l.bf16 %v5553_v53 }
  0x82   : > { %695 = vrot.lane.b32.xlu1 %v5388_v9, %s8495_s28  ;;  %s8522_s28 = smov 47  }
  0x83   : > { %698 = vrot.lane.b32.xlu2 %v5361_v0, %s8515_s25  ;;  %692 = vrot.lane.b32.xlu0 %v5375_v5, %s8523_s13 }
  0x85   : > { %v5561_v54 = vpop.permute.xlu2 %4061 }
  0x8a   : > { %704 = vrot.lane.b32.xlu1 %v5367_v2, %s8497_s24  ;;  %s8511_s24 = smov 59  }
  0x8b   : > { %707 = vrot.lane.b32.xlu2 %v5364_v1, %s8527_s16  ;;  %701 = vrot.lane.b32.xlu0 %v5380_v7, %s8530_s21 }
  0x8c   : > { %v5569_v55 = vpop.permute.xlu1 %4031 }
  0x8d   : > { %v5571_v56 = vpop.permute.xlu2 %4076  ;;  %v4022_v57 = vpop.permute.xlu0 %4021  ;;  %v4033_v12 = vunpack.i.l.bf16 %v5569_v55 }
  0x8e   : > { %v4023_v61 = vunpack.i.l.bf16 %v4022_v57  ;;  %v4024_v46 = vunpack.i.h.bf16 %v4022_v57  ;;  %v4063_v57 = vunpack.i.l.bf16 %v5561_v54 }
  0x90   : > { %v479_v8 = vsel %vm478_vm0, %v5472_v31, %v4023_v61 }
  0x92   : > { %713 = vrot.lane.b32.xlu1 %v5405_v14, %s8522_s28 }
  0x93   : > { %716 = vrot.lane.b32.xlu2 %v5402_v13, %s8524_s29  ;;  %710 = vrot.lane.b32.xlu0 %v5372_v4, %s8532_s19 }
  0x94   : > { %v5579_v58 = vpop.permute.xlu1 %4036 }
  0x95   : > { %v5581_v59 = vpop.permute.xlu2 %4091  ;;  %v4027_v60 = vpop.permute.xlu0 %4026  ;;  %v4038_v29 = vunpack.i.l.bf16 %v5579_v58 }
  0x96   : > { %8607 = vst [vmem:[#allocation5_spill] sm:$0xff] %v5581_v59  ;;  %v4028_v63 = vunpack.i.l.bf16 %v4027_v60  ;;  %v4029_v52 = vunpack.i.h.bf16 %v4027_v60 }
  0x98   : > { %v481_v10 = vsel %vm480_vm1, %v479_v8, %v4028_v63  ;;  %v4230_v8 = vpack.i.bf16 %v5622_v39, %v5504_v38 }
  0x99   : > { %v483_v19 = vsel %vm482_vm2, %v481_v10, %v4033_v12  ;;  %v4235_v10 = vpack.i.bf16 %v5541_v49, %v5432_v21  ;;  %v4225_v12 = vpack.i.bf16 %v5631_v45, %v5436_v22 }
  0x9a   : > { %722 = vrot.lane.b32.xlu1 %v5429_v20, %s8509_s14  ;;  %v485_v32 = vsel %vm484_vm3, %v483_v19, %v4038_v29  ;;  %v554_v19 = vsel %vm478_vm0, %v5375_v5, %v4024_v46  ;;  %s8615_s14 = smov 18  }
  0x9b   : > { %725 = vrot.lane.b32.xlu2 %v5409_v15, %s8505_s23  ;;  %719 = vrot.lane.b32.xlu0 %v5436_v22, %s8511_s24  ;;  %v487_v37 = vsel %vm486_vm4, %v485_v32, %v4043_v34  ;;  %v555_v32 = vsel %vm480_vm1, %v554_v19, %v4029_v52  ;;  %s8613_s23 = smov 48   ;;  %v4245_v52 = vpack.i.bf16 %v5456_v27, %v5364_v1  ;;  %s8616_s24 = smov 84  }
  0x9c   : > { %v5589_v62 = vpop.permute.xlu1 %4056 }
  0x9d   : > { %v5591_v3 = vpop.permute.xlu2 %4106  ;;  %v5593_v6 = vpop.permute.xlu0 %4051  ;;  %v4058_v47 = vunpack.i.l.bf16 %v5589_v62 }
  0x9e   : > { %8608 = vst [vmem:[#allocation6_spill] sm:$0xff] %v5593_v6  ;;  %v4053_v35 = vunpack.i.l.bf16 %v5593_v6 }
  0xa2   : > { %731 = vrot.lane.b32.xlu1 %v5432_v21, %s8501_s30  ;;  %s8611_s30 = smov 60  }
  0xa3   : > { %734 = vrot.lane.b32.xlu2 %v5456_v27, %s8499_s20  ;;  %728 = vrot.lane.b32.xlu0 %v5412_v16, %s8503_s12  ;;  %s8609_s20 = smov 12   ;;  %s8612_s12 = smov 72  }
  0xa4   : > { %v5606_v25 = vpop.permute.xlu1 %4071 }
  0xa5   : > { %v5609_v30 = vpop.permute.xlu2 %4121  ;;  %v5611_v31 = vpop.permute.xlu0 %4066  ;;  %v4073_v34 = vunpack.i.l.bf16 %v5606_v25 }
  0xa6   : > { %v4068_v29 = vunpack.i.l.bf16 %v5611_v31 }
  0xaa   : > { %4216 = vrot.lane.b32.xlu1 %v5394_v11, %s8526_s26  ;;  %v489_v11 = vsel %vm488_vm5, %v487_v37, %v4048_v40 }
  0xab   : > { %4221 = vrot.lane.b32.xlu2 %v4220_v33, %s8507_s27  ;;  %4211 = vrot.lane.b32.xlu0 %v5416_v17, %s8609_s20  ;;  %v491_v61 = vsel %vm490_vm6, %v489_v11, %v4053_v35  ;;  %v4034_v33 = vunpack.i.h.bf16 %v5569_v55  ;;  %v4039_v55 = vunpack.i.h.bf16 %v5579_v58  ;;  %v4240_v58 = vpack.i.bf16 %v5536_v48, %v5525_v44  ;;  %s8614_s27 = smov 6  }
  0xac   : > { %v5628_v41 = vpop.permute.xlu1 %4086  ;;  %v493_v60 = vsel %vm492_vm7, %v491_v61, %v4058_v47  ;;  %v4049_v47 = vunpack.i.h.bf16 %v5553_v53  ;;  %v4078_v61 = vunpack.i.l.bf16 %v5571_v56 }
  0xad   : > { %v5635_v51 = vpop.permute.xlu2 %4136  ;;  %v5638_v63 = vpop.permute.xlu0 %4081  ;;  %v495_v35 = vsel %vm494_vm8, %v493_v60, %v4063_v57  ;;  %v556_v37 = vsel %vm482_vm2, %v555_v32, %v4034_v33  ;;  %v4059_v60 = vunpack.i.h.bf16 %v5589_v62  ;;  %v4064_v32 = vunpack.i.h.bf16 %v5561_v54 }
  0xae   : > { %8610 = vst [vmem:[#allocation7_spill] sm:$0xff] %v5638_v63  ;;  %v497_v40 = vsel %vm496_vm9, %v495_v35, %v4068_v29  ;;  %v557_v53 = vsel %vm484_vm3, %v556_v37, %v4039_v55  ;;  %v4088_v33 = vunpack.i.l.bf16 %v5628_v41  ;;  %v4069_v37 = vunpack.i.h.bf16 %v5611_v31 }
  0xaf   : > { %v499_v57 = vsel %vm8572_vm10, %v497_v40, %v4073_v34  ;;  %v4260_v31 = vpack.i.bf16 %v5402_v13, %v5429_v20 }
  0xb0   : > { %v501_v34 = vsel %vm8580_vm11, %v499_v57, %v4078_v61  ;;  %v4074_v61 = vunpack.i.h.bf16 %v5606_v25  ;;  %v4079_v57 = vunpack.i.h.bf16 %v5571_v56  ;;  %v4255_v25 = vpack.i.bf16 %v5405_v14, %v5436_v22 }
  0xb2   : > { %4231 = vrot.lane.b32.xlu1 %v4230_v8, %s8611_s30 }
  0xb3   : > { %4236 = vrot.lane.b32.xlu2 %v4235_v10, %s8612_s12  ;;  %4226 = vrot.lane.b32.xlu0 %v4225_v12, %s8613_s23  ;;  %v4250_v10 = vpack.i.bf16 %v5451_v26, %v5409_v15  ;;  %v4083_v12 = vunpack.i.l.bf16 %v5638_v63 }
  0xb4   : > { %v5658_v5 = vpop.permute.xlu1 %4101 }
  0xb5   : > { %v5662_v46 = vpop.permute.xlu2 %4151  ;;  %v5666_v11 = vpop.permute.xlu0 %4096  ;;  %v4103_v1 = vunpack.i.l.bf16 %v5658_v5  ;;  %v503_v40 = vsel %vm8535_vm12, %v501_v34, %v4083_v12  ;;  %v4265_v12 = vpack.i.bf16 %v5525_v44, %v5451_v26 }
  0xb6   : > { %v4098_v8 = vunpack.i.l.bf16 %v5666_v11 }
  0xb8   : > { %v558_v19 = vsel %vm486_vm4, %v557_v53, %v4098_v8  ;;  %v505_v53 = vsel %vm504_vm13, %v503_v40, %v4088_v33 }
  0xb9   : > { %v559_v29 = vsel %vm488_vm5, %v558_v19, %v4049_v47 }
  0xba   : > { %4246 = vrot.lane.b32.xlu1 %v4245_v52, %s8614_s27  ;;  %v560_v35 = vsel %vm490_vm6, %v559_v29, %v4103_v1  ;;  %v4093_v52 = vunpack.i.l.bf16 %v5581_v59 }
  0xbb   : > { %4251 = vrot.lane.b32.xlu2 %v4250_v10, %s8615_s14  ;;  %v561_v62 = vsel %vm492_vm7, %v560_v35, %v4059_v60  ;;  %4241 = vrot.lane.b32.xlu0 %v4240_v58, %s8616_s24  ;;  %v4108_v58 = vunpack.i.l.bf16 %v5591_v3  ;;  %v4089_v60 = vunpack.i.h.bf16 %v5628_v41  ;;  %v4123_v35 = vunpack.i.l.bf16 %v5609_v30 }
  0xbc   : > { %v5693_v47 = vpop.permute.xlu1 %4116  ;;  %v562_v54 = vsel %vm494_vm8, %v561_v62, %v4064_v32  ;;  %v507_v32 = vsel %vm8536_vm14, %v505_v53, %v4093_v52 }
  0xbd   : > { %8617 = vst [vmem:[#allocation8_spill] sm:$0xff] %v5693_v47  ;;  %v5696_v55 = vpop.permute.xlu2 %4166  ;;  %v5700_v8 = vpop.permute.xlu0 %4111  ;;  %v563_v10 = vsel %vm496_vm9, %v562_v54, %v4069_v37  ;;  %v4118_v29 = vunpack.i.l.bf16 %v5693_v47  ;;  %v1734_v54 = vrot.slane %v507_v32, 1  ;;  %v6163_v47 = vld [vmem:[%s5358_s22 + $0x68] sm:$0x7f] }
  0xbe   : > { %v4113_v1 = vunpack.i.l.bf16 %v5700_v8  ;;  %v564_v19 = vsel %vm8572_vm10, %v563_v10, %v4074_v61 }
  0xbf   : > { %v565_v56 = vsel %vm8580_vm11, %v564_v19, %v4079_v57  ;;  %v614_v40 = vsel %vm478_vm0, %v5380_v7, %v4118_v29  ;;  %v4275_v57 = vpack.i.bf16 %v5429_v20, %v5497_v36 }
  0xc0   : > { %v566_v33 = vsel %vm8535_vm12, %v565_v56, %v4108_v58  ;;  %v615_v58 = vsel %vm480_vm1, %v614_v40, %v4123_v35  ;;  %v5770_v35 = vpack.i.bf16 %v5409_v15, %v5436_v22  ;;  %v4104_v40 = vunpack.i.h.bf16 %v5658_v5 }
  0xc1   : > { %v567_v34 = vsel %vm504_vm13, %v566_v33, %v4089_v60  ;;  %v4138_v60 = vunpack.i.l.bf16 %v5635_v51  ;;  %v4153_v15 = vunpack.i.l.bf16 %v5662_v46 }
  0xc2   : > { %4261 = vrot.lane.b32.xlu1 %v4260_v31, %s8523_s13  ;;  %v5727_v41 = vsel %vm8536_vm14, %v567_v34, %v4113_v1  ;;  %v4270_v1 = vpack.i.bf16 %v5436_v22, %v5504_v38 }
  0xc3   : > { %4266 = vrot.lane.b32.xlu2 %v4265_v12, %s8609_s20  ;;  %4256 = vrot.lane.b32.xlu0 %v4255_v25, %s8513_s15  ;;  %v8517_v52 = vrot.slane %v5727_v41, 3  ;;  %v8518_v61 = vrot.slane %v5727_v41, 2  ;;  %v4099_v25 = vunpack.i.h.bf16 %v5666_v11  ;;  %s8621_s15 = smov 11  }
  0xc4   : > { %v5724_v37 = vpop.permute.xlu1 %4131 }
  0xc5   : > { %v5731_v62 = vpop.permute.xlu2 %4181  ;;  %v4133_v31 = vunpack.i.l.bf16 %v5724_v37  ;;  %v5736_v10 = vpop.permute.xlu0 %4126  ;;  %v1747_v7 = vsel %vm8519_vm15, %v1734_v54, %v8517_v52  ;;  %v5747_v53 = vsel %vm8519_vm15, %v507_v32, %v8518_v61  ;;  %vm8521_vm15 = vcmask 1043456  }
  0xc6   : > { %8618 = vst [vmem:[#allocation9_spill] sm:$0xff] %v5731_v62  ;;  %v4128_v12 = vunpack.i.l.bf16 %v5736_v10  ;;  %1783 = vmatpush.msra.mxu0 %v1747_v7 }
  0xc7   : > { %8619 = vst [vmem:[#allocation10_spill] sm:$0xff] %v5736_v10 }
  0xc8   : > { %8620 = vst [vmem:[#allocation11_spill] sm:$0xff] %v5747_v53  ;;  %v616_v19 = vsel %vm482_vm2, %v615_v58, %v4128_v12 }
  0xc9   : > { %v617_v29 = vsel %vm484_vm3, %v616_v19, %v4133_v31  ;;  %v5776_v31 = vpack.i.bf16 %v5525_v44, %v5497_v36 }
  0xca   : > { %4276 = vrot.lane.b32.xlu1 %v4275_v57, %s8515_s25  ;;  %v618_v56 = vsel %vm486_vm4, %v617_v29, %v4099_v25  ;;  %s8623_s25 = smov 29  }
  0xcb   : > { %4281 = vrot.lane.b32.xlu2 %v5440_v23, %s8530_s21  ;;  %4271 = vrot.lane.b32.xlu0 %v4270_v1, %s8621_s15  ;;  %v619_v34 = vsel %vm488_vm5, %v618_v56, %v4138_v60  ;;  %v4305_v60 = vpack.i.bf16 %v5412_v16, %v5429_v20  ;;  %v4310_v56 = vpack.i.bf16 %v5497_v36, %v5451_v26 }
  0xcc   : > { %v5761_v32 = vpop.permute.xlu1 %4146  ;;  %v620_v12 = vsel %vm490_vm6, %v619_v34, %v4104_v40  ;;  %v4168_v34 = vunpack.i.l.bf16 %v5696_v55 }
  0xcd   : > { %8622 = vst [vmem:[#allocation12_spill] sm:$0xff] %v5761_v32  ;;  %v5763_v33 = vpop.permute.xlu2 %4196  ;;  %v5765_v11 = vpop.permute.xlu0 %4141  ;;  %v4148_v57 = vunpack.i.l.bf16 %v5761_v32  ;;  %v4550_v32 = vpack.i.bf16 %v5518_v42, %v5451_v26 }
  0xce   : > { %v4143_v54 = vunpack.i.l.bf16 %v5765_v11  ;;  %v4198_v59 = vunpack.i.l.bf16 %v5763_v33 }
  0xd0   : > { %v621_v7 = vsel %vm492_vm7, %v620_v12, %v4143_v54  ;;  %v4109_v54 = vunpack.i.h.bf16 %v5591_v3 }
  0xd1   : > { %v622_v58 = vsel %vm494_vm8, %v621_v7, %v4148_v57  ;;  %v4114_v7 = vunpack.i.h.bf16 %v5700_v8  ;;  %v4320_v8 = vpack.i.bf16 %v5432_v21, %v5504_v38 }
  0xd2   : > { %4291 = vrot.lane.b32.xlu1 %v5770_v35, %s8530_s21  ;;  %v623_v40 = vsel %vm496_vm9, %v622_v58, %v4153_v15 }
  0xd3   : > { %4296 = vrot.lane.b32.xlu2 %v5776_v31, %s8527_s16  ;;  %4286 = vrot.lane.b32.xlu0 %v5461_v28, %s8623_s25 }
  0xd4   : > { %v5788_v5 = vpop.permute.xlu1 %4161 }
  0xd5   : > { %v5791_v1 = vpop.permute.xlu2 %689  ;;  %v4163_v25 = vunpack.i.l.bf16 %v5788_v5  ;;  %v5794_v19 = vpop.permute.xlu0 %4156 }
  0xd6   : > { %8624 = vst [vmem:[#allocation13_spill] sm:$0xff] %v5794_v19  ;;  %v4158_v29 = vunpack.i.l.bf16 %v5794_v19 }
  0xd8   : > { %v624_v57 = vsel %vm8572_vm10, %v623_v40, %v4158_v29  ;;  %v8626_v40 = vrot.slane %v5727_v41, 2 }
  0xd9   : > { %v625_v12 = vsel %vm8580_vm11, %v624_v57, %v4163_v25 }
  0xda   : > { %4306 = vrot.lane.b32.xlu1 %v4305_v60, %s8623_s25  ;;  %v626_v52 = vsel %vm8535_vm12, %v625_v12, %v4109_v54 }
  0xdb   : > { %4311 = vrot.lane.b32.xlu2 %v4310_v56, %s8532_s19  ;;  %4301 = vrot.lane.b32.xlu0 %v5440_v23, %s8614_s27  ;;  %v627_v15 = vsel %vm504_vm13, %v626_v52, %v4168_v34  ;;  %v4325_v56 = vpack.i.bf16 %v5504_v38, %v5518_v42  ;;  %v4124_v52 = vunpack.i.h.bf16 %v5609_v30  ;;  %v5831_v34 = vpack.i.bf16 %v5497_v36, %v5504_v38  ;;  %s8639_s19 = smov 42  }
  0xdc   : > { %v5812_v61 = vpop.permute.xlu1 %4176  ;;  %v5818_v58 = vsel %vm8536_vm14, %v627_v15, %v4114_v7  ;;  %v4134_v7 = vunpack.i.h.bf16 %v5724_v37  ;;  %v4183_v30 = vunpack.i.l.bf16 %v5731_v62  ;;  %v6125_v62 = vld [vmem:[%s5358_s22 + $0x58] sm:$0x7f] }
  0xdd   : > { %v5815_v3 = vpop.permute.xlu2 %698  ;;  %v5820_v25 = vpop.permute.xlu0 %4171  ;;  %v1677_v60 = vrot.slane %v5818_v58, 4  ;;  %8625 = vst [vmem:[#allocation14_spill] sm:$0xff] %v5831_v34  ;;  %v4178_v12 = vunpack.i.l.bf16 %v5812_v61 }
  0xde   : > { %v4173_v29 = vunpack.i.l.bf16 %v5820_v25  ;;  %8667 = vst [vmem:[#allocation33_spill] sm:$0xff] %v6125_v62 }
  0xdf   : > { %v5836_v54 = vsel %vm8521_vm15, %v8626_v40, %v1677_v60  ;;  %v5848_v40 = vrot.slane %v5361_v0, 1  ;;  %vm1713_vm15 = vcmask 1041408  }
  0xe0   : > { %8627 = vst [vmem:[#allocation15_spill] sm:$0xff] %v5836_v54  ;;  %v674_v57 = vsel %vm478_vm0, %v5367_v2, %v4173_v29  ;;  %v4139_v29 = vunpack.i.h.bf16 %v5635_v51  ;;  %v4154_v51 = vunpack.i.h.bf16 %v5662_v46 }
  0xe1   : > { %v675_v15 = vsel %vm480_vm1, %v674_v57, %v4124_v52  ;;  %v4340_v57 = vpack.i.bf16 %v5497_v36, %v5848_v40 }
  0xe2   : > { %4321 = vrot.lane.b32.xlu1 %v4320_v8, %s8527_s16  ;;  %v676_v53 = vsel %vm482_vm2, %v675_v15, %v4178_v12  ;;  %s8635_s16 = smov 36  }
  0xe3   : > { %4326 = vrot.lane.b32.xlu2 %v4325_v56, %s8522_s28  ;;  %v677_v54 = vsel %vm484_vm3, %v676_v53, %v4134_v7  ;;  %4316 = vrot.lane.b32.xlu0 %v5831_v34, %s8609_s20  ;;  %v4144_v53 = vunpack.i.h.bf16 %v5765_v11  ;;  %v4330_v7 = vpack.i.bf16 %v5361_v0, %v5405_v14  ;;  %s8629_s28 = smov 17  }
  0xe4   : > { %v5853_v2 = vpop.permute.xlu1 %4191  ;;  %v678_v8 = vsel %vm486_vm4, %v677_v54, %v4183_v30 }
  0xe5   : > { %v5855_v37 = vpop.permute.xlu2 %707  ;;  %v5859_v52 = vpop.permute.xlu0 %4186  ;;  %v679_v12 = vsel %vm488_vm5, %v678_v8, %v4139_v29  ;;  %v4193_v54 = vunpack.i.l.bf16 %v5853_v2 }
  0xe6   : > { %v4188_v56 = vunpack.i.l.bf16 %v5859_v52 }
  0xe8   : > { %v680_v15 = vsel %vm490_vm6, %v679_v12, %v4188_v56  ;;  %v4164_v56 = vunpack.i.h.bf16 %v5788_v5  ;;  %v5888_v12 = vpack.i.bf16 %v5518_v42, %v5541_v49 }
  0xe9   : > { %v681_v30 = vsel %vm492_vm7, %v680_v15, %v4144_v53 }
  0xea   : > { %4336 = vrot.lane.b32.xlu1 %v5776_v31, %s8615_s14  ;;  %v682_v11 = vsel %vm494_vm8, %v681_v30, %v4193_v54 }
  0xeb   : > { %4341 = vrot.lane.b32.xlu2 %v4340_v57, %s8524_s29  ;;  %v683_v8 = vsel %vm496_vm9, %v682_v11, %v4154_v51  ;;  %4331 = vrot.lane.b32.xlu0 %v4330_v7, %s8523_s13  ;;  %v4169_v57 = vunpack.i.h.bf16 %v5696_v55  ;;  %v4345_v7 = vpack.i.bf16 %v5436_v22, %v5456_v27  ;;  %s8630_s13 = smov 30   ;;  %s8631_s29 = smov 59  }
  0xec   : > { %v5879_v0 = vpop.permute.xlu1 %4206  ;;  %v684_v46 = vsel %vm8572_vm10, %v683_v8, %v4198_v59 }
  0xed   : > { %v717_v29 = vpop.permute.xlu2 %716  ;;  %v5883_v53 = vpop.permute.xlu0 %4201  ;;  %v685_v15 = vsel %vm8580_vm11, %v684_v46, %v4164_v56  ;;  %v4208_v59 = vunpack.i.l.bf16 %v5879_v0  ;;  %v4365_v46 = vpack.i.bf16 %v5402_v13, %v5436_v22  ;;  %v5913_v56 = vpack.i.bf16 %v5412_v16, %v5456_v27 }
  0xee   : > { %v4203_v31 = vunpack.i.l.bf16 %v5883_v53 }
  0xf0   : > { %v686_v54 = vsel %vm8535_vm12, %v685_v15, %v4203_v31  ;;  %v4360_v31 = vpack.i.bf16 %v5518_v42, %v5522_v43  ;;  %v5923_v15 = vrot.slane %v5402_v13, 1 }
  0xf1   : > { %v687_v5 = vsel %vm504_vm13, %v686_v54, %v4169_v57 }
  0xf2   : > { %4351 = vrot.lane.b32.xlu1 %v5461_v28, %s8526_s26  ;;  %v5902_v51 = vsel %vm8536_vm14, %v687_v5, %v4208_v59  ;;  %v4380_v5 = vpack.i.bf16 %v5848_v40, %v5631_v45  ;;  %s8633_s26 = smov 65  }
  0xf3   : > { %4356 = vrot.lane.b32.xlu2 %v5888_v12, %s8613_s23  ;;  %4346 = vrot.lane.b32.xlu0 %v4345_v7, %s8609_s20  ;;  %v1680_v30 = vrot.slane %v5902_v51, 6 }
  0xf4   : > { %v696_v55 = vpop.permute.xlu1 %695 }
  0xf5   : > { %v726_v11 = vpop.permute.xlu2 %725  ;;  %v693_v8 = vpop.permute.xlu0 %692  ;;  %v5909_v28 = vsel %vm1713_vm15, %v1677_v60, %v1680_v30  ;;  %v4385_v30 = vpack.i.bf16 %v5848_v40, %v5923_v15 }
  0xf6   : > { %8628 = vst [vmem:[#allocation16_spill] sm:$0xff] %v5909_v28  ;;  %v737_v57 = vsel %vm478_vm0, %v5791_v1, %v693_v8  ;;  %v4395_v28 = vpack.i.bf16 %v5432_v21, %v5451_v26 }
  0xf7   : > { %v738_v54 = vsel %vm480_vm1, %v737_v57, %v696_v55 }
  0xf8   : > { %v739_v1 = vsel %vm482_vm2, %v738_v54, %v5815_v3  ;;  %v4400_v3 = vpack.i.bf16 %v5522_v43, %v5536_v48 }
  0xfa   : > { %4366 = vrot.lane.b32.xlu1 %v4365_v46, %s8629_s28 }
  0xfb   : > { %4371 = vrot.lane.b32.xlu2 %v5913_v56, %s8630_s13  ;;  %4361 = vrot.lane.b32.xlu0 %v4360_v31, %s8631_s29  ;;  %s8632_s13 = smov 54  }
  0xfc   : > { %v705_v60 = vpop.permute.xlu1 %704 }
  0xfd   : > { %v735_v7 = vpop.permute.xlu2 %734  ;;  %v702_v59 = vpop.permute.xlu0 %701 }
  0xfe   : > { %v740_v8 = vsel %vm484_vm3, %v739_v1, %v702_v59  ;;  %v4390_v59 = vpack.i.bf16 %v5405_v14, %v5402_v13 }
  0xff   : > { %v741_v46 = vsel %vm486_vm4, %v740_v8, %v705_v60 }
 0x100   : > { %v742_v54 = vsel %vm488_vm5, %v741_v46, %v5855_v37  ;;  %v4415_v37 = vpack.i.bf16 %v5372_v4, %v5412_v16  ;;  %v4425_v16 = vpack.i.bf16 %v5456_v27, %v5451_v26 }
 0x102   : > { %4381 = vrot.lane.b32.xlu1 %v4380_v5, %s8632_s13 }
 0x103   : > { %4386 = vrot.lane.b32.xlu2 %v4385_v30, %s8633_s26  ;;  %4376 = vrot.lane.b32.xlu0 %v5770_v35, %s8623_s25 }
 0x104   : > { %v714_v55 = vpop.permute.xlu1 %713 }
 0x105   : > { %v5939_v31 = vpop.permute.xlu2 %4221  ;;  %v711_v57 = vpop.permute.xlu0 %710 }
 0x106   : > { %8634 = vst [vmem:[#allocation17_spill] sm:$0xff] %v5939_v31  ;;  %v743_v35 = vsel %vm490_vm6, %v742_v54, %v711_v57  ;;  %v4420_v54 = vpack.i.bf16 %v5504_v38, %v5456_v27  ;;  %v4585_v31 = vpack.i.bf16 %v5541_v49, %v5622_v39 }
 0x107   : > { %v744_v60 = vsel %vm492_vm7, %v743_v35, %v714_v55  ;;  %v1740_v35 = vrot.slane %v5902_v51, 7  ;;  %v8645_v51 = vrot.slane %v5727_v41, 3  ;;  %v4455_v41 = vpack.i.bf16 %v5525_v44, %v5518_v42 }
 0x108   : > { %v745_v63 = vsel %vm494_vm8, %v744_v60, %v717_v29  ;;  %v1738_v60 = vrot.slane %v5818_v58, 5  ;;  %v4445_v58 = vpack.i.bf16 %v5436_v22, %v5429_v20 }
 0x10a   : > { %4396 = vrot.lane.b32.xlu1 %v4395_v28, %s8635_s16  ;;  %v4405_v28 = vpack.i.bf16 %v5541_v49, %v5848_v40 }
 0x10b   : > { %4401 = vrot.lane.b32.xlu2 %v4400_v3, %s8611_s30  ;;  %4391 = vrot.lane.b32.xlu0 %v4390_v59, %s8530_s21  ;;  %s8637_s21 = smov 71  }
 0x10c   : > { %v723_v30 = vpop.permute.xlu1 %722 }
 0x10d   : > { %v5954_v1 = vpop.permute.xlu2 %4236  ;;  %v720_v8 = vpop.permute.xlu0 %719 }
 0x10e   : > { %8636 = vst [vmem:[#allocation18_spill] sm:$0xff] %v5954_v1  ;;  %v746_v13 = vsel %vm496_vm9, %v745_v63, %v720_v8 }
 0x10f   : > { %v747_v55 = vsel %vm8572_vm10, %v746_v13, %v723_v30 }
 0x110   : > { %v748_v4 = vsel %vm8580_vm11, %v747_v55, %v726_v11 }
 0x112   : > { %4411 = vrot.lane.b32.xlu1 %v5420_v18, %s8614_s27  ;;  %v4430_v18 = vpack.i.bf16 %v5923_v15, %v5622_v39 }
 0x113   : > { %4416 = vrot.lane.b32.xlu2 %v4415_v37, %s8614_s27  ;;  %4406 = vrot.lane.b32.xlu0 %v4405_v28, %s8637_s21 }
 0x114   : > { %v732_v46 = vpop.permute.xlu1 %731 }
 0x115   : > { %v5967_v57 = vpop.permute.xlu2 %4251  ;;  %v729_v29 = vpop.permute.xlu0 %728 }
 0x116   : > { %v749_v63 = vsel %vm8535_vm12, %v748_v4, %v729_v29  ;;  %vm8642_vm12 = vcmask 1045504   ;;  %v6016_v29 = vpack.i.bf16 %v5451_v26, %v5848_v40 }
 0x117   : > { %v750_v3 = vsel %vm504_vm13, %v749_v63, %v732_v46  ;;  %v4460_v46 = vpack.i.bf16 %v5536_v48, %v5923_v15 }
 0x118   : > { %v5979_v59 = vsel %vm8536_vm14, %v750_v3, %v735_v7  ;;  %v1749_v7 = vsel %vm1713_vm15, %v1738_v60, %v1740_v35  ;;  %vm8646_vm14 = vcmask 1043456   ;;  %v6042_v35 = vpack.i.bf16 %v5497_v36, %v5541_v49 }
 0x119   : > { %8638 = vst [vmem:[#allocation19_spill] sm:$0xff] %v5979_v59  ;;  %v1743_v11 = vrot.slane %v5979_v59, 1  ;;  %v1748_v37 = vsel %vm8646_vm14, %v8645_v51, %v1738_v60  ;;  %v4495_v51 = vpack.i.bf16 %v5631_v45, %v5923_v15  ;;  %v4500_v15 = vpack.i.bf16 %v5541_v49, %v5522_v43 }
 0x11a   : > { %4426 = vrot.lane.b32.xlu1 %v4425_v16, %s8639_s19  ;;  %s8647_s19 = smov 35  }
 0x11b   : > { %4431 = vrot.lane.b32.xlu2 %v4430_v18, %s8640_s0  ;;  %4421 = vrot.lane.b32.xlu0 %v4420_v54, %s8641_s17 }
 0x11c   : > { %3910 = vmatpush.msk.msra.mxu1 %vm8642_vm12, %v1743_v11  ;;  %v5988_v30 = vpop.permute.xlu1 %4216  ;;  %v4475_v11 = vpack.i.bf16 %v5436_v22, %v5432_v21  ;;  %vm8678_vm12 = vcmask 637952  }
 0x11d   : > { %8643 = vst [vmem:[#allocation20_spill] sm:$0xff] %v5988_v30  ;;  %v5990_v27 = vpop.permute.xlu2 %4266  ;;  %v5993_v8 = vpop.permute.xlu0 %4211  ;;  %v6139_v30 = vld [vmem:[%s5358_s22 + $0x50] sm:$0x7f]  ;;  %vm8679_vm14 = vmmov %vm8678_vm12 }
 0x11e   : > { %8644 = vst [vmem:[#allocation21_spill] sm:$0xff] %v5993_v8  ;;  %1832 = vmatpush.msra.mxu1 %v1749_v7  ;;  %v4560_v10 = vpack.i.bf16 %v6125_v62, %v6139_v30 }
 0x120   : > { %1833 = vmatpush.msra.mxu1 %v1748_v37  ;;  %v4510_v37 = vpack.i.bf16 %v5429_v20, %v5504_v38 }
 0x122   : > { %4441 = vrot.lane.b32.xlu1 %v5440_v23, %s8609_s20 }
 0x123   : > { %4446 = vrot.lane.b32.xlu2 %v4445_v58, %s8647_s19  ;;  %4436 = vrot.lane.b32.xlu0 %v4380_v5, %s8648_s11 }
 0x124   : > { %v6004_v13 = vpop.permute.xlu1 %4231 }
 0x125   : > { %8649 = vst [vmem:[#allocation22_spill] sm:$0xff] %v6004_v13  ;;  %v6006_v28 = vpop.permute.xlu2 %4281  ;;  %v6008_v55 = vpop.permute.xlu0 %4226 }
 0x126   : > { %8650 = vst [vmem:[#allocation23_spill] sm:$0xff] %v6008_v55  ;;  %v4283_v1 = vunpack.i.l.bf16 %v6006_v28 }
 0x12a   : > { %4456 = vrot.lane.b32.xlu1 %v4455_v41, %s8637_s21  ;;  %v6084_v41 = vld [vmem:[%s5358_s22 + $0x30] sm:$0x7f] }
 0x12b   : > { %4461 = vrot.lane.b32.xlu2 %v4460_v46, %s8651_s10  ;;  %4451 = vrot.lane.b32.xlu0 %v6016_v29, %s8613_s23  ;;  %v4520_v46 = vpack.i.bf16 %v5388_v9, %v6084_v41 }
 0x12c   : > { %v6022_v5 = vpop.permute.xlu1 %4246 }
 0x12d   : > { %v6024_v4 = vpop.permute.xlu2 %4296  ;;  %v6026_v16 = vpop.permute.xlu0 %4241 }
 0x12e   : > { %8652 = vst [vmem:[#allocation24_spill] sm:$0xff] %v6026_v16  ;;  %v6182_v16 = vld [vmem:[%s5358_s22 + $0x78] sm:$0x7f] }
 0x132   : > { %4466 = vrot.lane.b32.xlu1 %v5440_v23, %s8615_s14 }
 0x133   : > { %4471 = vrot.lane.b32.xlu2 %v5913_v56, %s8615_s14  ;;  %996 = vrot.lane.b32.xlu0 %v5388_v9, %s8653_s18  ;;  %s8656_s14 = smov 89   ;;  %v5195_v9 = vld [vmem:[%s5358_s22 + $0x38] sm:$0x7f] }
 0x134   : > { %v6034_v63 = vpop.permute.xlu1 %4261 }
 0x135   : > { %8654 = vst [vmem:[#allocation25_spill] sm:$0xff] %v6034_v63  ;;  %v6036_v3 = vpop.permute.xlu2 %4311  ;;  %v6038_v54 = vpop.permute.xlu0 %4256 }
 0x136   : > { %8655 = vst [vmem:[#allocation26_spill] sm:$0xff] %v6038_v54 }
 0x13a   : > { %4481 = vrot.lane.b32.xlu1 %v6042_v35, %s8632_s13 }
 0x13b   : > { %4486 = vrot.lane.b32.xlu2 %v4430_v18, %s8656_s14  ;;  %4476 = vrot.lane.b32.xlu0 %v4475_v11, %s8641_s17 }
 0x13c   : > { %v6050_v23 = vpop.permute.xlu1 %4276 }
 0x13d   : > { %v6052_v60 = vpop.permute.xlu2 %4326  ;;  %v6054_v7 = vpop.permute.xlu0 %4271 }
 0x142   : > { %4491 = vrot.lane.b32.xlu1 %v5444_v24, %s8657_s9  ;;  %s8658_s9 = smov 53  }
 0x143   : > { %4496 = vrot.lane.b32.xlu2 %v4495_v51, %s8611_s30  ;;  %1002 = vrot.lane.b32.xlu0 %v5405_v14, %s8621_s15 }
 0x144   : > { %v6063_v21 = vpop.permute.xlu1 %4291 }
 0x145   : > { %v6065_v22 = vpop.permute.xlu2 %4341  ;;  %v6067_v18 = vpop.permute.xlu0 %4286 }
 0x14a   : > { %4506 = vrot.lane.b32.xlu1 %v5416_v17, %s8623_s25  ;;  %v4515_v17 = vpack.i.bf16 %v5848_v40, %v5536_v48  ;;  %v4530_v48 = vpack.i.bf16 %v5525_v44, %v5631_v45 }
 0x14b   : > { %4511 = vrot.lane.b32.xlu2 %v4510_v37, %s8658_s9  ;;  %4501 = vrot.lane.b32.xlu0 %v4500_v15, %s8651_s10  ;;  %v6101_v15 = vld [vmem:[%s5358_s22 + $0x28] sm:$0x7f] }
 0x14c   : > { %v6077_v14 = vpop.permute.xlu1 %4306  ;;  %8662 = vst [vmem:[#allocation29_spill] sm:$0xff] %v6101_v15  ;;  %v4535_v59 = vpack.i.bf16 %v6101_v15, %v5195_v9  ;;  %v4545_v9 = vpack.i.bf16 %v5497_v36, %v5518_v42 }
 0x14d   : > { %v6079_v24 = vpop.permute.xlu2 %4356  ;;  %v6081_v58 = vpop.permute.xlu0 %4301 }
 0x152   : > { %4521 = vrot.lane.b32.xlu1 %v4520_v46, %s8659_s8  ;;  %v6108_v46 = vld [vmem:[%s5358_s22 + $0x20] sm:$0x7f] }
 0x153   : > { %4526 = vrot.lane.b32.xlu2 %v5913_v56, %s8635_s16  ;;  %4516 = vrot.lane.b32.xlu0 %v4515_v17, %s8640_s0  ;;  %8663 = vst [vmem:[#allocation30_spill] sm:$0xff] %v6108_v46  ;;  %s8664_s16 = smov 5  }
 0x154   : > { %v6094_v11 = vpop.permute.xlu1 %4321 }
 0x155   : > { %v6096_v51 = vpop.permute.xlu2 %4371  ;;  %v6098_v37 = vpop.permute.xlu0 %4316 }
 0x156   : > { %8660 = vst [vmem:[#allocation27_spill] sm:$0xff] %v6096_v51  ;;  %v4179_v51 = vunpack.i.h.bf16 %v5812_v61  ;;  %v4273_v61 = vunpack.i.l.bf16 %v6054_v7 }
 0x157   : > { %8661 = vst [vmem:[#allocation28_spill] sm:$0xff] %v6098_v37 }
 0x15a   : > { %936 = vrot.lane.b32.xlu1 %v6108_v46, %s8664_s16  ;;  %v6144_v46 = vld [vmem:[%s5358_s22 + $0x40] sm:$0x7f]  ;;  %s8670_s16 = smov 78  }
 0x15b   : > { %4536 = vrot.lane.b32.xlu2 %v4535_v59, %s8623_s25  ;;  %4531 = vrot.lane.b32.xlu0 %v4530_v48, %s8612_s12  ;;  %v4540_v59 = vpack.i.bf16 %v6125_v62, %v5429_v20  ;;  %v4565_v20 = vpack.i.bf16 %v6144_v46, %v6139_v30  ;;  %v4575_v62 = vpack.i.bf16 %v6163_v47, %v5525_v44 }
 0x15c   : > { %v6114_v56 = vpop.permute.xlu1 %4336 }
 0x15d   : > { %8665 = vst [vmem:[#allocation31_spill] sm:$0xff] %v6114_v56  ;;  %v6116_v17 = vpop.permute.xlu2 %4386  ;;  %v6118_v19 = vpop.permute.xlu0 %4331  ;;  %v4263_v56 = vunpack.i.l.bf16 %v6034_v63  ;;  %v4600_v63 = vpack.i.bf16 %v5522_v43, %v5631_v45 }
 0x15e   : > { %8666 = vst [vmem:[#allocation32_spill] sm:$0xff] %v6118_v19 }
 0x162   : > { %4546 = vrot.lane.b32.xlu1 %v4545_v9, %s8633_s26 }
 0x163   : > { %4551 = vrot.lane.b32.xlu2 %v4550_v32, %s8648_s11  ;;  %4541 = vrot.lane.b32.xlu0 %v4540_v59, %s8641_s17  ;;  %v6150_v32 = vpack.i.bf16 %v5451_v26, %v5631_v45 }
 0x164   : > { %v6132_v48 = vpop.permute.xlu1 %4351 }
 0x165   : > { %8668 = vst [vmem:[#allocation34_spill] sm:$0xff] %v6132_v48  ;;  %v6134_v6 = vpop.permute.xlu2 %4401  ;;  %v6136_v50 = vpop.permute.xlu0 %4346  ;;  %v4258_v48 = vunpack.i.l.bf16 %v6038_v54 }
 0x166   : > { %8669 = vst [vmem:[#allocation35_spill] sm:$0xff] %v6136_v50 }
 0x167   : > { %v1658_v54 = vsel %vm478_vm0, %v4258_v48, %v4263_v56  ;;  %v4289_v56 = vunpack.i.h.bf16 %v6067_v18 }
 0x16a   : > { %4561 = vrot.lane.b32.xlu1 %v4560_v10, %s8609_s20  ;;  %v4580_v10 = vpack.i.bf16 %v5504_v38, %v5497_v36  ;;  %s8677_s20 = smov 47  }
 0x16b   : > { %4566 = vrot.lane.b32.xlu2 %v4565_v20, %s8647_s19  ;;  %4556 = vrot.lane.b32.xlu0 %v6150_v32, %s8670_s16  ;;  %v4174_v20 = vunpack.i.h.bf16 %v5820_v25  ;;  %v6188_v25 = vpack.i.bf16 %v5451_v26, %v5525_v44 }
 0x16c   : > { %v6156_v9 = vpop.permute.xlu1 %4366 }
 0x16d   : > { %8671 = vst [vmem:[#allocation36_spill] sm:$0xff] %v6156_v9  ;;  %v6158_v59 = vpop.permute.xlu2 %4416  ;;  %v6160_v8 = vpop.permute.xlu0 %4361  ;;  %v4268_v9 = vunpack.i.l.bf16 %v5990_v27 }
 0x16e   : > { %8672 = vst [vmem:[#allocation37_spill] sm:$0xff] %v6158_v59 }
 0x172   : > { %4576 = vrot.lane.b32.xlu1 %v4575_v62, %s8613_s23  ;;  %v1595_v62 = vsel %vm478_vm0, %v6182_v16, %v4174_v20 }
 0x173   : > { %4581 = vrot.lane.b32.xlu2 %v4580_v10, %s8637_s21  ;;  %4571 = vrot.lane.b32.xlu0 %v5831_v34, %s8613_s23  ;;  %v1596_v10 = vsel %vm480_vm1, %v1595_v62, %v4268_v9  ;;  %v4298_v62 = vunpack.i.l.bf16 %v6024_v4 }
 0x174   : > { %v6175_v59 = vpop.permute.xlu1 %4381  ;;  %v1597_v20 = vsel %vm482_vm2, %v1596_v10, %v4179_v51 }
 0x175   : > { %v6177_v50 = vpop.permute.xlu2 %4431  ;;  %v6179_v19 = vpop.permute.xlu0 %4376  ;;  %v1598_v9 = vsel %vm484_vm3, %v1597_v20, %v4283_v1  ;;  %v4278_v1 = vunpack.i.l.bf16 %v6050_v23  ;;  %v4605_v20 = vpack.i.bf16 %v5631_v45, %v5622_v39 }
 0x176   : > { %8673 = vst [vmem:[#allocation38_spill] sm:$0xff] %v6179_v19  ;;  %v4288_v19 = vunpack.i.l.bf16 %v6067_v18 }
 0x178   : > { %v1599_v37 = vsel %vm486_vm4, %v1598_v9, %v4288_v19  ;;  %v6224_v19 = vpack.i.bf16 %v5504_v38, %v5525_v44  ;;  %v4189_v9 = vunpack.i.h.bf16 %v5859_v52 }
 0x17a   : > { %942 = vrot.lane.b32.xlu1 %v6144_v46, %s8629_s28  ;;  %s8676_s28 = smov 90  }
 0x17b   : > { %4591 = vrot.lane.b32.xlu2 %v6188_v25, %s8632_s13  ;;  %4586 = vrot.lane.b32.xlu0 %v4585_v31, %s8616_s24  ;;  %v1659_v31 = vsel %vm480_vm1, %v1658_v54, %v4273_v61  ;;  %v4229_v54 = vunpack.i.h.bf16 %v6008_v55  ;;  %v4610_v61 = vpack.i.bf16 %v5848_v40, %v5518_v42  ;;  %v8697_v55 = vld [vmem:[#allocation26_spill] sm:$0xff] }
 0x17c   : > { %v6207_v34 = vpop.permute.xlu1 %4396  ;;  %v1660_v43 = vsel %vm482_vm2, %v1659_v31, %v4278_v1  ;;  %v4313_v1 = vunpack.i.l.bf16 %v6036_v3  ;;  %v4234_v31 = vunpack.i.h.bf16 %v6004_v13 }
 0x17d   : > { %8674 = vst [vmem:[#allocation39_spill] sm:$0xff] %v6207_v34  ;;  %v6210_v51 = vpop.permute.xlu2 %4446  ;;  %v6212_v10 = vpop.permute.xlu0 %4391  ;;  %v1600_v34 = vsel %vm488_vm5, %v1599_v37, %v4298_v62 }
 0x17e   : > { %8675 = vst [vmem:[#allocation40_spill] sm:$0xff] %v6210_v51  ;;  %v4284_v51 = vunpack.i.h.bf16 %v6006_v28  ;;  %v1601_v39 = vsel %vm490_vm6, %v1600_v34, %v4189_v9  ;;  %v4299_v28 = vunpack.i.h.bf16 %v6024_v4  ;;  %v4194_v34 = vunpack.i.h.bf16 %v5853_v2  ;;  %v6250_v9 = vld [vmem:[%s5358_s22 + $0x60] sm:$0x7f] }
 0x17f   : > { %v4328_v2 = vunpack.i.l.bf16 %v6052_v60 }
 0x180   : > { %v1661_v48 = vsel %vm484_vm3, %v1660_v43, %v4284_v51 }
 0x181   : > { %v1662_v62 = vsel %vm486_vm4, %v1661_v48, %v4289_v56  ;;  %v4620_v48 = vpack.i.bf16 %v5518_v42, %v5848_v40 }
 0x182   : > { %4601 = vrot.lane.b32.xlu1 %v4600_v63, %s8656_s14  ;;  %v1602_v63 = vsel %vm492_vm7, %v1601_v39, %v4229_v54  ;;  %v1663_v4 = vsel %vm488_vm5, %v1662_v62, %v4299_v28  ;;  %v4199_v39 = vunpack.i.h.bf16 %v5763_v33  ;;  %v4204_v33 = vunpack.i.h.bf16 %v5883_v53 }
 0x183   : > { %4606 = vrot.lane.b32.xlu2 %v4605_v20, %s8676_s28  ;;  %4596 = vrot.lane.b32.xlu0 %v6224_v19, %s8648_s11  ;;  %v1603_v20 = vsel %vm494_vm8, %v1602_v63, %v4194_v34  ;;  %v1664_v54 = vsel %vm490_vm6, %v1663_v4, %v4313_v1  ;;  %v4343_v34 = vunpack.i.l.bf16 %v6065_v22  ;;  %v4388_v4 = vunpack.i.l.bf16 %v6116_v17 }
 0x184   : > { %v6236_v37 = vpop.permute.xlu1 %4411  ;;  %v1604_v43 = vsel %vm496_vm9, %v1603_v20, %v4234_v31  ;;  %v1665_v20 = vsel %vm492_vm7, %v1664_v54, %v4328_v2 }
 0x185   : > { %v4462_v52 = vpop.permute.xlu2 %4461  ;;  %v4407_v18 = vpop.permute.xlu0 %4406  ;;  %v1605_v62 = vsel %vm8572_vm10, %v1604_v43, %v4199_v39  ;;  %v1666_v13 = vsel %vm494_vm8, %v1665_v20, %v4343_v34  ;;  %v4625_v34 = vpack.i.bf16 %v5631_v45, %v5541_v49 }
 0x186   : > { %v4408_v51 = vunpack.i.l.bf16 %v4407_v18  ;;  %v4463_v1 = vunpack.i.l.bf16 %v4462_v52  ;;  %v4409_v43 = vunpack.i.h.bf16 %v4407_v18 }
 0x188   : > { %v1606_v31 = vsel %vm8580_vm11, %v1605_v62, %v4408_v51  ;;  %v4464_v51 = vunpack.i.h.bf16 %v4462_v52 }
 0x189   : > { %v1607_v42 = vsel %vm8678_vm12, %v1606_v31, %v4204_v33  ;;  %vm8680_vm12 = vcmask 736256  }
 0x18a   : > { %1020 = vrot.lane.b32.xlu1 %v6250_v9, %s8677_s20  ;;  %v1608_v54 = vsel %vm504_vm13, %v1607_v42, %v4463_v1  ;;  %s8584_s20 = smov 7  }
 0x18b   : > { %4611 = vrot.lane.b32.xlu2 %v4610_v61, %s8611_s30  ;;  %945 = vrot.lane.b32.xlu0 %v6101_v15, %s8659_s8  ;;  %v4363_v61 = vunpack.i.l.bf16 %v6160_v8  ;;  %s8583_s8 = smov 115  }
 0x18c   : > { %v6259_v56 = vpop.permute.xlu1 %4426 }
 0x18d   : > { %v6263_v28 = vpop.permute.xlu2 %4471  ;;  %v6265_v63 = vpop.permute.xlu0 %4421  ;;  %v1667_v40 = vsel %vm496_vm9, %v1666_v13, %v4363_v61  ;;  %v6306_v61 = vld [vmem:[%s5358_s22 + $0x48] sm:$0x7f] }
 0x18e   : > { %v4640_v42 = vpack.i.bf16 %v6306_v61, %v6144_v46 }
 0x192   : > { %4621 = vrot.lane.b32.xlu1 %v4620_v48, %s8651_s10  ;;  %v1668_v48 = vsel %vm8572_vm10, %v1667_v40, %v4388_v4  ;;  %vm8681_vm10 = vmmov %vm8680_vm12  ;;  %v4635_v4 = vpack.i.bf16 %v6182_v16, %v5451_v26  ;;  %v4249_v40 = vunpack.i.h.bf16 %v6022_v5  ;;  %v5204_v26 = vld [vmem:[%s5358_s22 + $0x70] sm:$0x7f] }
 0x193   : > { %948 = vrot.lane.b32.xlu2 %v6084_v41, %s8623_s25  ;;  %4616 = vrot.lane.b32.xlu0 %v6042_v35, %s8611_s30  ;;  %v4209_v41 = vunpack.i.h.bf16 %v5879_v0  ;;  %v1669_v35 = vsel %vm8580_vm11, %v1668_v48, %v4409_v43  ;;  %s5248_s25 = smov 116  }
 0x194   : > { %v6284_v53 = vpop.permute.xlu1 %4441 }
 0x195   : > { %v6286_v2 = vpop.permute.xlu2 %4486  ;;  %v6288_v39 = vpop.permute.xlu0 %4436  ;;  %v6300_v52 = vsel %vm8680_vm12, %v1608_v54, %v4209_v41  ;;  %v1535_v41 = vsel %vm478_vm0, %v5204_v26, %v4249_v40 }
 0x196   : > { %v4488_v13 = vunpack.i.l.bf16 %v6286_v2  ;;  %v4438_v18 = vunpack.i.l.bf16 %v6288_v39  ;;  %v1728_v45 = vrot.slane %v6300_v52, 4  ;;  %v4303_v52 = vunpack.i.l.bf16 %v6081_v58 }
 0x198   : > { %v1670_v62 = vsel %vm8679_vm14, %v1669_v35, %v4438_v18  ;;  %v4650_v18 = vpack.i.bf16 %v6182_v16, %v5204_v26  ;;  %v4254_v35 = vunpack.i.h.bf16 %v5967_v57 }
 0x199   : > { %v1671_v0 = vsel %vm504_vm13, %v1670_v62, %v4464_v51  ;;  %v4269_v51 = vunpack.i.h.bf16 %v5990_v27  ;;  %v4293_v62 = vunpack.i.l.bf16 %v6063_v21  ;;  %v4308_v27 = vunpack.i.l.bf16 %v6077_v14 }
 0x19a   : > { %4631 = vrot.lane.b32.xlu1 %v5888_v12, %s8656_s14  ;;  %v1672_v20 = vsel %vm8681_vm10, %v1671_v0, %v4488_v13  ;;  %v4645_v13 = vpack.i.bf16 %v6182_v16, %v5497_v36  ;;  %v4323_v0 = vunpack.i.l.bf16 %v6094_v11  ;;  %vm8685_vm10 = vcmask 539648  }
 0x19b   : > { %951 = vrot.lane.b32.xlu2 %v6306_v61, %s8647_s19  ;;  %4626 = vrot.lane.b32.xlu0 %v4625_v34, %s8640_s0  ;;  %v1731_v31 = vrot.slane %v1672_v20, 6  ;;  %v1536_v34 = vsel %vm480_vm1, %v1535_v41, %v4269_v51  ;;  %v4314_v51 = vunpack.i.h.bf16 %v6036_v3  ;;  %v4655_v41 = vpack.i.bf16 %v6250_v9, %v5204_v26  ;;  %s5251_s19 = smov 2  }
 0x19c   : > { %v6312_v49 = vpop.permute.xlu1 %4456  ;;  %v1537_v20 = vsel %vm482_vm2, %v1536_v34, %v4254_v35  ;;  %v4383_v34 = vunpack.i.l.bf16 %v6175_v59 }
 0x19d   : > { %v6315_v33 = vpop.permute.xlu2 %4496  ;;  %v6317_v12 = vpop.permute.xlu0 %4451  ;;  %v1746_v1 = vsel %vm1713_vm15, %v1728_v45, %v1731_v31  ;;  %v1538_v31 = vsel %vm484_vm3, %v1537_v20, %v4293_v62 }
 0x19e   : > { %1784 = vmatpush.msra.mxu0 %v1746_v1 }
 0x1a2   : > { %4636 = vrot.lane.b32.xlu1 %v4635_v4, %s8612_s12  ;;  %v1539_v4 = vsel %vm486_vm4, %v1538_v31, %v4308_v27  ;;  %v4403_v27 = vunpack.i.l.bf16 %v6134_v6  ;;  %s8597_s12 = smov 3  }
 0x1a3   : > { %4641 = vrot.lane.b32.xlu2 %v4640_v42, %s8641_s17  ;;  %1026 = vrot.lane.b32.xlu0 %v5504_v38, %s8631_s29  ;;  %v1540_v40 = vsel %vm488_vm5, %v1539_v4, %v4323_v0  ;;  %v4433_v4 = vunpack.i.l.bf16 %v6177_v50 }
 0x1a4   : > { %v6331_v43 = vpop.permute.xlu1 %4466  ;;  %v1541_v35 = vsel %vm490_vm6, %v1540_v40, %v4314_v51 }
 0x1a5   : > { %v6334_v54 = vpop.permute.xlu2 %4511  ;;  %v6338_v48 = vpop.permute.xlu0 %996 }
 0x1a6   : > { %8682 = vst [vmem:[#allocation41_spill] sm:$0xff] %v6338_v48 }
 0x1aa   : > { %4646 = vrot.lane.b32.xlu1 %v4645_v13, %s8648_s11  ;;  %v4358_v13 = vunpack.i.l.bf16 %v6079_v24 }
 0x1ab   : > { %4651 = vrot.lane.b32.xlu2 %v4650_v18, %s8613_s23  ;;  %954 = vrot.lane.b32.xlu0 %v6139_v30, %s8641_s17  ;;  %s8587_s17 = smov 56   ;;  %s8589_s23 = smov 87  }
 0x1ac   : > { %v6353_v16 = vpop.permute.xlu1 %4481  ;;  %v1542_v3 = vsel %vm492_vm7, %v1541_v35, %v4358_v13  ;;  %v4439_v35 = vunpack.i.h.bf16 %v6288_v39 }
 0x1ad   : > { %v6356_v1 = vpop.permute.xlu2 %4526  ;;  %v6359_v42 = vpop.permute.xlu0 %4476  ;;  %v1543_v20 = vsel %vm494_vm8, %v1542_v3, %v4383_v34 }
 0x1b2   : > { %4661 = vrot.lane.b32.xlu1 %v6150_v32, %s8616_s24  ;;  %v1544_v32 = vsel %vm496_vm9, %v1543_v20, %v4403_v27  ;;  %v4489_v27 = vunpack.i.h.bf16 %v6286_v2  ;;  %s5247_s24 = smov 122  }
 0x1b3   : > { %4666 = vrot.lane.b32.xlu2 %v4650_v18, %s8632_s13  ;;  %4656 = vrot.lane.b32.xlu0 %v4655_v41, %s8637_s21  ;;  %v4458_v18 = vunpack.i.l.bf16 %v6312_v49  ;;  %v1545_v40 = vsel %vm8685_vm10, %v1544_v32, %v4433_v4  ;;  %vm8687_vm10 = vcmask 1043456   ;;  %s5250_s13 = smov 63  }
 0x1b4   : > { %v6371_v62 = vpop.permute.xlu1 %4491 }
 0x1b5   : > { %v6375_v0 = vpop.permute.xlu2 %4536  ;;  %v6378_v31 = vpop.permute.xlu0 %1002  ;;  %v1546_v41 = vsel %vm8580_vm11, %v1545_v40, %v4458_v18  ;;  %v4690_v18 = vpack.i.bf16 %v6163_v47, %v6250_v9 }
 0x1b6   : > { %8683 = vst [vmem:[#allocation42_spill] sm:$0xff] %v6375_v0  ;;  %v1547_v3 = vsel %vm8679_vm14, %v1546_v41, %v4439_v35  ;;  %v8690_v41 = vld [vmem:[#allocation28_spill] sm:$0xff]  ;;  %vm8702_vm14 = vcmask 539648  }
 0x1b7   : > { %8684 = vst [vmem:[#allocation43_spill] sm:$0xff] %v6378_v31  ;;  %v4318_v35 = vunpack.i.l.bf16 %v8690_v41 }
 0x1ba   : > { %4671 = vrot.lane.b32.xlu1 %v6016_v29, %s8656_s14 }
 0x1bb   : > { %4676 = vrot.lane.b32.xlu2 %v6188_v25, %s8611_s30  ;;  %960 = vrot.lane.b32.xlu0 %v6250_v9, %s8658_s9  ;;  %s8585_s9 = smov 79  }
 0x1bc   : > { %v6390_v51 = vpop.permute.xlu1 %4506 }
 0x1bd   : > { %v6393_v13 = vpop.permute.xlu2 %4551  ;;  %v6396_v34 = vpop.permute.xlu0 %4501 }
 0x1be   : > { %v4503_v29 = vunpack.i.l.bf16 %v6396_v34 }
 0x1c0   : > { %v1548_v20 = vsel %vm504_vm13, %v1547_v3, %v4503_v29  ;;  %v8691_v29 = vld [vmem:[#allocation14_spill] sm:$0xff] }
 0x1c1   : > { %v6405_v4 = vsel %vm8680_vm12, %v1548_v20, %v4489_v27  ;;  %v8692_v27 = vld [vmem:[#allocation31_spill] sm:$0xff]  ;;  %vm8705_vm12 = vcmask 637952  }
 0x1c2   : > { %4686 = vrot.lane.b32.xlu1 %v6188_v25, %s8640_s0  ;;  %v8573_v32 = vrot.slane %v6405_v4, 2  ;;  %v4338_v3 = vunpack.i.l.bf16 %v8692_v27 }
 0x1c3   : > { %966 = vrot.lane.b32.xlu2 %v5504_v38, %s8633_s26  ;;  %4681 = vrot.lane.b32.xlu0 %v6224_v19, %s8651_s10  ;;  %s5249_s26 = smov 110  }
 0x1c4   : > { %v6412_v39 = vpop.permute.xlu1 %4521  ;;  %v1745_v2 = vsel %vm8687_vm10, %v8573_v32, %v1728_v45  ;;  %vm8708_vm10 = vmmov %vm8702_vm14 }
 0x1c5   : > { %8686 = vst [vmem:[#allocation44_spill] sm:$0xff] %v6412_v39  ;;  %v6419_v25 = vpop.permute.xlu0 %4516  ;;  %1785 = vmatpush.msra.mxu0 %v1745_v2  ;;  %v6423_v40 = vpop.permute.xlu2 %4566  ;;  %v8698_v39 = vld [vmem:[#allocation25_spill] sm:$0xff] }
 0x1c6   : > { %8688 = vst [vmem:[#allocation45_spill] sm:$0xff] %v6423_v40  ;;  %v4264_v31 = vunpack.i.h.bf16 %v8698_v39 }
 0x1ca   : > { %4691 = vrot.lane.b32.xlu1 %v4690_v18, %s8648_s11  ;;  %v1415_v18 = vsel %vm478_vm0, %v6250_v9, %v4303_v52  ;;  %v4428_v9 = vunpack.i.l.bf16 %v6259_v56 }
 0x1cb   : > { %972 = vrot.lane.b32.xlu2 %v5204_v26, %s8648_s11  ;;  %969 = vrot.lane.b32.xlu0 %v6163_v47, %s8637_s21  ;;  %v8693_v26 = vld [vmem:[#allocation34_spill] sm:$0xff]  ;;  %v1416_v32 = vsel %vm480_vm1, %v1415_v18, %v4318_v35  ;;  %v8699_v35 = vld [vmem:[#allocation17_spill] sm:$0xff]  ;;  %s8590_s11 = smov 107   ;;  %s8593_s21 = smov 104  }
 0x1cc   : > { %v6429_v38 = vpop.permute.xlu1 %936  ;;  %v4353_v20 = vunpack.i.l.bf16 %v8693_v26  ;;  %v1417_v0 = vsel %vm482_vm2, %v1416_v32, %v4338_v3  ;;  %v4224_v18 = vunpack.i.h.bf16 %v8699_v35  ;;  %v4279_v32 = vunpack.i.h.bf16 %v6050_v23 }
 0x1cd   : > { %8689 = vst [vmem:[#allocation46_spill] sm:$0xff] %v6429_v38  ;;  %v6431_v19 = vpop.permute.xlu0 %4531  ;;  %v6434_v45 = vpop.permute.xlu2 %4581  ;;  %v4359_v23 = vunpack.i.h.bf16 %v6079_v24  ;;  %v4354_v24 = vunpack.i.h.bf16 %v8693_v26  ;;  %v8701_v26 = vld [vmem:[#allocation39_spill] sm:$0xff] }
 0x1ce   : > { %v1418_v48 = vsel %vm484_vm3, %v1417_v0, %v4353_v20  ;;  %v4294_v0 = vunpack.i.h.bf16 %v6063_v21  ;;  %v4304_v21 = vunpack.i.h.bf16 %v6081_v58  ;;  %v4329_v58 = vunpack.i.h.bf16 %v6052_v60 }
 0x1cf   : > { %v4424_v60 = vunpack.i.h.bf16 %v6265_v63 }
 0x1d2   : > { %4696 = vrot.lane.b32.xlu1 %v8691_v29, %s8656_s14  ;;  %v8696_v29 = vld [vmem:[#allocation27_spill] sm:$0xff] }
 0x1d3   : > { %978 = vrot.lane.b32.xlu2 %v5525_v44, %s8656_s14  ;;  %975 = vrot.lane.b32.xlu0 %v5497_v36, %s8651_s10  ;;  %v4373_v40 = vunpack.i.l.bf16 %v8696_v29  ;;  %v4259_v44 = vunpack.i.h.bf16 %v8697_v55  ;;  %v4274_v36 = vunpack.i.h.bf16 %v6054_v7  ;;  %v4309_v7 = vunpack.i.h.bf16 %v6077_v14  ;;  %s5252_s14 = smov 103  }
 0x1d4   : > { %v6445_v2 = vpop.permute.xlu1 %4546 }
 0x1d5   : > { %8694 = vst [vmem:[#allocation28_spill] sm:$0xff] %v6445_v2  ;;  %v6450_v38 = vpop.permute.xlu0 %4541  ;;  %v1419_v15 = vsel %vm486_vm4, %v1418_v48, %v4373_v40  ;;  %v6460_v52 = vpop.permute.xlu2 %4591  ;;  %v4324_v40 = vunpack.i.h.bf16 %v6094_v11 }
 0x1d6   : > { %8695 = vst [vmem:[#allocation14_spill] sm:$0xff] %v6450_v38  ;;  %v1351_v38 = vsel %vm478_vm0, %v4259_v44, %v4264_v31  ;;  %v1420_v48 = vsel %vm488_vm5, %v1419_v15, %v4224_v18  ;;  %v4423_v44 = vunpack.i.l.bf16 %v6265_v63  ;;  %v4319_v15 = vunpack.i.h.bf16 %v8690_v41  ;;  %v8700_v41 = vld [vmem:[#allocation38_spill] sm:$0xff] }
 0x1d7   : > { %v1352_v55 = vsel %vm480_vm1, %v1351_v38, %v4274_v36  ;;  %v1421_v20 = vsel %vm490_vm6, %v1420_v48, %v4428_v9  ;;  %v4339_v9 = vunpack.i.h.bf16 %v8692_v27  ;;  %v4384_v18 = vunpack.i.h.bf16 %v6175_v59 }
 0x1d8   : > { %v1353_v31 = vsel %vm482_vm2, %v1352_v55, %v4279_v32  ;;  %v1422_v36 = vsel %vm492_vm7, %v1421_v20, %v4359_v23  ;;  %v4404_v59 = vunpack.i.h.bf16 %v6134_v6  ;;  %v4398_v20 = vunpack.i.l.bf16 %v8701_v26 }
 0x1d9   : > { %v1354_v38 = vsel %vm484_vm3, %v1353_v31, %v4294_v0  ;;  %v1475_v0 = vsel %vm478_vm0, %v6163_v47, %v4304_v21  ;;  %v1423_v48 = vsel %vm494_vm8, %v1422_v36, %v4384_v18  ;;  %v4453_v21 = vunpack.i.l.bf16 %v6317_v12 }
 0x1da   : > { %v1355_v14 = vsel %vm486_vm4, %v1354_v38, %v4309_v7  ;;  %v4378_v7 = vunpack.i.l.bf16 %v8700_v41  ;;  %v1476_v27 = vsel %vm480_vm1, %v1475_v0, %v4319_v15  ;;  %v4434_v6 = vunpack.i.h.bf16 %v6177_v50 }
 0x1db   : > { %v1356_v11 = vsel %vm488_vm5, %v1355_v14, %v4324_v40  ;;  %v1477_v23 = vsel %vm482_vm2, %v1476_v27, %v4339_v9  ;;  %v1424_v14 = vsel %vm496_vm9, %v1423_v48, %v4404_v59  ;;  %v4483_v36 = vunpack.i.l.bf16 %v6353_v16 }
 0x1dc   : > { %v6465_v3 = vpop.permute.xlu1 %4561  ;;  %v1357_v32 = vsel %vm490_vm6, %v1356_v11, %v4423_v44  ;;  %v4344_v44 = vunpack.i.h.bf16 %v6065_v22  ;;  %v1478_v38 = vsel %vm484_vm3, %v1477_v23, %v4354_v24  ;;  %v4364_v9 = vunpack.i.h.bf16 %v6160_v8 }
 0x1dd   : > { %v6471_v39 = vpop.permute.xlu0 %4556  ;;  %v6495_v40 = vpop.permute.xlu2 %4606  ;;  %v1358_v47 = vsel %vm492_vm7, %v1357_v32, %v4329_v58  ;;  %v1479_v15 = vsel %vm486_vm4, %v1478_v38, %v4378_v7  ;;  %v1425_v24 = vsel %vm8702_vm14, %v1424_v14, %v4434_v6  ;;  %v8703_v32 = vld [vmem:[#allocation18_spill] sm:$0xff]  ;;  %v4498_v50 = vunpack.i.l.bf16 %v6315_v33  ;;  %v8706_v6 = vld [vmem:[#allocation32_spill] sm:$0xff]  ;;  %vm8709_vm14 = vmmov %vm8708_vm10 }
 0x1de   : > { %v1480_v11 = vsel %vm488_vm5, %v1479_v15, %v4398_v20  ;;  %v1359_v63 = vsel %vm494_vm8, %v1358_v47, %v4344_v44  ;;  %v4558_v18 = vunpack.i.l.bf16 %v6471_v39  ;;  %v4239_v58 = vunpack.i.h.bf16 %v8703_v32  ;;  %v8704_v44 = vld [vmem:[#allocation24_spill] sm:$0xff] }
 0x1df   : > { %v1481_v22 = vsel %vm490_vm6, %v1480_v11, %v4424_v60  ;;  %v4459_v48 = vunpack.i.h.bf16 %v6312_v49  ;;  %v1360_v27 = vsel %vm496_vm9, %v1359_v63, %v4364_v9  ;;  %v4518_v59 = vunpack.i.l.bf16 %v6419_v25  ;;  %v8710_v32 = vld [vmem:[#allocation36_spill] sm:$0xff] }
 0x1e0   : > { %v1482_v0 = vsel %vm492_vm7, %v1481_v22, %v4453_v21  ;;  %v4389_v20 = vunpack.i.h.bf16 %v6116_v17  ;;  %v4533_v23 = vunpack.i.l.bf16 %v6431_v19  ;;  %v1426_v60 = vsel %vm8580_vm11, %v1425_v24, %v4239_v58 }
 0x1e1   : > { %v1483_v8 = vsel %vm494_vm8, %v1482_v0, %v4483_v36  ;;  %v4244_v38 = vunpack.i.h.bf16 %v8704_v44  ;;  %v4553_v21 = vunpack.i.l.bf16 %v6393_v13  ;;  %v1427_v49 = vsel %vm8705_vm12, %v1426_v60, %v4558_v18  ;;  %v8707_v36 = vld [vmem:[#allocation35_spill] sm:$0xff] }
 0x1e2   : > { %v4333_v15 = vunpack.i.l.bf16 %v8706_v6  ;;  %v4348_v11 = vunpack.i.l.bf16 %v8707_v36  ;;  %v1361_v17 = vsel %vm8708_vm10, %v1360_v27, %v4389_v20  ;;  %v1484_v63 = vsel %vm496_vm9, %v1483_v8, %v4498_v50  ;;  %v8711_v8 = vld [vmem:[#allocation33_spill] sm:$0xff]  ;;  %vm8712_vm10 = vmmov %vm8705_vm12 }
 0x1e3   : > { %v1362_v9 = vsel %vm8580_vm11, %v1361_v17, %v4459_v48  ;;  %v4554_v22 = vunpack.i.h.bf16 %v6393_v13  ;;  %v1485_v24 = vsel %vm8709_vm14, %v1484_v63, %v4518_v59  ;;  %v4608_v58 = vunpack.i.l.bf16 %v6495_v40 }
 0x1e4   : > { %v6488_v55 = vpop.permute.xlu1 %4576  ;;  %v4504_v18 = vunpack.i.h.bf16 %v6396_v34  ;;  %v1486_v0 = vsel %vm8580_vm11, %v1485_v24, %v4533_v23  ;;  %v1428_v44 = vsel %vm504_vm13, %v1427_v49, %v4244_v38  ;;  %v4368_v27 = vunpack.i.l.bf16 %v8710_v32 }
 0x1e5   : > { %v6500_v31 = vpop.permute.xlu0 %4571  ;;  %v6535_v14 = vpop.permute.xlu2 %4611  ;;  %v1363_v50 = vsel %vm8705_vm12, %v1362_v9, %v4553_v21  ;;  %v1288_v48 = vsel %vm478_vm0, %v8711_v8, %v4333_v15  ;;  %v4393_v13 = vunpack.i.l.bf16 %v6212_v10  ;;  %v1487_v34 = vsel %vm8712_vm10, %v1486_v0, %v4554_v22 }
 0x1e6   : > { %vm8713_vm14 = vcmask 736256   ;;  %v1289_v63 = vsel %vm480_vm1, %v1288_v48, %v4348_v11  ;;  %v1364_v21 = vsel %vm504_vm13, %v1363_v50, %v4504_v18  ;;  %v8716_v22 = vrot.slane %v6405_v4, 2  ;;  %v8719_v18 = vld [vmem:[#allocation40_spill] sm:$0xff] }
 0x1e7   : > { %v1429_v23 = vsel %vm8713_vm14, %v1428_v44, %v4608_v58  ;;  %v1290_v49 = vsel %vm482_vm2, %v1289_v63, %v4368_v27  ;;  %vm8714_vm12 = vmmov %vm8713_vm14  ;;  %vm8717_vm10 = vcmask 1045504   ;;  %v4379_v0 = vunpack.i.h.bf16 %v8700_v41 }
 0x1e8   : > { %vm8715_vm11 = vmmov %vm8714_vm12  ;;  %v1291_v8 = vsel %vm484_vm3, %v1290_v49, %v4393_v13  ;;  %v1707_v58 = vrot.slane %v1429_v23, 6  ;;  %v4448_v27 = vunpack.i.l.bf16 %v8719_v18  ;;  %v4478_v4 = vunpack.i.l.bf16 %v6359_v42 }
 0x1e9   : > { %v1292_v48 = vsel %vm486_vm4, %v1291_v8, %v4379_v0  ;;  %v4548_v49 = vunpack.i.l.bf16 %v6445_v2  ;;  %v8722_v8 = vld [vmem:[#allocation8_spill] sm:$0xff]  ;;  %vm8728_vm14 = vcmask 588800  }
 0x1ec   : > { %v6521_v7 = vpop.permute.xlu1 %942 }
 0x1ed   : > { %v6530_v47 = vpop.permute.xlu0 %4586 }
 0x1ee   : > { %v4588_v60 = vunpack.i.l.bf16 %v6530_v47 }
 0x1f0   : > { %v1488_v38 = vsel %vm504_vm13, %v1487_v34, %v4588_v60  ;;  %v6572_v60 = vpop.permute.xlu2 %948  ;;  %v4513_v34 = vunpack.i.l.bf16 %v6334_v54 }
 0x1f1   : > { %8718 = vst [vmem:[#allocation31_spill] sm:$0xff] %v6572_v60 }
 0x1f4   : > { %v4602_v59 = vpop.permute.xlu1 %4601 }
 0x1f5   : > { %v4604_v20 = vunpack.i.h.bf16 %v4602_v59  ;;  %v4603_v17 = vunpack.i.l.bf16 %v4602_v59  ;;  %v6557_v24 = vpop.permute.xlu0 %4596  ;;  %v1293_v59 = vsel %vm488_vm5, %v1292_v48, %v4448_v27  ;;  %v4583_v27 = vunpack.i.l.bf16 %v6434_v45 }
 0x1f6   : > { %v1294_v41 = vsel %vm490_vm6, %v1293_v59, %v4478_v4  ;;  %v4598_v48 = vunpack.i.l.bf16 %v6557_v24  ;;  %v8725_v4 = vld [vmem:[#allocation30_spill] sm:$0xff] }
 0x1f7   : > { %v1489_v15 = vsel %vm8714_vm12, %v1488_v38, %v4604_v20  ;;  %v6564_v9 = vsel %vm8715_vm11, %v1364_v21, %v4603_v17  ;;  %v4454_v17 = vunpack.i.h.bf16 %v6317_v12  ;;  %v4499_v38 = vunpack.i.h.bf16 %v6315_v33  ;;  %v8723_v12 = vld [vmem:[#allocation21_spill] sm:$0xff] }
 0x1f8   : > { %v1744_v44 = vsel %vm8717_vm10, %v1489_v15, %v8716_v22  ;;  %v8581_v11 = vrot.slane %v6564_v9, 4  ;;  %v6589_v63 = vpop.permute.xlu2 %951  ;;  %v4119_v22 = vunpack.i.h.bf16 %v8722_v8  ;;  %v4213_v0 = vunpack.i.l.bf16 %v8723_v12 }
 0x1f9   : > { %1786 = vmatpush.msra.mxu0 %v1744_v44  ;;  %v1295_v23 = vsel %vm492_vm7, %v1294_v41, %v4454_v17  ;;  %8721 = vst [vmem:[#allocation27_spill] sm:$0xff] %v6589_v63  ;;  %v4413_v44 = vunpack.i.l.bf16 %v6236_v37  ;;  %vm8724_vm11 = vcmask 539648   ;;  %v4468_v17 = vunpack.i.l.bf16 %v6331_v43 }
 0x1fa   : > { %v1723_v50 = vsel %vm1713_vm15, %v8581_v11, %v1707_v58  ;;  %v1296_v15 = vsel %vm494_vm8, %v1295_v23, %v4513_v34  ;;  %v801_v59 = vsel %vm478_vm0, %v8725_v4, %v4119_v22  ;;  %v4349_v8 = vunpack.i.h.bf16 %v8707_v36 }
 0x1fb   : > { %1787 = vmatpush.msra.mxu0 %v1723_v50  ;;  %v1297_v50 = vsel %vm496_vm9, %v1296_v15, %v4499_v38  ;;  %v1108_v41 = vsel %vm478_vm0, %v6144_v46, %v4413_v44  ;;  %v802_v23 = vsel %vm480_vm1, %v801_v59, %v4213_v0  ;;  %v4493_v38 = vunpack.i.l.bf16 %v6371_v62  ;;  %v8726_v15 = vld [vmem:[#allocation10_spill] sm:$0xff] }
 0x1fc   : > { %v6580_v13 = vpop.permute.xlu1 %1020  ;;  %v1298_v33 = vsel %vm8724_vm11, %v1297_v50, %v4548_v49  ;;  %v4129_v49 = vunpack.i.h.bf16 %v8726_v15  ;;  %v8727_v50 = vld [vmem:[#allocation20_spill] sm:$0xff]  ;;  %v4414_v46 = vunpack.i.h.bf16 %v6236_v37  ;;  %v1109_v44 = vsel %vm480_vm1, %v1108_v41, %v4349_v8 }
 0x1fd   : > { %v6583_v20 = vpop.permute.xlu0 %945  ;;  %v4218_v11 = vunpack.i.l.bf16 %v8727_v50  ;;  %v1299_v63 = vsel %vm8728_vm14, %v1298_v33, %v4583_v27  ;;  %vm8729_vm12 = vcmask 637952   ;;  %v4443_v59 = vunpack.i.l.bf16 %v6284_v53  ;;  %v8730_v33 = vld [vmem:[#allocation37_spill] sm:$0xff] }
 0x1fe   : > { %8720 = vst [vmem:[#allocation34_spill] sm:$0xff] %v6583_v20  ;;  %v1300_v4 = vsel %vm8729_vm12, %v1299_v63, %v4598_v48  ;;  %v803_v0 = vsel %vm482_vm2, %v802_v23, %v4129_v49  ;;  %v1110_v15 = vsel %vm482_vm2, %v1109_v44, %v4468_v17  ;;  %v4418_v37 = vunpack.i.l.bf16 %v8730_v33  ;;  %v8732_v44 = vld [vmem:[#allocation4_spill] sm:$0xff] }
 0x1ff   : > { %v4469_v41 = vunpack.i.h.bf16 %v6331_v43  ;;  %v1111_v63 = vsel %vm484_vm3, %v1110_v15, %v4493_v38  ;;  %vm8731_vm10 = vcmask 736256   ;;  %v4374_v8 = vunpack.i.h.bf16 %v8696_v29 }
 0x200   : > { %v6622_v60 = vpop.permute.xlu2 %4641  ;;  %v4444_v23 = vunpack.i.h.bf16 %v6284_v53  ;;  %v4494_v49 = vunpack.i.h.bf16 %v6371_v62  ;;  %v4044_v20 = vunpack.i.h.bf16 %v8732_v44  ;;  %v4508_v43 = vunpack.i.l.bf16 %v6390_v51 }
 0x201   : > { %v804_v38 = vsel %vm484_vm3, %v803_v0, %v4218_v11  ;;  %v8733_v29 = vrot.slane %v6564_v9, 4  ;;  %vm8734_vm11 = vcmask 1043456   ;;  %v1228_v62 = vsel %vm478_vm0, %v6139_v30, %v4418_v37  ;;  %v8735_v11 = vld [vmem:[#allocation6_spill] sm:$0xff] }
 0x202   : > { %v4399_v15 = vunpack.i.h.bf16 %v8701_v26  ;;  %v4054_v0 = vunpack.i.h.bf16 %v8735_v11  ;;  %v4528_v9 = vunpack.i.l.bf16 %v6356_v1  ;;  %v4573_v26 = vunpack.i.l.bf16 %v6500_v31 }
 0x203   : > { %v4334_v11 = vunpack.i.h.bf16 %v8706_v6  ;;  %vm8744_vm14 = vcmask 539648  }
 0x204   : > { %v6592_v21 = vpop.permute.xlu1 %4621  ;;  %vm8745_vm12 = vmmov %vm8744_vm14 }
 0x205   : > { %v6598_v58 = vpop.permute.xlu0 %4616  ;;  %v4623_v34 = vunpack.i.l.bf16 %v6592_v21 }
 0x207   : > { %v1301_v27 = vsel %vm504_vm13, %v1300_v4, %v4623_v34  ;;  %v1168_v34 = vsel %vm478_vm0, %v6306_v61, %v4414_v46  ;;  %v4473_v61 = vunpack.i.l.bf16 %v6263_v28 }
 0x208   : > { %v1169_v4 = vsel %vm480_vm1, %v1168_v34, %v4443_v59  ;;  %v1229_v59 = vsel %vm480_vm1, %v1228_v62, %v4444_v23  ;;  %v805_v34 = vsel %vm486_vm4, %v804_v38, %v4044_v20  ;;  %v4248_v23 = vunpack.i.l.bf16 %v6022_v5 }
 0x209   : > { %v1170_v46 = vsel %vm482_vm2, %v1169_v4, %v4469_v41  ;;  %v4223_v41 = vunpack.i.l.bf16 %v8699_v35  ;;  %v4429_v4 = vunpack.i.h.bf16 %v6259_v56  ;;  %v4509_v62 = vunpack.i.h.bf16 %v6390_v51 }
 0x20a   : > { %v4394_v35 = vunpack.i.h.bf16 %v6212_v10  ;;  %v4574_v5 = vunpack.i.h.bf16 %v6500_v31  ;;  %v4214_v38 = vunpack.i.h.bf16 %v8723_v12  ;;  %v4484_v10 = vunpack.i.h.bf16 %v6353_v16 }
 0x20b   : > { %v4613_v12 = vunpack.i.l.bf16 %v6535_v14 }
 0x20c   : > { %v6617_v22 = vpop.permute.xlu1 %4631 }
 0x20d   : > { %v4633_v36 = vunpack.i.l.bf16 %v6617_v22  ;;  %v6628_v2 = vpop.permute.xlu0 %4626 }
 0x20f   : > { %v6635_v48 = vsel %vm8731_vm10, %v1301_v27, %v4633_v36  ;;  %v1112_v36 = vsel %vm486_vm4, %v1111_v63, %v4374_v8  ;;  %v1171_v27 = vsel %vm484_vm3, %v1170_v46, %v4494_v49  ;;  %v8736_v8 = vld [vmem:[#allocation9_spill] sm:$0xff]  ;;  %v4253_v49 = vunpack.i.l.bf16 %v5967_v57  ;;  %v6678_v46 = vpop.permute.xlu2 %4651 }
 0x210   : > { %v1701_v17 = vrot.slane %v6635_v48, 2  ;;  %v4184_v44 = vunpack.i.h.bf16 %v8736_v8  ;;  %v1172_v30 = vsel %vm486_vm4, %v1171_v27, %v4508_v43  ;;  %v1113_v37 = vsel %vm488_vm5, %v1112_v36, %v4399_v15 }
 0x211   : > { %v1230_v43 = vsel %vm482_vm2, %v1229_v59, %v4473_v61  ;;  %v1173_v20 = vsel %vm488_vm5, %v1172_v30, %v4528_v9  ;;  %v1114_v56 = vsel %vm490_vm6, %v1113_v37, %v4429_v4  ;;  %v806_v57 = vsel %vm488_vm5, %v805_v34, %v4223_v41  ;;  %v8737_v61 = vld [vmem:[#allocation29_spill] sm:$0xff]  ;;  %v8738_v30 = vld [vmem:[#allocation14_spill] sm:$0xff] }
 0x212   : > { %v1722_v53 = vsel %vm8734_vm11, %v1701_v17, %v8733_v29  ;;  %v4479_v36 = vunpack.i.h.bf16 %v6359_v42  ;;  %v1115_v15 = vsel %vm492_vm7, %v1114_v56, %v4573_v26  ;;  %v861_v51 = vsel %vm478_vm0, %v8737_v61, %v4248_v23  ;;  %v8739_v23 = vld [vmem:[#allocation41_spill] sm:$0xff] }
 0x213   : > { %1788 = vmatpush.msra.mxu0 %v1722_v53  ;;  %v4219_v53 = vunpack.i.h.bf16 %v8727_v50  ;;  %v1231_v59 = vsel %vm484_vm3, %v1230_v43, %v4394_v35  ;;  %v4593_v9 = vunpack.i.l.bf16 %v6460_v52  ;;  %v4449_v42 = vunpack.i.h.bf16 %v8719_v18  ;;  %v8740_v18 = vld [vmem:[#allocation43_spill] sm:$0xff] }
 0x214   : > { %v6662_v63 = vpop.permute.xlu1 %4636  ;;  %v1232_v31 = vsel %vm486_vm4, %v1231_v59, %v4509_v62  ;;  %v1174_v27 = vsel %vm490_vm6, %v1173_v20, %v4479_v36  ;;  %v4543_v26 = vunpack.i.l.bf16 %v8738_v30  ;;  %v1116_v37 = vsel %vm494_vm8, %v1115_v15, %v4484_v10  ;;  %v8741_v36 = vld [vmem:[#allocation44_spill] sm:$0xff]  ;;  %v8742_v10 = vld [vmem:[#allocation23_spill] sm:$0xff] }
 0x215   : > { %v6672_v29 = vpop.permute.xlu0 %1026  ;;  %v1175_v6 = vsel %vm492_vm7, %v1174_v27, %v4574_v5  ;;  %v807_v16 = vsel %vm490_vm6, %v806_v57, %v4054_v0  ;;  %v862_v34 = vsel %vm480_vm1, %v861_v51, %v4214_v38  ;;  %v1044_v4 = vsel %vm478_vm0, %v8739_v23, %v4334_v11 }
 0x216   : > { %v4578_v43 = vunpack.i.l.bf16 %v6488_v55  ;;  %v4369_v62 = vunpack.i.h.bf16 %v8710_v32  ;;  %v1045_v35 = vsel %vm480_vm1, %v1044_v4, %v8740_v18  ;;  %v1233_v20 = vsel %vm488_vm5, %v1232_v31, %v4449_v42  ;;  %v8743_v31 = vld [vmem:[#allocation42_spill] sm:$0xff]  ;;  %v8746_v4 = vld [vmem:[#allocation45_spill] sm:$0xff] }
 0x217   : > { %v4614_v5 = vunpack.i.h.bf16 %v6535_v14  ;;  %v4523_v0 = vunpack.i.l.bf16 %v8741_v36  ;;  %v1117_v38 = vsel %vm496_vm9, %v1116_v37, %v4613_v12  ;;  %v1176_v57 = vsel %vm494_vm8, %v1175_v6, %v4593_v9  ;;  %v6727_v42 = vpop.permute.xlu2 %4666 }
 0x218   : > { %v4628_v15 = vunpack.i.l.bf16 %v6628_v2  ;;  %v4519_v61 = vunpack.i.h.bf16 %v6419_v25  ;;  %v4594_v32 = vunpack.i.h.bf16 %v6460_v52  ;;  %v1234_v51 = vsel %vm490_vm6, %v1233_v20, %v4543_v26 }
 0x219   : > { %v4638_v11 = vunpack.i.l.bf16 %v6662_v63  ;;  %v4228_v14 = vunpack.i.l.bf16 %v8742_v10  ;;  %v863_v59 = vsel %vm482_vm2, %v862_v34, %v4253_v49  ;;  %v4538_v27 = vunpack.i.l.bf16 %v8743_v31 }
 0x21a   : > { %v1235_v12 = vsel %vm492_vm7, %v1234_v51, %v4578_v43  ;;  %v1046_v9 = vsel %vm482_vm2, %v1045_v35, %v4369_v62  ;;  %v4618_v25 = vunpack.i.l.bf16 %v6598_v58  ;;  %v1177_v52 = vsel %vm496_vm9, %v1176_v57, %v4614_v5 }
 0x21b   : > { %v1118_v26 = vsel %vm8744_vm14, %v1117_v38, %v4519_v61  ;;  %v1047_v37 = vsel %vm484_vm3, %v1046_v9, %v4523_v0  ;;  %v4534_v6 = vunpack.i.h.bf16 %v6431_v19  ;;  %v4629_v49 = vunpack.i.h.bf16 %v6628_v2  ;;  %vm8749_vm14 = vmmov %vm8745_vm12 }
 0x21c   : > { %v6701_v41 = vpop.permute.xlu1 %4646  ;;  %v1178_v34 = vsel %vm8745_vm12, %v1177_v52, %v4628_v15  ;;  %v4419_v23 = vunpack.i.h.bf16 %v8730_v33  ;;  %v4568_v43 = vunpack.i.l.bf16 %v8746_v4  ;;  %v1236_v62 = vsel %vm494_vm8, %v1235_v12, %v4594_v32 }
 0x21d   : > { %v6713_v56 = vpop.permute.xlu0 %954  ;;  %vm8747_vm10 = vcmask 588800   ;;  %v4589_v20 = vunpack.i.h.bf16 %v6530_v47  ;;  %v4599_v5 = vunpack.i.h.bf16 %v6557_v24  ;;  %v4584_v0 = vunpack.i.h.bf16 %v6434_v45 }
 0x21e   : > { %v1179_v18 = vsel %vm8747_vm10, %v1178_v34, %v4638_v11  ;;  %vm8748_vm11 = vmmov %vm8747_vm10  ;;  %v4559_v33 = vunpack.i.h.bf16 %v6471_v39  ;;  %v1048_v38 = vsel %vm486_vm4, %v1047_v37, %v4538_v27  ;;  %v1237_v57 = vsel %vm496_vm9, %v1236_v62, %v4618_v25  ;;  %v5205_v25 = vld [vmem:[%s5358_s22 + $0x30] sm:$0x7f]  ;;  %v5206_v34 = vld [vmem:[%s5358_s22 + $0x38] sm:$0x7f]  ;;  %s8588_s22 = smov 67  }
 0x21f   : > { %v1119_v2 = vsel %vm8748_vm11, %v1118_v26, %v4534_v6  ;;  %v4563_v61 = vunpack.i.l.bf16 %v6465_v3  ;;  %v1238_v47 = vsel %vm8749_vm14, %v1237_v57, %v4629_v49  ;;  %v4648_v24 = vunpack.i.l.bf16 %v6701_v41 }
 0x220   : > { %vm8750_vm12 = vcmask 637952   ;;  %v4544_v51 = vunpack.i.h.bf16 %v8738_v30  ;;  %v4609_v45 = vunpack.i.h.bf16 %v6495_v40  ;;  %v808_v10 = vsel %vm492_vm7, %v807_v16, %v4228_v14  ;;  %v6774_v14 = vpop.permute.xlu2 %4676 }
 0x221   : > { %v1180_v32 = vsel %vm8750_vm12, %v1179_v18, %v4599_v5  ;;  %vm8751_vm10 = vmmov %vm8750_vm12  ;;  %v864_v27 = vsel %vm484_vm3, %v863_v59, %v4219_v53  ;;  %v4634_v12 = vunpack.i.h.bf16 %v6617_v22  ;;  %v921_v30 = vsel %vm478_vm0, %v5205_v25, %v4419_v23  ;;  %v8755_v23 = vld [vmem:[#allocation46_spill] sm:$0xff] }
 0x222   : > { %v1120_v39 = vsel %vm8751_vm10, %v1119_v2, %v4559_v33  ;;  %v4474_v40 = vunpack.i.h.bf16 %v6263_v28  ;;  %v4564_v52 = vunpack.i.h.bf16 %v6465_v3  ;;  %v1239_v26 = vsel %vm8748_vm11, %v1238_v47, %v4584_v0  ;;  %vm8752_vm14 = vmmov %vm8751_vm10 }
 0x223   : > { %v1121_v9 = vsel %vm504_vm13, %v1120_v39, %v4589_v20  ;;  %v922_v16 = vsel %vm480_vm1, %v921_v30, %v4563_v61  ;;  %v1049_v50 = vsel %vm488_vm5, %v1048_v38, %v4568_v43  ;;  %v1240_v22 = vsel %vm8752_vm14, %v1239_v26, %v4648_v24  ;;  %v8757_v38 = vld [vmem:[#allocation34_spill] sm:$0xff]  ;;  %v8759_v24 = vld [vmem:[#allocation12_spill] sm:$0xff]  ;;  %v8762_v30 = vld [vmem:[#allocation31_spill] sm:$0xff] }
 0x224   : > { %v6741_v35 = vpop.permute.xlu1 %4661  ;;  %vm8753_vm12 = vcmask 736256   ;;  %v4514_v59 = vunpack.i.h.bf16 %v6334_v54  ;;  %v1050_v37 = vsel %vm490_vm6, %v1049_v50, %v4544_v51  ;;  %v4624_v28 = vunpack.i.h.bf16 %v6592_v21 }
 0x225   : > { %v4663_v19 = vunpack.i.l.bf16 %v6741_v35  ;;  %v6751_v15 = vpop.permute.xlu0 %4656  ;;  %vm8754_vm10 = vmmov %vm8753_vm12  ;;  %v4529_v49 = vunpack.i.h.bf16 %v6356_v1  ;;  %v981_v43 = vsel %vm478_vm0, %v5206_v34, %v8755_v23  ;;  %v1051_v62 = vsel %vm492_vm7, %v1050_v37, %v6580_v13 }
 0x226   : > { %v6784_v3 = vsel %vm8754_vm10, %v1121_v9, %v4609_v45  ;;  %v923_v18 = vsel %vm482_vm2, %v922_v16, %v4474_v40  ;;  %v982_v21 = vsel %vm480_vm1, %v981_v43, %v4564_v52  ;;  %v1241_v5 = vsel %vm504_vm13, %v1240_v22, %v4624_v28  ;;  %vm8756_vm11 = vmmov %vm8754_vm10  ;;  %v1751_v43 = vld [vmem:[%s8459_s1 + $0x8] sm:$0xff] }
 0x227   : > { %v1181_v11 = vsel %vm504_vm13, %v1180_v32, %v4663_v19  ;;  %v4524_v2 = vunpack.i.h.bf16 %v8741_v36  ;;  %v983_v1 = vsel %vm482_vm2, %v982_v21, %v6521_v7  ;;  %v1695_v33 = vrot.slane %v6784_v3, 4  ;;  %v1753_v3 = vld [vmem:[%s8459_s1 + $0x18] sm:$0xff] }
 0x228   : > { %v1182_v53 = vsel %vm8753_vm12, %v1181_v11, %v4634_v12  ;;  %v4643_v13 = vunpack.i.l.bf16 %v6622_v60  ;;  %v984_v57 = vsel %vm484_vm3, %v983_v1, %v8757_v38  ;;  %v1052_v61 = vsel %vm494_vm8, %v1051_v62, %v4514_v59  ;;  %v8760_v11 = vld [vmem:[#allocation28_spill] sm:$0xff]  ;;  %v8761_v12 = vld [vmem:[#allocation22_spill] sm:$0xff]  ;;  %v6826_v8 = vpop.permute.xlu2 %966 }
 0x229   : > { %v1698_v19 = vrot.slane %v1182_v53, 6  ;;  %vm8758_vm0 = vcmask 1045504   ;;  %v4149_v36 = vunpack.i.h.bf16 %v8759_v24  ;;  %v924_v32 = vsel %vm484_vm3, %v923_v18, %v4524_v2 }
 0x22a   : > { %v1053_v7 = vsel %vm496_vm9, %v1052_v61, %v6672_v29  ;;  %v4658_v51 = vunpack.i.l.bf16 %v6751_v15  ;;  %v865_v45 = vsel %vm486_vm4, %v864_v27, %v4184_v44  ;;  %v4539_v39 = vunpack.i.h.bf16 %v8743_v31 }
 0x22b   : > { %v4549_v48 = vunpack.i.h.bf16 %v8760_v11  ;;  %v4233_v9 = vunpack.i.l.bf16 %v8761_v12  ;;  %v809_v25 = vsel %vm494_vm8, %v808_v10, %v4149_v36  ;;  %v866_v29 = vsel %vm488_vm5, %v865_v45, %v4529_v49 }
 0x22c   : > { %v6781_v6 = vpop.permute.xlu1 %4671  ;;  %v985_v40 = vsel %vm486_vm4, %v984_v57, %v8762_v30  ;;  %v4569_v44 = vunpack.i.h.bf16 %v8746_v4  ;;  %v867_v31 = vsel %vm490_vm6, %v866_v29, %v4643_v13  ;;  %v925_v27 = vsel %vm486_vm4, %v924_v32, %v4539_v39  ;;  %v8765_v4 = vld [vmem:[#allocation27_spill] sm:$0xff]  ;;  %vm8766_vm4 = vmmov %vm8752_vm14  ;;  %v8768_v57 = vld [vmem:[#allocation13_spill] sm:$0xff] }
 0x22d   : > { %v4673_v54 = vunpack.i.l.bf16 %v6781_v6  ;;  %v961_v20 = vpop.permute.xlu0 %960  ;;  %vm8763_vm2 = vcmask 539648   ;;  %v4579_v16 = vunpack.i.h.bf16 %v6488_v55  ;;  %v4644_v10 = vunpack.i.h.bf16 %v6622_v60  ;;  %v8769_v32 = vld [vmem:[#allocation18_spill] sm:$0xff]  ;;  %v8774_v29 = vld [vmem:[#allocation24_spill] sm:$0xff] }
 0x22e   : > { %v1054_v52 = vsel %vm8763_vm2, %v1053_v7, %v4549_v48  ;;  %v4668_v50 = vunpack.i.l.bf16 %v6727_v42  ;;  %vm8764_vm3 = vcmask 588800   ;;  %v810_v53 = vsel %vm496_vm9, %v809_v25, %v4233_v9  ;;  %vm8771_vm12 = vmmov %vm8763_vm2 }
 0x22f   : > { %v1242_v0 = vsel %vm8756_vm11, %v1241_v5, %v4673_v54  ;;  %v1055_v22 = vsel %vm8764_vm3, %v1054_v52, %v4658_v51  ;;  %v4654_v59 = vunpack.i.h.bf16 %v6678_v46  ;;  %v986_v37 = vsel %vm488_vm5, %v985_v40, %v8765_v4  ;;  %vm8778_vm11 = vmmov %vm8764_vm3 }
 0x230   : > { %v1721_v47 = vsel %vm8758_vm0, %v1242_v0, %v1701_v17  ;;  %v1720_v17 = vsel %vm1713_vm15, %v1695_v33, %v1698_v19  ;;  %v4649_v28 = vunpack.i.h.bf16 %v6701_v41  ;;  %v926_v34 = vsel %vm488_vm5, %v925_v27, %v4569_v44  ;;  %vm8767_vm5 = vmmov %vm8754_vm10  ;;  %v8776_v44 = vld [vmem:[#allocation7_spill] sm:$0xff] }
 0x231   : > { %1789 = vmatpush.msra.mxu0 %v1721_v47  ;;  %v868_v55 = vsel %vm492_vm7, %v867_v31, %v4579_v16  ;;  %v987_v60 = vsel %vm490_vm6, %v986_v37, %v6713_v56  ;;  %v4653_v62 = vunpack.i.l.bf16 %v6678_v46  ;;  %v4674_v54 = vunpack.i.h.bf16 %v6781_v6  ;;  %vm8773_vm10 = vmmov %vm8763_vm2 }
 0x232   : > { %v1056_v41 = vsel %vm8766_vm4, %v1055_v22, %v4649_v28  ;;  %vm1762_vm14 = vcmask 179200   ;;  %v927_v18 = vsel %vm490_vm6, %v926_v34, %v4644_v10  ;;  %v4669_v21 = vunpack.i.h.bf16 %v6727_v42  ;;  %v973_v42 = vpop.permute.xlu2 %972  ;;  %vm8779_vm0 = vmmov %vm8764_vm3  ;;  %v8784_v28 = vld [vmem:[#allocation5_spill] sm:$0xff] }
 0x233   : > { %1790 = vmatpush.msra.mxu0 %v1720_v17  ;;  %v869_v5 = vsel %vm494_vm8, %v868_v55, %v4668_v50  ;;  %3911 = vmatmul.msk.f32.vlgmr.msra.gmra.mxu1 %vm1762_vm14, %v1751_v43  ;;  %v4679_v19 = vunpack.i.h.bf16 %v6774_v14  ;;  %v4678_v2 = vunpack.i.l.bf16 %v6774_v14  ;;  %v988_v46 = vsel %vm492_vm7, %v987_v60, %v4654_v59 }
 0x234   : > { %v4687_v26 = vpop.permute.xlu1 %4686  ;;  %v989_v1 = vsel %vm494_vm8, %v988_v46, %v961_v20  ;;  %v4159_v61 = vunpack.i.h.bf16 %v8768_v57  ;;  %v928_v47 = vsel %vm492_vm7, %v927_v18, %v4653_v62  ;;  %v4619_v24 = vunpack.i.h.bf16 %v6598_v58  ;;  %vm8772_vm7 = vmmov %vm8763_vm2  ;;  %v8796_v57 = vld [vmem:[#allocation11_spill] sm:$0xff] }
 0x235   : > { %v6841_v49 = vpop.permute.xlu0 %4681  ;;  %v4689_v0 = vunpack.i.h.bf16 %v4687_v26  ;;  %v4688_v13 = vunpack.i.l.bf16 %v4687_v26  ;;  %v4238_v7 = vunpack.i.l.bf16 %v8769_v32  ;;  %v929_v14 = vsel %vm494_vm8, %v928_v47, %v4669_v21  ;;  %vm8775_vm8 = vmmov %vm8764_vm3  ;;  %v1752_v47 = vld [vmem:[%s8459_s1 + $0x10] sm:$0xff]  ;;  %v1758_v32 = vld [vmem:[%s8459_s1 + $0x40] sm:$0xff] }
 0x236   : > { %v4683_v23 = vunpack.i.l.bf16 %v6841_v49  ;;  %vm8770_vm6 = vcmask 1043456   ;;  %v811_v20 = vsel %vm8771_vm12, %v810_v53, %v4159_v61  ;;  %v930_v45 = vsel %vm496_vm9, %v929_v14, %v4678_v2  ;;  %vm8781_vm3 = vmmov %vm8766_vm4  ;;  %v1759_v61 = vld [vmem:[%s8459_s1 + $0x48] sm:$0xff] }
 0x237   : > { %v990_v39 = vsel %vm496_vm9, %v989_v1, %v4679_v19  ;;  %v870_v11 = vsel %vm496_vm9, %v869_v5, %v4619_v24  ;;  %v931_v17 = vsel %vm8773_vm10, %v930_v45, %v4689_v0  ;;  %v4659_v25 = vunpack.i.h.bf16 %v6751_v15  ;;  %vm8777_vm9 = vmmov %vm8763_vm2  ;;  %v1757_v0 = vld [vmem:[%s8459_s1 + $0x38] sm:$0xff]  ;;  %v1754_v24 = vld [vmem:[%s8459_s1 + $0x20] sm:$0xff] }
 0x238   : > { %v1057_v56 = vsel %vm504_vm13, %v1056_v41, %v4683_v23  ;;  %v871_v58 = vsel %vm8772_vm7, %v870_v11, %v4688_v13  ;;  %v4243_v30 = vunpack.i.l.bf16 %v8774_v29  ;;  %v812_v40 = vsel %vm8775_vm8, %v811_v20, %v4238_v7  ;;  %vm8780_vm2 = vmmov %vm8779_vm0  ;;  %v8794_v13 = vld [vmem:[#allocation16_spill] sm:$0xff] }
 0x239   : > { %v1058_v6 = vsel %vm8767_vm5, %v1057_v56, %v4674_v54  ;;  %v4084_v31 = vunpack.i.h.bf16 %v8776_v44  ;;  %v991_v27 = vsel %vm8777_vm9, %v990_v39, %v6826_v8  ;;  %v932_v26 = vsel %vm8779_vm0, %v931_v17, %v4659_v25  ;;  %vm8782_vm4 = vmmov %vm8781_vm3  ;;  %v1755_v54 = vld [vmem:[%s8459_s1 + $0x28] sm:$0xff] }
 0x23a   : > { %v1692_v38 = vrot.slane %v1058_v6, 2  ;;  %v4664_v10 = vunpack.i.h.bf16 %v6741_v35  ;;  %v4684_v50 = vunpack.i.h.bf16 %v6841_v49  ;;  %vm8783_vm5 = vmmov %vm8781_vm3  ;;  %v979_v8 = vpop.permute.xlu2 %978  ;;  %v4094_v34 = vunpack.i.h.bf16 %v8784_v28  ;;  %v8792_v6 = vld [vmem:[#allocation19_spill] sm:$0xff]  ;;  %v1932_v44 = vld [vmem:[%s8460_s2 + $0x8] sm:$0xff] }
 0x23b   : > { %3912 = vmatmul.msk.f32.gmra.mxu1 %vm1762_vm14, %v1753_v3  ;;  %v813_v53 = vsel %vm8783_vm5, %v812_v40, %v4084_v31  ;;  %vm8786_vm12 = vcmask 736256   ;;  %vm8790_vm9 = vcmask 1045504   ;;  %v5246_v39 = vmov 0   ;;  %v1935_v40 = vld [vmem:[%s8460_s2 + $0x20] sm:$0xff]  ;;  %v1933_v31 = vld [vmem:[%s8460_s2 + $0x10] sm:$0xff] }
 0x23c   : > { %v4692_v36 = vpop.permute.xlu1 %4691  ;;  %v1719_v51 = vsel %vm8770_vm6, %v1692_v38, %v1695_v33  ;;  %v4639_v33 = vunpack.i.h.bf16 %v6662_v63  ;;  %v814_v37 = vsel %vm504_vm13, %v813_v53, %v4243_v30  ;;  %vm8785_vm6 = vmmov %vm8781_vm3  ;;  %4700 = vset.pattern.permute.xlu2 %v5246_v39  ;;  %4702 = vset.pattern.permute.xlu1 %v5246_v39  ;;  %v1934_v30 = vld [vmem:[%s8460_s2 + $0x18] sm:$0xff]  ;;  %vm3814_vm0 = vcmask 7168  }
 0x23d   : > { %v970_v48 = vpop.permute.xlu0 %969  ;;  %1791 = vmatpush.msra.mxu0 %v1719_v51  ;;  %v4694_v12 = vunpack.i.h.bf16 %v4692_v36  ;;  %v4693_v9 = vunpack.i.l.bf16 %v4692_v36  ;;  %vm8787_vm7 = vmmov %vm8786_vm12  ;;  %v1756_v36 = vld [vmem:[%s8459_s1 + $0x30] sm:$0xff]  ;;  %4701 = vset.pattern.permute.xlu0 %v5246_v39 }
 0x23e   : > { %v872_v52 = vsel %vm8778_vm11, %v871_v58, %v4639_v33  ;;  %v992_v16 = vsel %vm8780_vm2, %v991_v27, %v970_v48  ;;  %vm8788_vm10 = vmmov %vm8787_vm7  ;;  %v1931_v27 = vld [vmem:[%s8460_s2] sm:$0xff] }
 0x23f   : > { %v873_v63 = vsel %vm8781_vm3, %v872_v52, %v4693_v9  ;;  %v933_v15 = vsel %vm8782_vm4, %v932_v26, %v4694_v12  ;;  %v993_v55 = vsel %vm8785_vm6, %v992_v16, %v973_v42  ;;  %vm8789_vm8 = vmmov %vm8787_vm7  ;;  %v1750_v42 = vld [vmem:[%s8459_s1] sm:$0xff]  ;;  %v1760_v52 = vld [vmem:[%s8459_s1 + $0x50] sm:$0xff] }
 0x240   : > { %v874_v23 = vsel %vm504_vm13, %v873_v63, %v4664_v10  ;;  %v934_v43 = vsel %vm504_vm13, %v933_v15, %v4684_v50  ;;  %v815_v5 = vsel %vm8789_vm8, %v814_v37, %v4094_v34  ;;  %vm8793_vm11 = vmmov %vm8790_vm9  ;;  %v1761_v26 = vld [vmem:[%s8459_s1 + $0x58] sm:$0xff] }
 0x241   : > { %v1683_v2 = vrot.slane %v815_v5, 2 }
 0x243   : > { %3913 = vmatmul.msk.f32.gmra.mxu1 %vm1762_vm14, %v1755_v54  ;;  %v1715_v1 = vsel %vm8793_vm11, %v8792_v6, %v1683_v2 }
 0x244   : > { %v4697_v22 = vpop.permute.xlu1 %4696 }
 0x245   : > { %v4699_v59 = vunpack.i.h.bf16 %v4697_v22  ;;  %v4698_v4 = vunpack.i.l.bf16 %v4697_v22  ;;  %v976_v60 = vpop.permute.xlu0 %975 }
 0x246   : > { %v994_v35 = vsel %vm504_vm13, %v993_v55, %v976_v60  ;;  %vm8791_vm13 = vcmask 1043456  }
 0x247   : > { %v875_v49 = vsel %vm8786_vm12, %v874_v23, %v4698_v4  ;;  %v935_v62 = vsel %vm8787_vm7, %v934_v43, %v4699_v59  ;;  %v995_v41 = vsel %vm8788_vm10, %v994_v35, %v979_v8 }
 0x248   : > { %v1686_v18 = vrot.slane %v875_v49, 4  ;;  %v1689_v21 = vrot.slane %v935_v62, 6  ;;  %v1718_v56 = vsel %vm8790_vm9, %v995_v41, %v1692_v38  ;;  %v8795_v38 = vld [vmem:[#allocation15_spill] sm:$0xff] }
 0x249   : > { %1792 = vmatpush.msra.mxu0 %v1718_v56 }
 0x24a   : > { %v1717_v19 = vsel %vm1713_vm15, %v1686_v18, %v1689_v21  ;;  %v1716_v46 = vsel %vm8791_vm13, %v1683_v2, %v1686_v18  ;;  %vm2019_vm15 = vcmask 31744  }
 0x24b   : > { %1793 = vmatpush.msra.mxu0 %v1717_v19  ;;  %3914 = vmatmul.msk.f32.gmra.mxu1 %vm1762_vm14, %v1757_v0 }
 0x24d   : > { %1794 = vmatpush.msra.mxu0 %v1716_v46 }
 0x24f   : > { %1795 = vmatpush.msra.mxu0 %v1715_v1 }
 0x251   : > { %1796 = vmatpush.msra.mxu0 %v8794_v13 }
 0x253   : > { %1797 = vmatpush.msra.mxu0 %v8795_v38  ;;  %3915 = vmatmul.msk.f32.gmra.mxu1 %vm1762_vm14, %v1759_v61 }
 0x255   : > { %1798 = vmatpush.msra.mxu0 %v8796_v57 }
 0x256   : > { %1799 = vmatmul.f32.vlgmr.msra.gmra.mxu0 %v1750_v42 }
 0x25b   : > { %3916 = vmatmul.msk.f32.gmra.mxu1 %vm1762_vm14, %v1761_v26  ;;  %vm2024_vm14 = vcmask 64512  }
 0x25e   : > { %1802 = vmatmul.f32.gmra.mxu0 %v1752_v47 }
 0x266   : > { %1805 = vmatmul.f32.gmra.mxu0 %v1754_v24 }
 0x26e   : > { %1808 = vmatmul.f32.gmra.mxu0 %v1756_v36 }
 0x276   : > { %1811 = vmatmul.f32.gmra.mxu0 %v1758_v32 }
 0x27e   : > { %1814 = vmatmul.f32.gmra.mxu0 %v1760_v52 }
 0x2b0   : > { %v1835_v7 = vpop.f32.mrf.mxu1 }
 0x2b8   : > { %v1838_v51 = vpop.f32.mrf.mxu1 }
 0x2c0   : > { %v1841_v45 = vpop.f32.mrf.mxu1 }
 0x2c8   : > { %v1844_v58 = vpop.f32.mrf.mxu1 }
 0x2d0   : > { %v1847_v3 = vpop.f32.mrf.mxu1 }
 0x2d3   : > { %v1800_v14 = vpop.f32.mrf.mxu0 }
 0x2d4   : > { %v1836_v29 = vadd.f32 %v1835_v7, %v1800_v14 }
 0x2db   : > { %v1803_v20 = vpop.f32.mrf.mxu0 }
 0x2dc   : > { %v6943_v12 = vadd.f32 %v1838_v51, %v1803_v20 }
 0x2e3   : > { %v1806_v11 = vpop.f32.mrf.mxu0 }
 0x2e4   : > { %v1842_v48 = vadd.f32 %v1841_v45, %v1806_v11 }
 0x2e6   : > { %1863 = vrot.lane.b32.xlu1 %v1842_v48, %s5247_s24 }
 0x2eb   : > { %v1809_v17 = vpop.f32.mrf.mxu0 }
 0x2ec   : > { %v1845_v9 = vadd.f32 %v1844_v58, %v1809_v17  ;;  %v1850_v17 = vpop.f32.mrf.mxu1 }
 0x2ee   : > { %1861 = vrot.lane.b32.xlu1 %v6943_v12, %s5247_s24  ;;  %1889 = vrot.lane.b32.xlu2 %v1845_v9, %s5248_s25 }
 0x2ef   : > { %1865 = vrot.lane.b32.xlu0 %v1845_v9, %s5247_s24 }
 0x2f3   : > { %v1812_v33 = vpop.f32.mrf.mxu0 }
 0x2f4   : > { %v6949_v25 = vadd.f32 %v1847_v3, %v1812_v33 }
 0x2f6   : > { %1887 = vrot.lane.b32.xlu2 %v1842_v48, %s5248_s25  ;;  %1891 = vrot.lane.b32.xlu1 %v6949_v25, %s5248_s25 }
 0x2f7   : > { %1867 = vrot.lane.b32.xlu0 %v6949_v25, %s5247_s24 }
 0x2fb   : > { %v1815_v58 = vpop.f32.mrf.mxu0 }
 0x2fe   : > { %1859 = vrot.lane.b32.xlu2 %v1836_v29, %s5247_s24  ;;  %1911 = vrot.lane.b32.xlu1 %v1842_v48, %s5249_s26 }
 0x2ff   : > { %1913 = vrot.lane.b32.xlu0 %v1845_v9, %s5249_s26 }
 0x306   : > { %1954 = vperm.xlu2 %4700, %v1934_v30   ;;  %1883 = vrot.lane.b32.xlu1 %v1836_v29, %s5248_s25 }
 0x307   : > { %1885 = vrot.lane.b32.xlu0 %v6943_v12, %s5248_s25 }
 0x30e   : > { %1909 = vrot.lane.b32.xlu2 %v6943_v12, %s5249_s26  ;;  %1959 = vperm.xlu1 %4702, %v1935_v40  }
 0x30f   : > { %1915 = vrot.lane.b32.xlu0 %v6949_v25, %s5249_s26 }
 0x316   : > { %1907 = vrot.lane.b32.xlu2 %v1836_v29, %s5249_s26  ;;  %1944 = vperm.xlu1 %4702, %v1932_v44  }
 0x317   : > { %1949 = vperm.xlu0 %4701, %v1933_v31  }
 0x31e   : > { %1939 = vperm.xlu2 %4700, %v1931_v27  }
 0x348   : > { %v1890_v63 = vpop.permute.xlu2 %1889 }
 0x350   : > { %v1888_v50 = vpop.permute.xlu2 %1887 }
 0x358   : > { %v1864_v16 = vpop.permute.xlu1 %1863  ;;  %v1860_v59 = vpop.permute.xlu2 %1859 }
 0x359   : > { %v1879_v23 = vmax.f32 %v1842_v48, %v1864_v16  ;;  %v1877_v2 = vmax.f32 %v1836_v29, %v1860_v59 }
 0x35b   : > { %v1903_v62 = vmax.f32 %v1879_v23, %v1888_v50 }
 0x360   : > { %v1862_v15 = vpop.permute.xlu1 %1861  ;;  %v1955_v37 = vpop.permute.xlu2 %1954 }
 0x361   : > { %v1866_v10 = vpop.permute.xlu0 %1865  ;;  %v1878_v1 = vmax.f32 %v6943_v12, %v1862_v15 }
 0x362   : > { %v1880_v34 = vmax.f32 %v1845_v9, %v1866_v10  ;;  %v7089_v9 = vadd.f32 %v1850_v17, %v1815_v58 }
 0x364   : > { %v1904_v43 = vmax.f32 %v1880_v34, %v1890_v63 }
 0x368   : > { %v1892_v53 = vpop.permute.xlu1 %1891  ;;  %v1910_v35 = vpop.permute.xlu2 %1909 }
 0x369   : > { %v1868_v22 = vpop.permute.xlu0 %1867 }
 0x36a   : > { %v1881_v46 = vmax.f32 %v6949_v25, %v1868_v22 }
 0x36c   : > { %v1905_v42 = vmax.f32 %v1881_v46, %v1892_v53 }
 0x370   : > { %v1912_v8 = vpop.permute.xlu1 %1911  ;;  %v1908_v6 = vpop.permute.xlu2 %1907 }
 0x371   : > { %v1914_v4 = vpop.permute.xlu0 %1913  ;;  %v1927_v54 = vmax.f32 %v1903_v62, %v1912_v8 }
 0x372   : > { %v1928_v49 = vmax.f32 %v1904_v43, %v1914_v4  ;;  %v1936_v4 = vld [vmem:[%s8460_s2 + $0x28] sm:$0xff] }
 0x374   : > { %v1970_v41 = vadd.f32 %v1955_v37, %v1928_v49 }
 0x376   : > { %v6989_v56 = vmax.f32 %v1970_v41, 0.0 }
 0x378   : > { %v1884_v55 = vpop.permute.xlu1 %1883  ;;  %v1940_v36 = vpop.permute.xlu2 %1939 }
 0x379   : > { %v1886_v28 = vpop.permute.xlu0 %1885  ;;  %v1901_v13 = vmax.f32 %v1877_v2, %v1884_v55 }
 0x37a   : > { %v1902_v38 = vmax.f32 %v1878_v1, %v1886_v28 }
 0x37b   : > { %v1925_v47 = vmax.f32 %v1901_v13, %v1908_v6 }
 0x37c   : > { %v1926_v24 = vmax.f32 %v1902_v38, %v1910_v35 }
 0x37d   : > { %v1967_v14 = vadd.f32 %v1940_v36, %v1925_v47 }
 0x37f   : > { %v7015_v45 = vmax.f32 %v1967_v14, 0.0 }
 0x380   : > { %v1960_v18 = vpop.permute.xlu1 %1959 }
 0x381   : > { %v1916_v60 = vpop.permute.xlu0 %1915 }
 0x382   : > { %v1929_v57 = vmax.f32 %v1905_v42, %v1916_v60 }
 0x384   : > { %v1971_v7 = vadd.f32 %v1960_v18, %v1929_v57 }
 0x386   : > { %v7013_v20 = vmax.f32 %v1971_v7, 0.0 }
 0x388   : > { %v1945_v61 = vpop.permute.xlu1 %1944  ;;  %v7023_v11 = vpack.i.bf16 %v6989_v56, %v7013_v20 }
 0x389   : > { %v1950_v21 = vpop.permute.xlu0 %1949  ;;  %v1968_v32 = vadd.f32 %v1945_v61, %v1926_v24 }
 0x38a   : > { %v1969_v5 = vadd.f32 %v1950_v21, %v1927_v54 }
 0x38b   : > { %v7011_v51 = vmax.f32 %v1968_v32, 0.0 }
 0x38c   : > { %v6991_v19 = vmax.f32 %v1969_v5, 0.0 }
 0x38d   : > { %v7019_v39 = vpack.i.bf16 %v7015_v45, %v7011_v51 }
 0x38e   : > { %v6997_v0 = vpack.i.bf16 %v6991_v19, %v6989_v56  ;;  %v7039_v48 = vpack.i.bf16 %v7011_v51, %v6991_v19 }
 0x390   : > { %4714 = vrot.lane.b32.xlu2 %v6997_v0, %s5250_s13  ;;  %4709 = vrot.lane.b32.xlu1 %v6997_v0, %s5251_s19 }
 0x391   : > { %4704 = vrot.lane.b32.xlu0 %v6997_v0, %s5252_s14 }
 0x398   : > { %4729 = vrot.lane.b32.xlu2 %v6997_v0, %s8631_s29  ;;  %4724 = vrot.lane.b32.xlu1 %v6997_v0, %s8585_s9 }
 0x399   : > { %4719 = vrot.lane.b32.xlu0 %v6997_v0, %s8676_s28 }
 0x3a0   : > { %4744 = vrot.lane.b32.xlu2 %v7019_v39, %s5251_s19  ;;  %4739 = vrot.lane.b32.xlu1 %v7019_v39, %s5252_s14 }
 0x3a1   : > { %4734 = vrot.lane.b32.xlu0 %v7023_v11, %s8584_s20 }
 0x3a8   : > { %4759 = vrot.lane.b32.xlu2 %v7019_v39, %s8676_s28  ;;  %4754 = vrot.lane.b32.xlu1 %v7019_v39, %s5250_s13 }
 0x3a9   : > { %4749 = vrot.lane.b32.xlu0 %v7023_v11, %s8583_s8 }
 0x3b0   : > { %4774 = vrot.lane.b32.xlu2 %v7039_v48, %s8584_s20  ;;  %4769 = vrot.lane.b32.xlu1 %v7019_v39, %s8631_s29  ;;  %s8586_s20 = smov 112  }
 0x3b1   : > { %4764 = vrot.lane.b32.xlu0 %v7019_v39, %s8585_s9  ;;  %s8591_s9 = smov 91  }
 0x3b8   : > { %4789 = vrot.lane.b32.xlu2 %v7039_v48, %s8583_s8  ;;  %4784 = vrot.lane.b32.xlu1 %v6997_v0, %s8590_s11  ;;  %s8592_s8 = smov 64  }
 0x3b9   : > { %4779 = vrot.lane.b32.xlu0 %v6997_v0, %s8653_s18 }
 0x3c0   : > { %4804 = vrot.lane.b32.xlu2 %v6997_v0, %s8587_s17  ;;  %4799 = vrot.lane.b32.xlu1 %v6997_v0, %s8588_s22 }
 0x3c1   : > { %4794 = vrot.lane.b32.xlu0 %v6997_v0, %s8589_s23 }
 0x3c8   : > { %4819 = vrot.lane.b32.xlu2 %v7023_v11, %s8597_s12  ;;  %4814 = vrot.lane.b32.xlu1 %v7023_v11, %s8593_s21 }
 0x3c9   : > { %4809 = vrot.lane.b32.xlu0 %v6997_v0, %s8651_s10 }
 0x3d0   : > { %4834 = vrot.lane.b32.xlu2 %v7019_v39, %s8653_s18  ;;  %4829 = vrot.lane.b32.xlu1 %v7023_v11, %s8592_s8 }
 0x3d1   : > { %4824 = vrot.lane.b32.xlu0 %v7023_v11, %s8586_s20 }
 0x3d8   : > { %4849 = vrot.lane.b32.xlu2 %v7023_v11, %s8591_s9  ;;  %4844 = vrot.lane.b32.xlu1 %v7023_v11, %s8621_s15 }
 0x3d9   : > { %4839 = vrot.lane.b32.xlu0 %v7019_v39, %s8590_s11  ;;  %s8595_s11 = smov 68  }
 0x3e0   : > { %4864 = vrot.lane.b32.xlu2 %v7039_v48, %s8597_s12  ;;  %4859 = vrot.lane.b32.xlu1 %v7039_v48, %s8593_s21 }
 0x3e1   : > { %4854 = vrot.lane.b32.xlu0 %v7019_v39, %s8589_s23  ;;  %s5270_s23 = smov 126  }
 0x3e8   : > { %4879 = vrot.lane.b32.xlu2 %v7019_v39, %s8651_s10  ;;  %4874 = vrot.lane.b32.xlu1 %v7019_v39, %s8587_s17  ;;  %s8594_s17 = smov 88  }
 0x3e9   : > { %4869 = vrot.lane.b32.xlu0 %v7019_v39, %s8588_s22  ;;  %s5268_s22 = smov 8  }
 0x3ea   : > { %v4715_v12 = vpop.permute.xlu2 %4714 }
 0x3eb   : > { %v4716_v63 = vunpack.i.l.bf16 %v4715_v12  ;;  %v4717_v53 = vunpack.i.h.bf16 %v4715_v12 }
 0x3f0   : > { %4889 = vrot.lane.b32.xlu1 %v7039_v48, %s8586_s20  ;;  %1869 = vrot.lane.b32.xlu2 %v7089_v9, %s5247_s24  ;;  %s8596_s24 = smov 108   ;;  %s5266_s20 = smov 80  }
 0x3f1   : > { %4884 = vrot.lane.b32.xlu0 %v7039_v48, %s8592_s8 }
 0x3f2   : > { %v7097_v3 = vpop.permute.xlu2 %4729 }
 0x3f3   : > { %v4732_v35 = vunpack.i.h.bf16 %v7097_v3  ;;  %v4731_v54 = vunpack.i.l.bf16 %v7097_v3 }
 0x3f8   : > { %4899 = vrot.lane.b32.xlu1 %v7039_v48, %s8621_s15  ;;  %1893 = vrot.lane.b32.xlu2 %v7089_v9, %s5248_s25 }
 0x3f9   : > { %4894 = vrot.lane.b32.xlu0 %v7039_v48, %s8591_s9 }
 0x3fa   : > { %v7105_v33 = vpop.permute.xlu2 %4744 }
 0x3fb   : > { %v4747_v41 = vunpack.i.h.bf16 %v7105_v33  ;;  %v4746_v18 = vunpack.i.l.bf16 %v7105_v33 }
 0x400   : > { %4909 = vrot.lane.b32.xlu1 %v6997_v0, %s8611_s30  ;;  %4914 = vrot.lane.b32.xlu2 %v7023_v11, %s8596_s24 }
 0x401   : > { %4904 = vrot.lane.b32.xlu0 %v6997_v0, %s5266_s20 }
 0x402   : > { %v7113_v25 = vpop.permute.xlu2 %4759  ;;  %v4710_v29 = vpop.permute.xlu1 %4709 }
 0x403   : > { %v4705_v30 = vpop.permute.xlu0 %4704  ;;  %v4711_v40 = vunpack.i.l.bf16 %v4710_v29  ;;  %v4712_v31 = vunpack.i.h.bf16 %v4710_v29  ;;  %v4761_v46 = vunpack.i.l.bf16 %v7113_v25  ;;  %v4762_v12 = vunpack.i.h.bf16 %v7113_v25 }
 0x404   : > { %v4706_v44 = vunpack.i.l.bf16 %v4705_v30  ;;  %v4707_v27 = vunpack.i.h.bf16 %v4705_v30 }
 0x406   : > { %v2204_v16 = vsel %vm2019_vm15, %v4706_v44, %v4711_v40  ;;  %v2203_v22 = vsel %vm2019_vm15, %v4707_v27, %v4712_v31 }
 0x407   : > { %v2208_v59 = vsel %vm2024_vm14, %v2204_v16, %v4716_v63  ;;  %v2207_v37 = vsel %vm2024_vm14, %v2203_v22, %v4717_v53 }
 0x408   : > { %4924 = vrot.lane.b32.xlu1 %v7023_v11, %s8594_s17  ;;  %1917 = vrot.lane.b32.xlu2 %v7089_v9, %s5249_s26  ;;  %s5271_s26 = smov 106  }
 0x409   : > { %4919 = vrot.lane.b32.xlu0 %v7023_v11, %s5268_s22 }
 0x40a   : > { %v7121_v52 = vpop.permute.xlu2 %4774  ;;  %v4725_v26 = vpop.permute.xlu1 %4724 }
 0x40b   : > { %v4720_v15 = vpop.permute.xlu0 %4719  ;;  %v4726_v23 = vunpack.i.l.bf16 %v4725_v26  ;;  %v4727_v21 = vunpack.i.h.bf16 %v4725_v26  ;;  %v4777_v16 = vunpack.i.h.bf16 %v7121_v52  ;;  %v4776_v63 = vunpack.i.l.bf16 %v7121_v52 }
 0x40c   : > { %v4722_v10 = vunpack.i.h.bf16 %v4720_v15  ;;  %v4721_v50 = vunpack.i.l.bf16 %v4720_v15 }
 0x40d   : > { %v2445_v61 = vsel %vm2019_vm15, %v4726_v23, %v4731_v54  ;;  %v2444_v58 = vsel %vm2019_vm15, %v4727_v21, %v4732_v35 }
 0x40e   : > { %v7130_v8 = vsel %vm480_vm1, %v2208_v59, %v4721_v50  ;;  %v7137_v28 = vsel %vm480_vm1, %v2207_v37, %v4722_v10 }
 0x40f   : > { %2875 = vmatpush.msra.mxu2 %v7130_v8 }
 0x410   : > { %4934 = vrot.lane.b32.xlu1 %v7023_v11, %s8595_s11  ;;  %1964 = vperm.xlu2 %4700, %v1936_v4  }
 0x411   : > { %4929 = vrot.lane.b32.xlu0 %v7023_v11, %s5248_s25  ;;  %2876 = vmatpush.msra.mxu2 %v7137_v28 }
 0x412   : > { %v7142_v34 = vpop.permute.xlu2 %4789  ;;  %v4740_v55 = vpop.permute.xlu1 %4739 }
 0x413   : > { %v4735_v60 = vpop.permute.xlu0 %4734  ;;  %v4741_v43 = vunpack.i.l.bf16 %v4740_v55  ;;  %v4742_v49 = vunpack.i.h.bf16 %v4740_v55  ;;  %v4791_v15 = vunpack.i.l.bf16 %v7142_v34  ;;  %v4792_v59 = vunpack.i.h.bf16 %v7142_v34 }
 0x414   : > { %v4736_v62 = vunpack.i.l.bf16 %v4735_v60  ;;  %v4737_v6 = vunpack.i.h.bf16 %v4735_v60 }
 0x415   : > { %v2202_v47 = vsel %vm2019_vm15, %v4741_v43, %v4746_v18  ;;  %v2201_v32 = vsel %vm2019_vm15, %v4742_v49, %v4747_v41 }
 0x416   : > { %v2449_v24 = vsel %vm2024_vm14, %v2445_v61, %v4736_v62  ;;  %v2448_v3 = vsel %vm2024_vm14, %v2444_v58, %v4737_v6 }
 0x418   : > { %2033 = vrot.lane.b32.xlu1 %v7015_v45, %s8593_s21  ;;  %2045 = vrot.lane.b32.xlu2 %v7015_v45, %s8597_s12  ;;  %s5274_s21 = smov 114   ;;  %s5278_s12 = smov 10  }
 0x419   : > { %4939 = vrot.lane.b32.xlu0 %v7039_v48, %s8596_s24 }
 0x41a   : > { %v7154_v5 = vpop.permute.xlu2 %4804  ;;  %v4755_v2 = vpop.permute.xlu1 %4754 }
 0x41b   : > { %v4757_v1 = vunpack.i.h.bf16 %v4755_v2  ;;  %v4756_v13 = vunpack.i.l.bf16 %v4755_v2  ;;  %v4750_v38 = vpop.permute.xlu0 %4749 }
 0x41c   : > { %v4752_v42 = vunpack.i.h.bf16 %v4750_v38  ;;  %v4751_v57 = vunpack.i.l.bf16 %v4750_v38 }
 0x41d   : > { %v2206_v36 = vsel %vm2024_vm14, %v2202_v47, %v4756_v13  ;;  %v2205_v17 = vsel %vm2024_vm14, %v2201_v32, %v4757_v1 }
 0x41e   : > { %v7163_v7 = vsel %vm480_vm1, %v2449_v24, %v4751_v57  ;;  %v7166_v14 = vsel %vm480_vm1, %v2206_v36, %v4761_v46  ;;  %v7177_v33 = vsel %vm480_vm1, %v2448_v3, %v4752_v42  ;;  %v2209_v25 = vsel %vm480_vm1, %v2205_v17, %v4762_v12 }
 0x41f   : > { %2916 = vmatpush.msra.mxu3 %v7163_v7  ;;  %2877 = vmatpush.msra.mxu2 %v7166_v14 }
 0x420   : > { %4949 = vrot.lane.b32.xlu1 %v7019_v39, %s8611_s30  ;;  %4954 = vrot.lane.b32.xlu2 %v7039_v48, %s8594_s17 }
 0x421   : > { %4944 = vrot.lane.b32.xlu0 %v7019_v39, %s5266_s20  ;;  %2917 = vmatpush.msra.mxu3 %v7177_v33 }
 0x422   : > { %2878 = vmatpush.msra.mxu2 %v2209_v25  ;;  %v7185_v29 = vpop.permute.xlu2 %4819  ;;  %v4770_v30 = vpop.permute.xlu1 %4769 }
 0x423   : > { %v4772_v40 = vunpack.i.h.bf16 %v4770_v30  ;;  %v4771_v44 = vunpack.i.l.bf16 %v4770_v30  ;;  %v4765_v31 = vpop.permute.xlu0 %4764  ;;  %v4821_v32 = vunpack.i.l.bf16 %v7185_v29  ;;  %v4822_v12 = vunpack.i.h.bf16 %v7185_v29 }
 0x424   : > { %v4767_v27 = vunpack.i.h.bf16 %v4765_v31  ;;  %v4766_v26 = vunpack.i.l.bf16 %v4765_v31 }
 0x426   : > { %v2443_v10 = vsel %vm2019_vm15, %v4766_v26, %v4771_v44  ;;  %v2442_v50 = vsel %vm2019_vm15, %v4767_v27, %v4772_v40 }
 0x427   : > { %v2447_v22 = vsel %vm2024_vm14, %v2443_v10, %v4776_v63  ;;  %v2446_v53 = vsel %vm2024_vm14, %v2442_v50, %v4777_v16  ;;  %v4806_v10 = vunpack.i.l.bf16 %v7154_v5 }
 0x428   : > { %4959 = vrot.lane.b32.xlu1 %v7039_v48, %s5268_s22  ;;  %v7198_v4 = vsel %vm480_vm1, %v2447_v22, %v4791_v15  ;;  %4964 = vrot.lane.b32.xlu2 %v7039_v48, %s8595_s11  ;;  %v2450_v55 = vsel %vm480_vm1, %v2446_v53, %v4792_v59 }
 0x429   : > { %2057 = vrot.lane.b32.xlu0 %v7015_v45, %s8592_s8  ;;  %2918 = vmatpush.msra.mxu3 %v7198_v4  ;;  %s5273_s8 = smov 86  }
 0x42a   : > { %v7205_v52 = vpop.permute.xlu2 %4834  ;;  %v4785_v37 = vpop.permute.xlu1 %4784 }
 0x42b   : > { %v4780_v34 = vpop.permute.xlu0 %4779  ;;  %2919 = vmatpush.msra.mxu3 %v2450_v55  ;;  %v4787_v60 = vunpack.i.h.bf16 %v4785_v37  ;;  %v4786_v23 = vunpack.i.l.bf16 %v4785_v37  ;;  %v4807_v55 = vunpack.i.h.bf16 %v7154_v5 }
 0x42c   : > { %v4782_v43 = vunpack.i.h.bf16 %v4780_v34  ;;  %v4781_v35 = vunpack.i.l.bf16 %v4780_v34 }
 0x42e   : > { %v2144_v46 = vsel %vm2019_vm15, %v4781_v35, %v4786_v23  ;;  %v2143_v6 = vsel %vm2019_vm15, %v4782_v43, %v4787_v60 }
 0x430   : > { %4969 = vrot.lane.b32.xlu1 %v7039_v48, %s5248_s25  ;;  %4974 = vrot.lane.b32.xlu2 %v6997_v0, %s5270_s23 }
 0x431   : > { %2069 = vrot.lane.b32.xlu0 %v7015_v45, %s8591_s9  ;;  %s5272_s9 = smov 58  }
 0x432   : > { %v4850_v49 = vpop.permute.xlu2 %4849  ;;  %v4800_v62 = vpop.permute.xlu1 %4799 }
 0x433   : > { %v4801_v54 = vunpack.i.l.bf16 %v4800_v62  ;;  %v4795_v41 = vpop.permute.xlu0 %4794  ;;  %v4802_v2 = vunpack.i.h.bf16 %v4800_v62  ;;  %v4851_v40 = vunpack.i.l.bf16 %v4850_v49  ;;  %v4852_v63 = vunpack.i.h.bf16 %v4850_v49 }
 0x434   : > { %v4797_v18 = vunpack.i.h.bf16 %v4795_v41  ;;  %v4796_v21 = vunpack.i.l.bf16 %v4795_v41 }
 0x436   : > { %v2148_v1 = vsel %vm2024_vm14, %v2144_v46, %v4796_v21  ;;  %v2147_v13 = vsel %vm2024_vm14, %v2143_v6, %v4797_v18  ;;  %v4836_v6 = vunpack.i.l.bf16 %v7205_v52 }
 0x437   : > { %v7219_v38 = vsel %vm480_vm1, %v2148_v1, %v4801_v54  ;;  %v7229_v42 = vsel %vm480_vm1, %v2147_v13, %v4802_v2 }
 0x438   : > { %2879 = vmatpush.msra.mxu2 %v7219_v38  ;;  %4984 = vrot.lane.b32.xlu1 %v6997_v0, %s8670_s16 }
 0x439   : > { %4979 = vrot.lane.b32.xlu0 %v6997_v0, %s5271_s26  ;;  %4989 = vrot.lane.b32.xlu2 %v6997_v0, %s5272_s9 }
 0x43a   : > { %2880 = vmatpush.msra.mxu2 %v7229_v42  ;;  %v7232_v57 = vpop.permute.xlu2 %4864  ;;  %v4815_v61 = vpop.permute.xlu1 %4814 }
 0x43b   : > { %v4810_v47 = vpop.permute.xlu0 %4809  ;;  %v4816_v24 = vunpack.i.l.bf16 %v4815_v61  ;;  %v4817_v36 = vunpack.i.h.bf16 %v4815_v61 }
 0x43c   : > { %v4811_v15 = vunpack.i.l.bf16 %v4810_v47  ;;  %v4812_v50 = vunpack.i.h.bf16 %v4810_v47 }
 0x43d   : > { %v2598_v44 = vsel %vm2019_vm15, %v4816_v24, %v4821_v32  ;;  %v2084_v27 = vsel %vm2019_vm15, %v4817_v36, %v4822_v12  ;;  %v4837_v36 = vunpack.i.h.bf16 %v7205_v52 }
 0x43e   : > { %v2385_v43 = vsel %vm2019_vm15, %v4806_v10, %v4811_v15  ;;  %v2384_v62 = vsel %vm2019_vm15, %v4807_v55, %v4812_v50 }
 0x440   : > { %4999 = vrot.lane.b32.xlu1 %v7023_v11, %s8614_s27 }
 0x441   : > { %4994 = vrot.lane.b32.xlu0 %v6997_v0, %s5273_s8  ;;  %5004 = vrot.lane.b32.xlu2 %v6997_v0, %s8640_s0 }
 0x442   : > { %v7241_v58 = vpop.permute.xlu2 %4879  ;;  %v4830_v17 = vpop.permute.xlu1 %4829 }
 0x443   : > { %v4832_v3 = vunpack.i.h.bf16 %v4830_v17  ;;  %v4831_v25 = vunpack.i.l.bf16 %v4830_v17  ;;  %v4825_v30 = vpop.permute.xlu0 %4824  ;;  %v4881_v10 = vunpack.i.l.bf16 %v7241_v58  ;;  %v4882_v55 = vunpack.i.h.bf16 %v7241_v58 }
 0x444   : > { %v4826_v29 = vunpack.i.l.bf16 %v4825_v30  ;;  %v4827_v53 = vunpack.i.h.bf16 %v4825_v30 }
 0x445   : > { %v2599_v31 = vsel %vm2024_vm14, %v2598_v44, %v4831_v25  ;;  %v2088_v16 = vsel %vm2024_vm14, %v2084_v27, %v4832_v3 }
 0x446   : > { %v7248_v26 = vsel %vm480_vm1, %v2599_v31, %v4851_v40  ;;  %v7260_v22 = vsel %vm480_vm1, %v2088_v16, %v4852_v63  ;;  %v2389_v35 = vsel %vm2024_vm14, %v2385_v43, %v4826_v29  ;;  %v2388_v54 = vsel %vm2024_vm14, %v2384_v62, %v4827_v53 }
 0x447   : > { %2957 = vmatpush.msrb.mxu1 %v7248_v26  ;;  %v4867_v29 = vunpack.i.h.bf16 %v7232_v57 }
 0x448   : > { %1983 = vrot.lane.b32.xlu1 %v7015_v45, %s8596_s24  ;;  %s5277_s24 = smov 111  }
 0x449   : > { %5009 = vrot.lane.b32.xlu0 %v7023_v11, %s5274_s21  ;;  %5014 = vrot.lane.b32.xlu2 %v7019_v39, %s5270_s23 }
 0x44a   : > { %2958 = vmatpush.msrb.mxu1 %v7260_v22  ;;  %v4845_v59 = vpop.permute.xlu1 %4844  ;;  %v7263_v37 = vpop.permute.xlu2 %1869 }
 0x44b   : > { %v4847_v34 = vunpack.i.h.bf16 %v4845_v59  ;;  %v4846_v60 = vunpack.i.l.bf16 %v4845_v59  ;;  %v4840_v23 = vpop.permute.xlu0 %4839  ;;  %v4866_v59 = vunpack.i.l.bf16 %v7232_v57 }
 0x44c   : > { %v4841_v2 = vunpack.i.l.bf16 %v4840_v23  ;;  %v4842_v1 = vunpack.i.h.bf16 %v4840_v23 }
 0x44d   : > { %v7269_v49 = vsel %vm480_vm1, %v2389_v35, %v4846_v60  ;;  %v7275_v41 = vsel %vm480_vm1, %v2388_v54, %v4847_v34 }
 0x44e   : > { %2920 = vmatpush.msra.mxu3 %v7269_v49  ;;  %v2142_v12 = vsel %vm2019_vm15, %v4836_v6, %v4841_v2  ;;  %v2141_v30 = vsel %vm2019_vm15, %v4837_v36, %v4842_v1 }
 0x450   : > { %5024 = vrot.lane.b32.xlu1 %v7019_v39, %s8670_s16  ;;  %2921 = vmatpush.msra.mxu3 %v7275_v41 }
 0x451   : > { %5019 = vrot.lane.b32.xlu0 %v7019_v39, %s5271_s26  ;;  %5029 = vrot.lane.b32.xlu2 %v7019_v39, %s5272_s9 }
 0x452   : > { %v7284_v5 = vpop.permute.xlu1 %4859  ;;  %v7286_v18 = vpop.permute.xlu2 %1893 }
 0x453   : > { %v4855_v21 = vpop.permute.xlu0 %4854  ;;  %v4861_v63 = vunpack.i.l.bf16 %v7284_v5  ;;  %v4862_v34 = vunpack.i.h.bf16 %v7284_v5 }
 0x454   : > { %v4856_v46 = vunpack.i.l.bf16 %v4855_v21  ;;  %v4857_v47 = vunpack.i.h.bf16 %v4855_v21 }
 0x455   : > { %v2083_v57 = vsel %vm2019_vm15, %v4861_v63, %v4866_v59 }
 0x456   : > { %v2146_v3 = vsel %vm2024_vm14, %v2142_v12, %v4856_v46  ;;  %v2145_v40 = vsel %vm2024_vm14, %v2141_v30, %v4857_v47  ;;  %v2082_v47 = vsel %vm2019_vm15, %v4862_v34, %v4867_v29 }
 0x458   : > { %5034 = vrot.lane.b32.xlu1 %v7019_v39, %s5273_s8 }
 0x459   : > { %1995 = vrot.lane.b32.xlu0 %v7015_v45, %s8594_s17  ;;  %5039 = vrot.lane.b32.xlu2 %v7039_v48, %s8614_s27  ;;  %s5275_s17 = smov 82  }
 0x45a   : > { %v4875_v13 = vpop.permute.xlu1 %4874  ;;  %v7295_v61 = vpop.permute.xlu2 %4914 }
 0x45b   : > { %v4870_v24 = vpop.permute.xlu0 %4869  ;;  %v4876_v16 = vunpack.i.l.bf16 %v4875_v13  ;;  %v4877_v50 = vunpack.i.h.bf16 %v4875_v13 }
 0x45c   : > { %v4872_v32 = vunpack.i.h.bf16 %v4870_v24  ;;  %v4871_v17 = vunpack.i.l.bf16 %v4870_v24 }
 0x45d   : > { %v2383_v2 = vsel %vm2019_vm15, %v4876_v16, %v4881_v10  ;;  %v2382_v1 = vsel %vm2019_vm15, %v4877_v50, %v4882_v55 }
 0x45e   : > { %v7301_v25 = vsel %vm480_vm1, %v2146_v3, %v4871_v17  ;;  %v2149_v52 = vsel %vm480_vm1, %v2145_v40, %v4872_v32  ;;  %v1882_v40 = vmax.f32 %v7089_v9, %v7263_v37  ;;  %v4916_v9 = vunpack.i.l.bf16 %v7295_v61 }
 0x45f   : > { %2881 = vmatpush.msra.mxu2 %v7301_v25 }
 0x460   : > { %5044 = vrot.lane.b32.xlu1 %v7019_v39, %s8640_s0 }
 0x461   : > { %2007 = vrot.lane.b32.xlu0 %v7015_v45, %s8595_s11  ;;  %2882 = vmatpush.msra.mxu2 %v2149_v52  ;;  %s5276_s11 = smov 55   ;;  %v1906_v52 = vmax.f32 %v1882_v40, %v7286_v18 }
 0x462   : > { %5049 = vrot.lane.b32.xlu2 %v7039_v48, %s5274_s21  ;;  %v4890_v44 = vpop.permute.xlu1 %4889  ;;  %v1918_v31 = vpop.permute.xlu2 %1917 }
 0x463   : > { %v4885_v27 = vpop.permute.xlu0 %4884  ;;  %2883 = vmatpush.msra.mxu2 %v7260_v22  ;;  %v4891_v15 = vunpack.i.l.bf16 %v4890_v44  ;;  %v4892_v60 = vunpack.i.h.bf16 %v4890_v44  ;;  %v1930_v44 = vmax.f32 %v1906_v52, %v1918_v31 }
 0x464   : > { %v4886_v53 = vunpack.i.l.bf16 %v4885_v27  ;;  %v4887_v35 = vunpack.i.h.bf16 %v4885_v27 }
 0x465   : > { %v2387_v58 = vsel %vm2024_vm14, %v2383_v2, %v4891_v15  ;;  %v2386_v24 = vsel %vm2024_vm14, %v2382_v1, %v4892_v60  ;;  %v4917_v15 = vunpack.i.h.bf16 %v7295_v61 }
 0x466   : > { %v2087_v5 = vsel %vm2024_vm14, %v2083_v57, %v4886_v53  ;;  %v2086_v36 = vsel %vm2024_vm14, %v2082_v47, %v4887_v35 }
 0x468   : > { %5059 = vrot.lane.b32.xlu1 %v6997_v0, %s5275_s17 }
 0x469   : > { %5054 = vrot.lane.b32.xlu0 %v6997_v0, %s5276_s11 }
 0x46a   : > { %5064 = vrot.lane.b32.xlu2 %v7023_v11, %s5277_s24  ;;  %v4900_v23 = vpop.permute.xlu1 %4899  ;;  %v1965_v43 = vpop.permute.xlu2 %1964 }
 0x46b   : > { %v4902_v62 = vunpack.i.h.bf16 %v4900_v23  ;;  %v4901_v54 = vunpack.i.l.bf16 %v4900_v23  ;;  %v4895_v21 = vpop.permute.xlu0 %4894 }
 0x46c   : > { %v4897_v0 = vunpack.i.h.bf16 %v4895_v21  ;;  %v4896_v46 = vunpack.i.l.bf16 %v4895_v21 }
 0x46d   : > { %v7331_v6 = vsel %vm480_vm1, %v2387_v58, %v4901_v54  ;;  %v2390_v32 = vsel %vm480_vm1, %v2386_v24, %v4902_v62 }
 0x46e   : > { %v7335_v13 = vsel %vm480_vm1, %v2087_v5, %v4896_v46  ;;  %2922 = vmatpush.msra.mxu3 %v7331_v6  ;;  %v2090_v17 = vsel %vm480_vm1, %v2086_v36, %v4897_v0  ;;  %v2023_v0 = vsel %vm2019_vm15, %v6989_v56, %v4917_v15 }
 0x46f   : > { %2884 = vmatpush.msra.mxu2 %v7335_v13  ;;  %2959 = vmatpush.msrb.mxu1 %v7335_v13 }
 0x470   : > { %5074 = vrot.lane.b32.xlu1 %v7019_v39, %s5276_s11  ;;  %2923 = vmatpush.msra.mxu3 %v2390_v32 }
 0x471   : > { %5069 = vrot.lane.b32.xlu0 %v7023_v11, %s5278_s12  ;;  %2885 = vmatpush.msra.mxu2 %v2090_v17  ;;  %v1972_v11 = vadd.f32 %v1965_v43, %v1930_v44  ;;  %v2583_v43 = vsel %vm2019_vm15, %v7013_v20, %v4916_v9 }
 0x472   : > { %2960 = vmatpush.msrb.mxu1 %v2090_v17  ;;  %5079 = vrot.lane.b32.xlu2 %v7019_v39, %s5275_s17  ;;  %v4910_v12 = vpop.permute.xlu1 %4909  ;;  %v7351_v3 = vpop.permute.xlu2 %2045 }
 0x473   : > { %v4905_v30 = vpop.permute.xlu0 %4904  ;;  %v7362_v63 = vmax.f32 %v1972_v11, 0.0  ;;  %v4911_v37 = vunpack.i.l.bf16 %v4910_v12  ;;  %v4912_v29 = vunpack.i.h.bf16 %v4910_v12 }
 0x474   : > { %v4906_v18 = vunpack.i.l.bf16 %v4905_v30  ;;  %v4907_v10 = vunpack.i.h.bf16 %v4905_v30 }
 0x475   : > { %v7389_v58 = vpack.i.bf16 %v7013_v20, %v7362_v63 }
 0x476   : > { %v2325_v62 = vsel %vm2019_vm15, %v4906_v18, %v4911_v37  ;;  %v2324_v57 = vsel %vm2019_vm15, %v4907_v10, %v4912_v29 }
 0x478   : > { %5089 = vrot.lane.b32.xlu1 %v7039_v48, %s5278_s12 }
 0x479   : > { %5084 = vrot.lane.b32.xlu0 %v7039_v48, %s5277_s24 }
 0x47a   : > { %2707 = vrot.lane.b32.xlu2 %v7013_v20, %s8670_s16  ;;  %v4925_v39 = vpop.permute.xlu1 %4924  ;;  %v4955_v27 = vpop.permute.xlu2 %4954  ;;  %s8799_s16 = smov 67  }
 0x47b   : > { %v4920_v16 = vpop.permute.xlu0 %4919  ;;  %v4926_v31 = vunpack.i.l.bf16 %v4925_v39  ;;  %v4927_v50 = vunpack.i.h.bf16 %v4925_v39  ;;  %v4957_v30 = vunpack.i.h.bf16 %v4955_v27  ;;  %v4956_v40 = vunpack.i.l.bf16 %v4955_v27 }
 0x47c   : > { %v4921_v48 = vunpack.i.l.bf16 %v4920_v16  ;;  %v4922_v55 = vunpack.i.h.bf16 %v4920_v16 }
 0x47d   : > { %v2584_v54 = vsel %vm2024_vm14, %v2583_v43, %v4926_v31  ;;  %v2028_v5 = vsel %vm2024_vm14, %v2023_v0, %v4927_v50 }
 0x47e   : > { %v2329_v21 = vsel %vm2024_vm14, %v2325_v62, %v4921_v48  ;;  %v2328_v1 = vsel %vm2024_vm14, %v2324_v57, %v4922_v55 }
 0x480   : > { %2713 = vrot.lane.b32.xlu1 %v7362_v63, %s8614_s27  ;;  %s8797_s27 = smov 107  }
 0x481   : > { %2710 = vrot.lane.b32.xlu0 %v7013_v20, %s5272_s9  ;;  %s8805_s9 = smov 64  }
 0x482   : > { %2716 = vrot.lane.b32.xlu2 %v7362_v63, %s5274_s21  ;;  %v4935_v53 = vpop.permute.xlu1 %4934  ;;  %v4965_v59 = vpop.permute.xlu2 %4964 }
 0x483   : > { %v4937_v34 = vunpack.i.h.bf16 %v4935_v53  ;;  %v4936_v60 = vunpack.i.l.bf16 %v4935_v53  ;;  %v4930_v23 = vpop.permute.xlu0 %4929  ;;  %v4966_v52 = vunpack.i.l.bf16 %v4965_v59  ;;  %v4967_v9 = vunpack.i.h.bf16 %v4965_v59 }
 0x484   : > { %v4932_v61 = vunpack.i.h.bf16 %v4930_v23  ;;  %v4931_v35 = vunpack.i.l.bf16 %v4930_v23 }
 0x485   : > { %v7378_v2 = vsel %vm480_vm1, %v2584_v54, %v4936_v60  ;;  %v7395_v47 = vsel %vm480_vm1, %v2028_v5, %v4937_v34 }
 0x486   : > { %v7383_v46 = vsel %vm480_vm1, %v2329_v21, %v4931_v35  ;;  %2961 = vmatpush.msrb.mxu1 %v7378_v2  ;;  %v7398_v56 = vsel %vm480_vm1, %v2328_v1, %v4932_v61 }
 0x487   : > { %2924 = vmatpush.msra.mxu3 %v7383_v46 }
 0x488   : > { %5099 = vrot.lane.b32.xlu1 %v7389_v58, %s5251_s19  ;;  %2962 = vmatpush.msrb.mxu1 %v7395_v47  ;;  %s8802_s19 = smov 115  }
 0x489   : > { %2925 = vmatpush.msra.mxu3 %v7398_v56  ;;  %5094 = vrot.lane.b32.xlu0 %v7389_v58, %s5252_s14  ;;  %s8804_s14 = smov 104  }
 0x48a   : > { %5104 = vrot.lane.b32.xlu2 %v7389_v58, %s5250_s13  ;;  %v2034_v24 = vpop.permute.xlu1 %2033  ;;  %v7408_v36 = vpop.permute.xlu2 %4974  ;;  %s8801_s13 = smov 7  }
 0x48b   : > { %v4940_v32 = vpop.permute.xlu0 %4939  ;;  %v2081_v55 = vsel %vm2019_vm15, %v2034_v24, %v7351_v3 }
 0x48c   : > { %v4942_v17 = vunpack.i.h.bf16 %v4940_v32  ;;  %v4941_v12 = vunpack.i.l.bf16 %v4940_v32 }
 0x48e   : > { %v2022_v44 = vsel %vm2019_vm15, %v6991_v19, %v4941_v12  ;;  %v2021_v11 = vsel %vm2019_vm15, %v7011_v51, %v4942_v17 }
 0x48f   : > { %v2027_v39 = vsel %vm2024_vm14, %v2022_v44, %v4956_v40  ;;  %v2026_v16 = vsel %vm2024_vm14, %v2021_v11, %v4957_v30  ;;  %v4976_v44 = vunpack.i.l.bf16 %v7408_v36 }
 0x490   : > { %2649 = vrot.lane.b32.xlu1 %v7013_v20, %s8611_s30  ;;  %v7419_v37 = vsel %vm480_vm1, %v2027_v39, %v4966_v52  ;;  %v2030_v51 = vsel %vm480_vm1, %v2026_v16, %v4967_v9  ;;  %s8798_s30 = smov 87   ;;  %v4977_v52 = vunpack.i.h.bf16 %v7408_v36 }
 0x491   : > { %2646 = vrot.lane.b32.xlu0 %v7013_v20, %s5266_s20  ;;  %2963 = vmatpush.msrb.mxu1 %v7419_v37  ;;  %s8806_s20 = smov 56  }
 0x492   : > { %5109 = vrot.lane.b32.xlu2 %v7389_v58, %s8676_s28  ;;  %v4950_v19 = vpop.permute.xlu1 %4949  ;;  %s8800_s28 = smov 79  }
 0x493   : > { %v4945_v27 = vpop.permute.xlu0 %4944  ;;  %v7427_v18 = vpop.permute.xlu2 %4989  ;;  %2964 = vmatpush.msrb.mxu1 %v2030_v51  ;;  %v4951_v29 = vunpack.i.l.bf16 %v4950_v19  ;;  %v4952_v53 = vunpack.i.h.bf16 %v4950_v19 }
 0x494   : > { %v4946_v10 = vunpack.i.l.bf16 %v4945_v27  ;;  %v4947_v59 = vunpack.i.h.bf16 %v4945_v27 }
 0x496   : > { %v2323_v54 = vsel %vm2019_vm15, %v4946_v10, %v4951_v29  ;;  %v2322_v57 = vsel %vm2019_vm15, %v4947_v59, %v4952_v53  ;;  %v4991_v53 = vunpack.i.l.bf16 %v7427_v18 }
 0x498   : > { %2656 = vrot.lane.b32.xlu1 %v7362_v63, %s5248_s25 }
 0x499   : > { %2653 = vrot.lane.b32.xlu0 %v7362_v63, %s5268_s22  ;;  %s8810_s22 = smov 68  }
 0x49a   : > { %2692 = vrot.lane.b32.xlu2 %v7013_v20, %s5276_s11  ;;  %v4960_v31 = vpop.permute.xlu1 %4959  ;;  %s8807_s11 = smov 91  }
 0x49b   : > { %v2058_v15 = vpop.permute.xlu0 %2057  ;;  %v5005_v48 = vpop.permute.xlu2 %5004  ;;  %v4961_v50 = vunpack.i.l.bf16 %v4960_v31  ;;  %v4962_v34 = vunpack.i.h.bf16 %v4960_v31 }
 0x49c   : > { %v2085_v23 = vsel %vm2024_vm14, %v2081_v55, %v2058_v15  ;;  %v5006_v19 = vunpack.i.l.bf16 %v5005_v48  ;;  %v5007_v29 = vunpack.i.h.bf16 %v5005_v48 }
 0x49d   : > { %v2327_v0 = vsel %vm2024_vm14, %v2323_v54, %v4961_v50  ;;  %v2326_v5 = vsel %vm2024_vm14, %v2322_v57, %v4962_v34 }
 0x4a0   : > { %2698 = vrot.lane.b32.xlu1 %v7362_v63, %s5277_s24 }
 0x4a1   : > { %2695 = vrot.lane.b32.xlu0 %v7013_v20, %s5275_s17  ;;  %s8809_s17 = smov 108  }
 0x4a2   : > { %2701 = vrot.lane.b32.xlu2 %v7362_v63, %s5278_s12  ;;  %v4970_v60 = vpop.permute.xlu1 %4969  ;;  %s8811_s12 = smov 88  }
 0x4a3   : > { %v4972_v43 = vunpack.i.h.bf16 %v4970_v60  ;;  %v4971_v61 = vunpack.i.l.bf16 %v4970_v60  ;;  %v2070_v35 = vpop.permute.xlu0 %2069  ;;  %v7444_v62 = vpop.permute.xlu2 %5014  ;;  %v4992_v60 = vunpack.i.h.bf16 %v7427_v18 }
 0x4a4   : > { %v2089_v21 = vsel %vm480_vm1, %v2085_v23, %v2070_v35 }
 0x4a5   : > { %2886 = vmatpush.msra.mxu2 %v2089_v21  ;;  %v7450_v3 = vsel %vm480_vm1, %v2327_v0, %v4971_v61  ;;  %v2330_v1 = vsel %vm480_vm1, %v2326_v5, %v4972_v43 }
 0x4a6   : > { %2926 = vmatpush.msra.mxu3 %v7450_v3 }
 0x4a7   : > { %2887 = vmatpush.msra.mxu2 %v7395_v47 }
 0x4a8   : > { %2927 = vmatpush.msra.mxu3 %v2330_v1  ;;  %5119 = vrot.lane.b32.xlu1 %v7389_v58, %s8797_s27 }
 0x4a9   : > { %5114 = vrot.lane.b32.xlu0 %v7389_v58, %s8653_s18  ;;  %2888 = vmatpush.msra.mxu2 %v7419_v37 }
 0x4aa   : > { %5124 = vrot.lane.b32.xlu2 %v7389_v58, %s8798_s30  ;;  %v4985_v24 = vpop.permute.xlu1 %4984  ;;  %s5279_s30 = smov 124  }
 0x4ab   : > { %v4980_v32 = vpop.permute.xlu0 %4979  ;;  %v5030_v17 = vpop.permute.xlu2 %5029  ;;  %2889 = vmatpush.msra.mxu2 %v2030_v51  ;;  %v4986_v10 = vunpack.i.l.bf16 %v4985_v24  ;;  %v4987_v59 = vunpack.i.h.bf16 %v4985_v24 }
 0x4ac   : > { %v4982_v12 = vunpack.i.h.bf16 %v4980_v32  ;;  %v4981_v30 = vunpack.i.l.bf16 %v4980_v32  ;;  %v5032_v1 = vunpack.i.h.bf16 %v5030_v17  ;;  %v5031_v24 = vunpack.i.l.bf16 %v5030_v17 }
 0x4ad   : > { %v2565_v35 = vsel %vm2019_vm15, %v4986_v10, %v4991_v53  ;;  %v2564_v0 = vsel %vm2019_vm15, %v4987_v59, %v4992_v60  ;;  %v5016_v53 = vunpack.i.l.bf16 %v7444_v62 }
 0x4ae   : > { %v2264_v51 = vsel %vm2019_vm15, %v4976_v44, %v4981_v30  ;;  %v2263_v27 = vsel %vm2019_vm15, %v4977_v52, %v4982_v12 }
 0x4b0   : > { %2634 = vrot.lane.b32.xlu1 %v7013_v20, %s5271_s26 }
 0x4b1   : > { %2631 = vrot.lane.b32.xlu0 %v7013_v20, %s5270_s23 }
 0x4b2   : > { %5129 = vrot.lane.b32.xlu2 %v7389_v58, %s8799_s16  ;;  %v5000_v40 = vpop.permute.xlu1 %4999  ;;  %s5280_s16 = smov 120  }
 0x4b3   : > { %v4995_v11 = vpop.permute.xlu0 %4994  ;;  %v5040_v39 = vpop.permute.xlu2 %5039  ;;  %v5001_v36 = vunpack.i.l.bf16 %v5000_v40  ;;  %v5002_v55 = vunpack.i.h.bf16 %v5000_v40 }
 0x4b4   : > { %v4997_v16 = vunpack.i.h.bf16 %v4995_v11  ;;  %v4996_v9 = vunpack.i.l.bf16 %v4995_v11  ;;  %v5042_v40 = vunpack.i.h.bf16 %v5040_v39  ;;  %v5041_v52 = vunpack.i.l.bf16 %v5040_v39 }
 0x4b5   : > { %v2569_v54 = vsel %vm2024_vm14, %v2565_v35, %v5001_v36  ;;  %v2568_v57 = vsel %vm2024_vm14, %v2564_v0, %v5002_v55  ;;  %v5017_v55 = vunpack.i.h.bf16 %v7444_v62 }
 0x4b6   : > { %v2268_v31 = vsel %vm2024_vm14, %v2264_v51, %v4996_v9  ;;  %v2267_v15 = vsel %vm2024_vm14, %v2263_v27, %v4997_v16 }
 0x4b7   : > { %v7477_v58 = vsel %vm480_vm1, %v2268_v31, %v5006_v19  ;;  %v7485_v50 = vsel %vm480_vm1, %v2267_v15, %v5007_v29 }
 0x4b8   : > { %2928 = vmatpush.msra.mxu3 %v7477_v58  ;;  %2640 = vrot.lane.b32.xlu1 %v7013_v20, %s8640_s0 }
 0x4b9   : > { %2637 = vrot.lane.b32.xlu0 %v7013_v20, %s5273_s8 }
 0x4ba   : > { %2677 = vrot.lane.b32.xlu2 %v7013_v20, %s8800_s28  ;;  %2929 = vmatpush.msra.mxu3 %v7485_v50  ;;  %v1984_v48 = vpop.permute.xlu1 %1983 }
 0x4bb   : > { %v5010_v34 = vpop.permute.xlu0 %5009 }
 0x4bc   : > { %v5012_v23 = vunpack.i.h.bf16 %v5010_v34  ;;  %v5011_v43 = vunpack.i.l.bf16 %v5010_v34  ;;  %v5050_v61 = vpop.permute.xlu2 %5049  ;;  %v2020_v34 = vsel %vm2019_vm15, %v7015_v45, %v1984_v48 }
 0x4bd   : > { %v5051_v11 = vunpack.i.l.bf16 %v5050_v61  ;;  %v5052_v27 = vunpack.i.h.bf16 %v5050_v61 }
 0x4be   : > { %v7495_v21 = vsel %vm480_vm1, %v2569_v54, %v5011_v43  ;;  %v7503_v18 = vsel %vm480_vm1, %v2568_v57, %v5012_v23 }
 0x4bf   : > { %2965 = vmatpush.msrb.mxu1 %v7495_v21 }
 0x4c0   : > { %2683 = vrot.lane.b32.xlu1 %v7362_v63, %s8801_s13  ;;  %s8815_s13 = sld [smem:[#allocation50_spill]] }
 0x4c1   : > { %2680 = vrot.lane.b32.xlu0 %v7013_v20, %s8631_s29  ;;  %2966 = vmatpush.msrb.mxu1 %v7503_v18  ;;  %s8803_s29 = smov 3  }
 0x4c2   : > { %2686 = vrot.lane.b32.xlu2 %v7362_v63, %s8802_s19  ;;  %v5025_v5 = vpop.permute.xlu1 %5024 }
 0x4c3   : > { %v5027_v32 = vunpack.i.h.bf16 %v5025_v5  ;;  %v5026_v12 = vunpack.i.l.bf16 %v5025_v5  ;;  %v5020_v30 = vpop.permute.xlu0 %5019 }
 0x4c4   : > { %v7510_v44 = vpop.permute.xlu2 %5064  ;;  %v5021_v10 = vunpack.i.l.bf16 %v5020_v30  ;;  %v5022_v59 = vunpack.i.h.bf16 %v5020_v30 }
 0x4c5   : > { %v2563_v16 = vsel %vm2019_vm15, %v5026_v12, %v5031_v24  ;;  %v2562_v9 = vsel %vm2019_vm15, %v5027_v32, %v5032_v1 }
 0x4c6   : > { %v2567_v19 = vsel %vm2024_vm14, %v2563_v16, %v5041_v52  ;;  %v2566_v51 = vsel %vm2024_vm14, %v2562_v9, %v5042_v40  ;;  %v2262_v0 = vsel %vm2019_vm15, %v5016_v53, %v5021_v10 }
 0x4c7   : > { %v7517_v31 = vsel %vm480_vm1, %v2567_v19, %v5051_v11  ;;  %v2570_v17 = vsel %vm480_vm1, %v2566_v51, %v5052_v27  ;;  %v5066_v19 = vunpack.i.l.bf16 %v7510_v44 }
 0x4c8   : > { %2737 = vrot.lane.b32.xlu1 %v7362_v63, %s8803_s29  ;;  %2967 = vmatpush.msrb.mxu1 %v7517_v31  ;;  %s8812_s29 = sld [smem:[#allocation48_spill]] }
 0x4c9   : > { %2734 = vrot.lane.b32.xlu0 %v7362_v63, %s8804_s14 }
 0x4ca   : > { %2740 = vrot.lane.b32.xlu2 %v7362_v63, %s8805_s9  ;;  %v5035_v39 = vpop.permute.xlu1 %5034  ;;  %2968 = vmatpush.msrb.mxu1 %v2570_v17 }
 0x4cb   : > { %v1996_v15 = vpop.permute.xlu0 %1995  ;;  %v5036_v36 = vunpack.i.l.bf16 %v5035_v39  ;;  %v5037_v60 = vunpack.i.h.bf16 %v5035_v39 }
 0x4cc   : > { %v7527_v29 = vpop.permute.xlu2 %5079  ;;  %v2025_v43 = vsel %vm2024_vm14, %v2020_v34, %v1996_v15  ;;  %v5067_v15 = vunpack.i.h.bf16 %v7510_v44 }
 0x4cd   : > { %v2266_v62 = vsel %vm2024_vm14, %v2262_v0, %v5036_v36 }
 0x4d0   : > { %2662 = vrot.lane.b32.xlu1 %v7013_v20, %s8806_s20  ;;  %s8817_s20 = sld [smem:[#allocation51_spill]] }
 0x4d1   : > { %2743 = vrot.lane.b32.xlu0 %v7362_v63, %s8807_s11 }
 0x4d2   : > { %2665 = vrot.lane.b32.xlu2 %v7013_v20, %s8651_s10  ;;  %v5045_v23 = vpop.permute.xlu1 %5044  ;;  %v2261_v20 = vsel %vm2019_vm15, %v5017_v55, %v5022_v59  ;;  %s8808_s10 = smov 112  }
 0x4d3   : > { %v5047_v61 = vunpack.i.h.bf16 %v5045_v23  ;;  %v5046_v35 = vunpack.i.l.bf16 %v5045_v23  ;;  %v2008_v54 = vpop.permute.xlu0 %2007  ;;  %v2265_v48 = vsel %vm2024_vm14, %v2261_v20, %v5037_v60  ;;  %v5082_v23 = vunpack.i.h.bf16 %v7527_v29 }
 0x4d4   : > { %v7541_v57 = vpop.permute.xlu2 %2707  ;;  %v2029_v5 = vsel %vm480_vm1, %v2025_v43, %v2008_v54  ;;  %v5081_v43 = vunpack.i.l.bf16 %v7527_v29 }
 0x4d5   : > { %2890 = vmatpush.msra.mxu2 %v2029_v5  ;;  %v7546_v45 = vsel %vm480_vm1, %v2266_v62, %v5046_v35  ;;  %v2269_v1 = vsel %vm480_vm1, %v2265_v48, %v5047_v61 }
 0x4d6   : > { %2930 = vmatpush.msra.mxu3 %v7546_v45 }
 0x4d8   : > { %2671 = vrot.lane.b32.xlu1 %v7362_v63, %s8621_s15  ;;  %2931 = vmatpush.msra.mxu3 %v2269_v1  ;;  %s8813_s15 = sld [smem:[#allocation49_spill]] }
 0x4d9   : > { %2668 = vrot.lane.b32.xlu0 %v7362_v63, %s8808_s10 }
 0x4da   : > { %2722 = vrot.lane.b32.xlu2 %v7362_v63, %s8809_s17  ;;  %v5060_v24 = vpop.permute.xlu1 %5059  ;;  %s8814_s17 = sld [smem:[#allocation3_spill]] }
 0x4db   : > { %v5055_v32 = vpop.permute.xlu0 %5054  ;;  %v5061_v30 = vunpack.i.l.bf16 %v5060_v24  ;;  %v5062_v52 = vunpack.i.h.bf16 %v5060_v24 }
 0x4dc   : > { %v2717_v12 = vpop.permute.xlu2 %2716  ;;  %v5056_v40 = vunpack.i.l.bf16 %v5055_v32  ;;  %v5057_v11 = vunpack.i.h.bf16 %v5055_v32 }
 0x4de   : > { %v2505_v9 = vsel %vm2019_vm15, %v5056_v40, %v5061_v30  ;;  %v2504_v39 = vsel %vm2019_vm15, %v5057_v11, %v5062_v52 }
 0x4df   : > { %v2509_v36 = vsel %vm2024_vm14, %v2505_v9, %v5066_v19  ;;  %v2508_v59 = vsel %vm2024_vm14, %v2504_v39, %v5067_v15 }
 0x4e0   : > { %2728 = vrot.lane.b32.xlu1 %v7362_v63, %s8810_s22  ;;  %s8816_s19 = sshll.u32 %s8814_s17, 7 }
 0x4e1   : > { %2725 = vrot.lane.b32.xlu0 %v7362_v63, %s8811_s12  ;;  %s8376_s11 = scalar_lea.vmem %s8817_s20, %s8816_s19 }
 0x4e2   : > { %2779 = vrot.lane.b32.xlu2 %v7362_v63, %s5270_s23  ;;  %v5075_v16 = vpop.permute.xlu1 %5074 }
 0x4e3   : > { %v5070_v51 = vpop.permute.xlu0 %5069  ;;  %v5077_v34 = vunpack.i.h.bf16 %v5075_v16  ;;  %v5076_v60 = vunpack.i.l.bf16 %v5075_v16  ;;  %v2794_v16 = vld [vmem:[%s8461_s3] sm:$0xff] }
 0x4e4   : > { %v5072_v27 = vunpack.i.h.bf16 %v5070_v51  ;;  %v5071_v17 = vunpack.i.l.bf16 %v5070_v51  ;;  %v5105_v10 = vpop.permute.xlu2 %5104  ;;  %2891 = vmatmul.f32.vlgmr.msra.gmra.mxu2 %v2794_v16 }
 0x4e5   : > { %v2503_v62 = vsel %vm2019_vm15, %v5076_v60, %v5081_v43  ;;  %v2502_v20 = vsel %vm2019_vm15, %v5077_v34, %v5082_v23  ;;  %v5106_v34 = vunpack.i.l.bf16 %v5105_v10 }
 0x4e6   : > { %v7570_v53 = vsel %vm480_vm1, %v2509_v36, %v5071_v17  ;;  %v7577_v55 = vsel %vm480_vm1, %v2508_v59, %v5072_v27  ;;  %v2801_v36 = vld [vmem:[%s8461_s3 + $0x38] sm:$0xff]  ;;  %v5107_v59 = vunpack.i.h.bf16 %v5105_v10 }
 0x4e7   : > { %2969 = vmatpush.msrb.mxu1 %v7570_v53 }
 0x4e8   : > { %2785 = vrot.lane.b32.xlu1 %v7362_v63, %s5273_s8 }
 0x4e9   : > { %2782 = vrot.lane.b32.xlu0 %v7362_v63, %s5271_s26  ;;  %2970 = vmatpush.msrb.mxu1 %v7577_v55 }
 0x4ea   : > { %2788 = vrot.lane.b32.xlu2 %v7362_v63, %s8640_s0  ;;  %v5090_v44 = vpop.permute.xlu1 %5089 }
 0x4eb   : > { %v5091_v61 = vunpack.i.l.bf16 %v5090_v44  ;;  %v5085_v35 = vpop.permute.xlu0 %5084  ;;  %v5092_v5 = vunpack.i.h.bf16 %v5090_v44 }
 0x4ec   : > { %v5087_v54 = vunpack.i.h.bf16 %v5085_v35  ;;  %v5086_v0 = vunpack.i.l.bf16 %v5085_v35  ;;  %v5110_v24 = vpop.permute.xlu2 %5109  ;;  %2894 = vmatmul.f32.gmra.mxu2 %v2801_v36 }
 0x4ed   : > { %v5112_v43 = vunpack.i.h.bf16 %v5110_v24 }
 0x4ee   : > { %v2507_v48 = vsel %vm2024_vm14, %v2503_v62, %v5086_v0  ;;  %v2506_v1 = vsel %vm2024_vm14, %v2502_v20, %v5087_v54  ;;  %v2808_v0 = vld [vmem:[%s8461_s3 + $0x70] sm:$0xff] }
 0x4ef   : > { %v7591_v32 = vsel %vm480_vm1, %v2507_v48, %v5091_v61  ;;  %v2510_v29 = vsel %vm480_vm1, %v2506_v1, %v5092_v5  ;;  %v2802_v5 = vld [vmem:[%s8461_s3 + $0x40] sm:$0xff]  ;;  %v2796_v62 = vld [vmem:[%s8461_s3 + $0x10] sm:$0xff] }
 0x4f0   : > { %2971 = vmatpush.msrb.mxu1 %v7591_v32 }
 0x4f2   : > { %2972 = vmatpush.msrb.mxu1 %v2510_v29  ;;  %v2714_v30 = vpop.permute.xlu1 %2713  ;;  %v2815_v29 = vld [vmem:[%s8461_s3 + $0xa8] sm:$0xff] }
 0x4f3   : > { %v2711_v40 = vpop.permute.xlu0 %2710  ;;  %2973 = vmatmul.f32.vlgmr.msrb.gmra.mxu1 %v2796_v62  ;;  %v2836_v62 = vld [vmem:[%s8461_s3 + $0x150] sm:$0xff] }
 0x4f4   : > { %v2719_v52 = vsel %vm2019_vm15, %v7541_v57, %v2711_v40  ;;  %v2693_v19 = vpop.permute.xlu2 %2692  ;;  %2897 = vmatmul.f32.gmra.mxu2 %v2808_v0  ;;  %v2803_v40 = vld [vmem:[%s8461_s3 + $0x48] sm:$0xff] }
 0x4f5   : > { %v2720_v11 = vsel %vm2024_vm14, %v2719_v52, %v2714_v30  ;;  %v2809_v30 = vld [vmem:[%s8461_s3 + $0x78] sm:$0xff] }
 0x4f6   : > { %v2721_v9 = vsel %vm480_vm1, %v2720_v11, %v2717_v12  ;;  %v2795_v12 = vld [vmem:[%s8461_s3 + $0x8] sm:$0xff] }
 0x4f7   : > { %3039 = vmatpush.msrb.mxu2 %v2721_v9  ;;  %2932 = vmatmul.f32.vlgmr.msra.gmra.mxu3 %v2795_v12 }
 0x4f9   : > { %3040 = vmatpush.msrb.mxu2 %v7495_v21  ;;  %v5111_v21 = vunpack.i.l.bf16 %v5110_v24 }
 0x4fa   : > { %v5100_v51 = vpop.permute.xlu1 %5099 }
 0x4fb   : > { %v5095_v27 = vpop.permute.xlu0 %5094  ;;  %v5102_v17 = vunpack.i.h.bf16 %v5100_v51  ;;  %v5101_v39 = vunpack.i.l.bf16 %v5100_v51  ;;  %3041 = vmatpush.msrb.mxu2 %v7503_v18  ;;  %2976 = vmatmul.f32.gmra.mxu1 %v2803_v40 }
 0x4fc   : > { %v5097_v57 = vunpack.i.h.bf16 %v5095_v27  ;;  %v5096_v15 = vunpack.i.l.bf16 %v5095_v27  ;;  %2900 = vmatmul.f32.gmra.mxu2 %v2815_v29 }
 0x4fd   : > { %3042 = vmatpush.msrb.mxu2 %v7517_v31  ;;  %v2702_v31 = vpop.permute.xlu2 %2701 }
 0x4fe   : > { %v2776_v60 = vsel %vm2019_vm15, %v5096_v15, %v5101_v39  ;;  %v2628_v18 = vsel %vm2019_vm15, %v5097_v57, %v5102_v17  ;;  %v2822_v17 = vld [vmem:[%s8461_s3 + $0xe0] sm:$0xff]  ;;  %v2816_v39 = vld [vmem:[%s8461_s3 + $0xb0] sm:$0xff] }
 0x4ff   : > { %v2777_v44 = vsel %vm2024_vm14, %v2776_v60, %v5106_v34  ;;  %v2629_v23 = vsel %vm2024_vm14, %v2628_v18, %v5107_v59  ;;  %2935 = vmatmul.f32.gmra.mxu3 %v2802_v5  ;;  %v2829_v34 = vld [vmem:[%s8461_s3 + $0x118] sm:$0xff] }
 0x500   : > { %v2778_v61 = vsel %vm480_vm1, %v2777_v44, %v5111_v21  ;;  %v7617_v10 = vsel %vm480_vm1, %v2629_v23, %v5112_v43  ;;  %v2823_v21 = vld [vmem:[%s8461_s3 + $0xe8] sm:$0xff] }
 0x501   : > { %3080 = vmatpush.msrb.mxu3 %v2778_v61 }
 0x502   : > { %v2650_v35 = vpop.permute.xlu1 %2649 }
 0x503   : > { %v2647_v54 = vpop.permute.xlu0 %2646  ;;  %3081 = vmatpush.msrb.mxu3 %v7617_v10 }
 0x504   : > { %v2659_v48 = vsel %vm2019_vm15, %v2647_v54, %v2650_v35  ;;  %2903 = vmatmul.f32.gmra.mxu2 %v2822_v17 }
 0x505   : > { %3082 = vmatpush.msrb.mxu3 %v7130_v8  ;;  %v5125_v52 = vpop.permute.xlu2 %5124 }
 0x506   : > { %v5127_v60 = vunpack.i.h.bf16 %v5125_v52  ;;  %v5126_v18 = vunpack.i.l.bf16 %v5125_v52  ;;  %v2843_v52 = vld [vmem:[%s8461_s3 + $0x188] sm:$0xff] }
 0x507   : > { %3083 = vmatpush.msrb.mxu3 %v7137_v28 }
 0x508   : > { %2938 = vmatmul.f32.gmra.mxu3 %v2809_v30 }
 0x50a   : > { %v2657_v20 = vpop.permute.xlu1 %2656 }
 0x50b   : > { %v2654_v1 = vpop.permute.xlu0 %2653 }
 0x50c   : > { %v2660_v24 = vsel %vm2024_vm14, %v2659_v48, %v2654_v1  ;;  %2906 = vmatmul.f32.gmra.mxu2 %v2829_v34  ;;  %v2824_v48 = vld [vmem:[%s8461_s3 + $0xf0] sm:$0xff] }
 0x50d   : > { %v2661_v11 = vsel %vm480_vm1, %v2660_v24, %v2657_v20  ;;  %v2830_v20 = vld [vmem:[%s8461_s3 + $0x120] sm:$0xff] }
 0x50e   : > { %2998 = vmatpush.msrb.mxu0 %v2661_v11 }
 0x510   : > { %2999 = vmatpush.msrb.mxu0 %v7383_v46  ;;  %v2810_v46 = vld [vmem:[%s8461_s3 + $0x80] sm:$0xff]  ;;  %2941 = vmatmul.f32.gmra.mxu3 %v2816_v39 }
 0x511   : > { %2979 = vmatmul.f32.gmra.mxu1 %v2810_v46 }
 0x512   : > { %3000 = vmatpush.msrb.mxu0 %v7398_v56  ;;  %v2699_v16 = vpop.permute.xlu1 %2698 }
 0x513   : > { %v2696_v9 = vpop.permute.xlu0 %2695 }
 0x514   : > { %v2704_v51 = vsel %vm2019_vm15, %v2693_v19, %v2696_v9  ;;  %3001 = vmatpush.msrb.mxu0 %v7450_v3  ;;  %v5130_v19 = vpop.permute.xlu2 %5129  ;;  %2909 = vmatmul.f32.gmra.mxu2 %v2836_v62  ;;  %v2831_v9 = vld [vmem:[%s8461_s3 + $0x128] sm:$0xff]  ;;  %v2820_v62 = vld [vmem:[%s8461_s3 + $0xd0] sm:$0xff] }
 0x515   : > { %v2705_v27 = vsel %vm2024_vm14, %v2704_v51, %v2699_v16  ;;  %v5131_v44 = vunpack.i.l.bf16 %v5130_v19  ;;  %v5132_v35 = vunpack.i.h.bf16 %v5130_v19  ;;  %v2837_v16 = vld [vmem:[%s8461_s3 + $0x158] sm:$0xff] }
 0x516   : > { %v2706_v56 = vsel %vm480_vm1, %v2705_v27, %v2702_v31 }
 0x517   : > { %3043 = vmatpush.msrb.mxu2 %v2706_v56  ;;  %v2844_v56 = vld [vmem:[%s8461_s3 + $0x190] sm:$0xff] }
 0x518   : > { %2944 = vmatmul.f32.gmra.mxu3 %v2823_v21  ;;  %v2798_v21 = vld [vmem:[%s8461_s3 + $0x20] sm:$0xff] }
 0x519   : > { %3044 = vmatpush.msrb.mxu2 %v7570_v53  ;;  %v2817_v53 = vld [vmem:[%s8461_s3 + $0xb8] sm:$0xff] }
 0x51a   : > { %v5120_v3 = vpop.permute.xlu1 %5119  ;;  %2982 = vmatmul.f32.gmra.mxu1 %v2817_v53 }
 0x51b   : > { %v5115_v57 = vpop.permute.xlu0 %5114  ;;  %v5122_v15 = vunpack.i.h.bf16 %v5120_v3  ;;  %v5121_v36 = vunpack.i.l.bf16 %v5120_v3  ;;  %3045 = vmatpush.msrb.mxu2 %v7577_v55  ;;  %v2838_v3 = vld [vmem:[%s8461_s3 + $0x160] sm:$0xff] }
 0x51c   : > { %v5117_v12 = vunpack.i.h.bf16 %v5115_v57  ;;  %v5116_v59 = vunpack.i.l.bf16 %v5115_v57  ;;  %2912 = vmatmul.f32.gmra.mxu2 %v2843_v52  ;;  %v2828_v52 = vld [vmem:[%s8461_s3 + $0x110] sm:$0xff] }
 0x51d   : > { %3046 = vmatpush.msrb.mxu2 %v7591_v32  ;;  %v2678_v32 = vpop.permute.xlu2 %2677 }
 0x51e   : > { %v2761_v55 = vsel %vm2019_vm15, %v5116_v59, %v5121_v36  ;;  %v2613_v23 = vsel %vm2019_vm15, %v5117_v12, %v5122_v15  ;;  %v2804_v36 = vld [vmem:[%s8461_s3 + $0x50] sm:$0xff] }
 0x51f   : > { %v2762_v43 = vsel %vm2024_vm14, %v2761_v55, %v5126_v18  ;;  %v2614_v61 = vsel %vm2024_vm14, %v2613_v23, %v5127_v60 }
 0x520   : > { %v2763_v31 = vsel %vm480_vm1, %v2762_v43, %v5131_v44  ;;  %v2615_v0 = vsel %vm480_vm1, %v2614_v61, %v5132_v35  ;;  %2947 = vmatmul.f32.gmra.mxu3 %v2830_v20  ;;  %v2805_v44 = vld [vmem:[%s8461_s3 + $0x58] sm:$0xff]  ;;  %v2812_v35 = vld [vmem:[%s8461_s3 + $0x90] sm:$0xff]  ;;  %v2814_v20 = vld [vmem:[%s8461_s3 + $0xa0] sm:$0xff] }
 0x521   : > { %3084 = vmatpush.msrb.mxu3 %v2763_v31  ;;  %v2825_v61 = vld [vmem:[%s8461_s3 + $0xf8] sm:$0xff]  ;;  %v2800_v31 = vld [vmem:[%s8461_s3 + $0x30] sm:$0xff] }
 0x522   : > { %v2635_v54 = vpop.permute.xlu1 %2634  ;;  %2985 = vmatmul.f32.gmra.mxu1 %v2824_v48  ;;  %v2846_v48 = vld [vmem:[%s8461_s3 + $0x1a0] sm:$0xff] }
 0x523   : > { %v2632_v5 = vpop.permute.xlu0 %2631  ;;  %3085 = vmatpush.msrb.mxu3 %v2615_v0 }
 0x524   : > { %v2643_v29 = vsel %vm2019_vm15, %v2632_v5, %v2635_v54  ;;  %v2813_v54 = vld [vmem:[%s8461_s3 + $0x98] sm:$0xff]  ;;  %v2826_v5 = vld [vmem:[%s8461_s3 + $0x100] sm:$0xff] }
 0x525   : > { %3086 = vmatpush.msrb.mxu3 %v7219_v38  ;;  %v2687_v24 = vpop.permute.xlu2 %2686 }
 0x527   : > { %3087 = vmatpush.msrb.mxu3 %v7229_v42 }
 0x528   : > { %2950 = vmatmul.f32.gmra.mxu3 %v2837_v16  ;;  %v2847_v16 = vld [vmem:[%s8461_s3 + $0x1a8] sm:$0xff] }
 0x52a   : > { %v2641_v1 = vpop.permute.xlu1 %2640  ;;  %2988 = vmatmul.f32.gmra.mxu1 %v2831_v9  ;;  %v2841_v9 = vld [vmem:[%s8461_s3 + $0x178] sm:$0xff] }
 0x52b   : > { %v2638_v30 = vpop.permute.xlu0 %2637 }
 0x52c   : > { %v2644_v40 = vsel %vm2024_vm14, %v2643_v29, %v2638_v30  ;;  %v2821_v29 = vld [vmem:[%s8461_s3 + $0xd8] sm:$0xff]  ;;  %v2840_v30 = vld [vmem:[%s8461_s3 + $0x170] sm:$0xff] }
 0x52d   : > { %v7693_v11 = vsel %vm480_vm1, %v2644_v40, %v2641_v1  ;;  %v2741_v39 = vpop.permute.xlu2 %2740  ;;  %v2833_v1 = vld [vmem:[%s8461_s3 + $0x138] sm:$0xff]  ;;  %v2834_v40 = vld [vmem:[%s8461_s3 + $0x140] sm:$0xff] }
 0x52e   : > { %3002 = vmatpush.msrb.mxu0 %v7693_v11 }
 0x530   : > { %3003 = vmatpush.msrb.mxu0 %v7477_v58  ;;  %2953 = vmatmul.f32.gmra.mxu3 %v2844_v56 }
 0x532   : > { %3004 = vmatpush.msrb.mxu0 %v7485_v50  ;;  %v2684_v51 = vpop.permute.xlu1 %2683  ;;  %2991 = vmatmul.f32.gmra.mxu1 %v2838_v3  ;;  %v2849_v3 = vld [vmem:[%s8461_s3 + $0x1b8] sm:$0xff] }
 0x533   : > { %v2681_v27 = vpop.permute.xlu0 %2680 }
 0x534   : > { %v2689_v17 = vsel %vm2019_vm15, %v2678_v32, %v2681_v27  ;;  %3005 = vmatpush.msrb.mxu0 %v7546_v45  ;;  %v2819_v32 = vld [vmem:[%s8461_s3 + $0xc8] sm:$0xff] }
 0x535   : > { %v2690_v46 = vsel %vm2024_vm14, %v2689_v17, %v2684_v51  ;;  %v2835_v51 = vld [vmem:[%s8461_s3 + $0x148] sm:$0xff] }
 0x536   : > { %3006 = vmatpush.msrb.mxu0 %v7617_v10  ;;  %v2691_v19 = vsel %vm480_vm1, %v2690_v46, %v2687_v24  ;;  %v2845_v10 = vld [vmem:[%s8461_s3 + $0x198] sm:$0xff]  ;;  %v2827_v24 = vld [vmem:[%s8461_s3 + $0x108] sm:$0xff]  ;;  %v2842_v46 = vld [vmem:[%s8461_s3 + $0x180] sm:$0xff] }
 0x537   : > { %3047 = vmatpush.msrb.mxu2 %v2691_v19 }
 0x538   : > { %3007 = vmatpush.msrb.mxu0 %v7130_v8  ;;  %v2666_v8 = vpop.permute.xlu2 %2665 }
 0x539   : > { %3048 = vmatpush.msrb.mxu2 %v7163_v7  ;;  %v2797_v7 = vld [vmem:[%s8461_s3 + $0x18] sm:$0xff] }
 0x53a   : > { %3008 = vmatpush.msrb.mxu0 %v7137_v28  ;;  %v2738_v45 = vpop.permute.xlu1 %2737  ;;  %2994 = vmatmul.f32.gmra.mxu1 %v2845_v10 }
 0x53b   : > { %v2735_v57 = vpop.permute.xlu0 %2734  ;;  %3049 = vmatpush.msrb.mxu2 %v7177_v33 }
 0x53c   : > { %3009 = vmatpush.msrb.mxu0 %v7166_v14  ;;  %v2746_v15 = vsel %vm2019_vm15, %v2735_v57, %v2738_v45 }
 0x53d   : > { %3050 = vmatpush.msrb.mxu2 %v7198_v4  ;;  %v2747_v33 = vsel %vm2024_vm14, %v2746_v15, %v2741_v39  ;;  %v2848_v39 = vld [vmem:[%s8461_s3 + $0x1b0] sm:$0xff] }
 0x53e   : > { %3010 = vmatpush.msrb.mxu0 %v2615_v0  ;;  %v2807_v0 = vld [vmem:[%s8461_s3 + $0x68] sm:$0xff] }
 0x540   : > { %3011 = vmatpush.msrb.mxu0 %v7219_v38  ;;  %v2723_v38 = vpop.permute.xlu2 %2722 }
 0x542   : > { %3012 = vmatpush.msrb.mxu0 %v7229_v42  ;;  %v2663_v28 = vpop.permute.xlu1 %2662 }
 0x543   : > { %v2744_v14 = vpop.permute.xlu0 %2743  ;;  %v2674_v12 = vsel %vm2019_vm15, %v2663_v28, %v2666_v8 }
 0x544   : > { %3013 = vmatpush.msrb.mxu0 %v7301_v25  ;;  %v2748_v4 = vsel %vm480_vm1, %v2747_v33, %v2744_v14 }
 0x545   : > { %3014 = vmatmul.f32.vlgmr.msrb.gmra.mxu0 %v2797_v7  ;;  %3088 = vmatpush.msrb.mxu3 %v2748_v4 }
 0x547   : > { %3089 = vmatpush.msrb.mxu3 %v7248_v26 }
 0x548   : > { %v2780_v60 = vpop.permute.xlu2 %2779 }
 0x549   : > { %3090 = vmatpush.msrb.mxu3 %v7260_v22  ;;  %v2811_v22 = vld [vmem:[%s8461_s3 + $0x88] sm:$0xff] }
 0x54a   : > { %v2672_v42 = vpop.permute.xlu1 %2671 }
 0x54b   : > { %v2669_v59 = vpop.permute.xlu0 %2668  ;;  %3091 = vmatpush.msrb.mxu3 %v7335_v13  ;;  %v2731_v13 = vsel %vm2019_vm15, %v7362_v63, %v2723_v38  ;;  %v2818_v63 = vld [vmem:[%s8461_s3 + $0xc0] sm:$0xff] }
 0x54c   : > { %v2675_v25 = vsel %vm2024_vm14, %v2674_v12, %v2669_v59 }
 0x54d   : > { %3017 = vmatmul.f32.gmra.mxu0 %v2804_v36  ;;  %v2676_v34 = vsel %vm480_vm1, %v2675_v25, %v2672_v42 }
 0x54e   : > { %3051 = vmatpush.msrb.mxu2 %v2676_v34 }
 0x550   : > { %3052 = vmatpush.msrb.mxu2 %v7269_v49 }
 0x552   : > { %3053 = vmatpush.msrb.mxu2 %v7275_v41  ;;  %v2729_v26 = vpop.permute.xlu1 %2728 }
 0x553   : > { %v2726_v18 = vpop.permute.xlu0 %2725 }
 0x554   : > { %v2732_v53 = vsel %vm2024_vm14, %v2731_v13, %v2726_v18  ;;  %3054 = vmatpush.msrb.mxu2 %v7331_v6  ;;  %v2799_v6 = vld [vmem:[%s8461_s3 + $0x28] sm:$0xff] }
 0x555   : > { %3020 = vmatmul.f32.gmra.mxu0 %v2811_v22  ;;  %3055 = vmatmul.f32.vlgmr.msrb.gmra.mxu2 %v2798_v21  ;;  %v2733_v49 = vsel %vm480_vm1, %v2732_v53, %v2729_v26 }
 0x556   : > { %3092 = vmatpush.msrb.mxu3 %v2733_v49 }
 0x558   : > { %3093 = vmatpush.msrb.mxu3 %v7378_v2  ;;  %v2789_v2 = vpop.permute.xlu2 %2788 }
 0x55a   : > { %3094 = vmatpush.msrb.mxu3 %v7395_v47  ;;  %v2786_v41 = vpop.permute.xlu1 %2785 }
 0x55b   : > { %v2783_v55 = vpop.permute.xlu0 %2782 }
 0x55c   : > { %v2791_v23 = vsel %vm2019_vm15, %v2780_v60, %v2783_v55  ;;  %3095 = vmatpush.msrb.mxu3 %v7419_v37  ;;  %v2806_v37 = vld [vmem:[%s8461_s3 + $0x60] sm:$0xff] }
 0x55d   : > { %v2792_v47 = vsel %vm2024_vm14, %v2791_v23, %v2786_v41  ;;  %3023 = vmatmul.f32.gmra.mxu0 %v2818_v63  ;;  %3058 = vmatmul.f32.gmra.mxu2 %v2805_v44 }
 0x55e   : > { %3096 = vmatmul.f32.vlgmr.msrb.gmra.mxu3 %v2799_v6  ;;  %v2793_v43 = vsel %vm480_vm1, %v2792_v47, %v2789_v2  ;;  %vm2850_vm1 = vcmask 261120  }
 0x55f   : > { %3133 = vmatpush.msra.mxu1 %v2793_v43 }
 0x561   : > { %3134 = vmatpush.msra.mxu1 %v7693_v11 }
 0x563   : > { %3135 = vmatpush.msra.mxu1 %v7477_v58  ;;  %v2832_v58 = vld [vmem:[%s8461_s3 + $0x130] sm:$0xff] }
 0x565   : > { %3026 = vmatmul.f32.gmra.mxu0 %v2825_v61  ;;  %3061 = vmatmul.f32.gmra.mxu2 %v2812_v35 }
 0x566   : > { %3099 = vmatmul.f32.gmra.mxu3 %v2806_v37  ;;  %3136 = vmatpush.msra.mxu1 %v7485_v50  ;;  %v2839_v50 = vld [vmem:[%s8461_s3 + $0x168] sm:$0xff] }
 0x567   : > { %3917 = vmatmul.msk.f32.vlgmr.msra.gmra.mxu1 %vm2850_vm1, %v2800_v31  ;;  %v2892_v11 = vpop.f32.mrf.mxu2 }
 0x56d   : > { %3029 = vmatmul.f32.gmra.mxu0 %v2832_v58  ;;  %3064 = vmatmul.f32.gmra.mxu2 %v2819_v32 }
 0x56e   : > { %3102 = vmatmul.f32.gmra.mxu3 %v2813_v54 }
 0x56f   : > { %3918 = vmatmul.msk.f32.gmra.mxu1 %vm2850_vm1, %v2807_v0  ;;  %v2895_v17 = vpop.f32.mrf.mxu2 }
 0x570   : > { %v2974_v56 = vpop.f32.mrf.mxu1 }
 0x575   : > { %3032 = vmatmul.f32.gmra.mxu0 %v2839_v50  ;;  %3067 = vmatmul.f32.gmra.mxu2 %v2826_v5 }
 0x576   : > { %3105 = vmatmul.f32.gmra.mxu3 %v2820_v62 }
 0x577   : > { %3919 = vmatmul.msk.f32.gmra.mxu1 %vm2850_vm1, %v2814_v20  ;;  %v2898_v45 = vpop.f32.mrf.mxu2 }
 0x578   : > { %v2977_v57 = vpop.f32.mrf.mxu1 }
 0x57a   : > { %v2933_v27 = vpop.f32.mrf.mxu3 }
 0x57b   : > { %v2934_v13 = vadd.f32 %v2933_v27, %v2892_v11 }
 0x57d   : > { %3035 = vmatmul.f32.gmra.mxu0 %v2846_v48  ;;  %3070 = vmatmul.f32.gmra.mxu2 %v2833_v1  ;;  %v2975_v18 = vadd.f32 %v2974_v56, %v2934_v13 }
 0x57e   : > { %3108 = vmatmul.f32.gmra.mxu3 %v2827_v24 }
 0x57f   : > { %3920 = vmatmul.msk.f32.gmra.mxu1 %vm2850_vm1, %v2821_v29  ;;  %v7856_v8 = vpop.f32.mrf.mxu2 }
 0x582   : > { %v2936_v19 = vpop.f32.mrf.mxu3 }
 0x583   : > { %v2937_v41 = vadd.f32 %v2936_v19, %v2895_v17 }
 0x585   : > { %3073 = vmatmul.f32.gmra.mxu2 %v2840_v30  ;;  %v2978_v47 = vadd.f32 %v2977_v57, %v2937_v41 }
 0x586   : > { %3111 = vmatmul.f32.gmra.mxu3 %v2834_v40 }
 0x587   : > { %3921 = vmatmul.msk.f32.gmra.mxu1 %vm2850_vm1, %v2828_v52  ;;  %v7860_v7 = vpop.f32.mrf.mxu2 }
 0x58b   : > { %v2939_v10 = vpop.f32.mrf.mxu3 }
 0x58c   : > { %v2940_v55 = vadd.f32 %v2939_v10, %v2898_v45 }
 0x58d   : > { %3076 = vmatmul.f32.gmra.mxu2 %v2847_v16 }
 0x58e   : > { %3114 = vmatmul.f32.gmra.mxu3 %v2841_v9  ;;  %v2980_v15 = vpop.f32.mrf.mxu1 }
 0x58f   : > { %3922 = vmatmul.msk.f32.gmra.mxu1 %vm2850_vm1, %v2835_v51  ;;  %v7866_v4 = vpop.f32.mrf.mxu2  ;;  %v2981_v61 = vadd.f32 %v2980_v15, %v2940_v55 }
 0x593   : > { %v7858_v28 = vpop.f32.mrf.mxu3 }
 0x596   : > { %3117 = vmatmul.f32.gmra.mxu3 %v2848_v39 }
 0x597   : > { %3923 = vmatmul.msk.f32.gmra.mxu1 %vm2850_vm1, %v2842_v46  ;;  %v7862_v14 = vpop.f32.mrf.mxu1  ;;  %v2910_v36 = vpop.f32.mrf.mxu2 }
 0x59b   : > { %v7864_v33 = vpop.f32.mrf.mxu3 }
 0x59f   : > { %3924 = vmatmul.msk.f32.gmra.mxu1 %vm2850_vm1, %v2849_v3  ;;  %v7868_v38 = vpop.f32.mrf.mxu1  ;;  %v2913_v34 = vpop.f32.mrf.mxu2 }
 0x5a3   : > { %v7870_v42 = vpop.f32.mrf.mxu3 }
 0x5a7   : > { %v7872_v12 = vpop.f32.mrf.mxu1 }
 0x5ab   : > { %v2951_v25 = vpop.f32.mrf.mxu3 }
 0x5ac   : > { %v2952_v39 = vadd.f32 %v2951_v25, %v2910_v36  ;;  %v2949_v36 = vadd.f32 %v7870_v42, %v7866_v4  ;;  %v2943_v4 = vadd.f32 %v7858_v28, %v7856_v8 }
 0x5af   : > { %v2992_v26 = vpop.f32.mrf.mxu1 }
 0x5b0   : > { %v2993_v3 = vadd.f32 %v2992_v26, %v2952_v39 }
 0x5b3   : > { %v2954_v21 = vpop.f32.mrf.mxu3 }
 0x5b4   : > { %v2955_v10 = vadd.f32 %v2954_v21, %v2913_v34  ;;  %v2990_v21 = vadd.f32 %v7872_v12, %v2949_v36 }
 0x5b7   : > { %v2995_v53 = vpop.f32.mrf.mxu1 }
 0x5c2   : > { %v3015_v59 = vpop.f32.mrf.mxu0 }
 0x5c3   : > { %v3016_v49 = vadd.f32 %v3015_v59, %v2975_v18 }
 0x5ca   : > { %v3018_v22 = vpop.f32.mrf.mxu0 }
 0x5cb   : > { %v3019_v37 = vadd.f32 %v3018_v22, %v2978_v47 }
 0x5d2   : > { %v3021_v6 = vpop.f32.mrf.mxu0 }
 0x5d3   : > { %v3022_v31 = vadd.f32 %v3021_v6, %v2981_v61  ;;  %v2946_v6 = vadd.f32 %v7864_v33, %v7860_v7 }
 0x5d5   : > { %v2987_v12 = vadd.f32 %v7868_v38, %v2946_v6 }
 0x5d8   : > { %v3056_v60 = vpop.f32.mrf.mxu2 }
 0x5d9   : > { %v3057_v63 = vadd.f32 %v3056_v60, %v3016_v49  ;;  %v2996_v60 = vadd.f32 %v2995_v53, %v2955_v10 }
 0x5da   : > { %v3024_v5 = vpop.f32.mrf.mxu0 }
 0x5e0   : > { %v3059_v44 = vpop.f32.mrf.mxu2 }
 0x5e1   : > { %v3097_v23 = vpop.f32.mrf.mxu3  ;;  %v3060_v58 = vadd.f32 %v3059_v44, %v3019_v37  ;;  %v3273_v37 = vld [vmem:[%s8462_s4 + $0x38] sm:$0xff] }
 0x5e2   : > { %v3098_v2 = vadd.f32 %v3097_v23, %v3057_v63  ;;  %v3027_v30 = vpop.f32.mrf.mxu0 }
 0x5e3   : > { %v3028_v7 = vadd.f32 %v3027_v30, %v2987_v12 }
 0x5e4   : > { %v3138_v43 = vpop.f32.mrf.mxu1 }
 0x5e5   : > { %v7874_v35 = vadd.f32 %v3138_v43, %v3098_v2  ;;  %v2984_v2 = vadd.f32 %v7862_v14, %v2943_v4 }
 0x5e7   : > { %v3025_v47 = vadd.f32 %v3024_v5, %v2984_v2  ;;  %v3267_v5 = vld [vmem:[%s8462_s4 + $0x8] sm:$0xff] }
 0x5e8   : > { %v3062_v32 = vpop.f32.mrf.mxu2 }
 0x5e9   : > { %v3063_v54 = vadd.f32 %v3062_v32, %v3022_v31  ;;  %v3100_v0 = vpop.f32.mrf.mxu3  ;;  %v3272_v31 = vld [vmem:[%s8462_s4 + $0x30] sm:$0xff]  ;;  %v3270_v32 = vld [vmem:[%s8462_s4 + $0x20] sm:$0xff] }
 0x5ea   : > { %v3101_v50 = vadd.f32 %v3100_v0, %v3060_v58  ;;  %v3030_v9 = vpop.f32.mrf.mxu0  ;;  %v3271_v58 = vld [vmem:[%s8462_s4 + $0x28] sm:$0xff]  ;;  %v3268_v0 = vld [vmem:[%s8462_s4 + $0x10] sm:$0xff] }
 0x5eb   : > { %v3031_v55 = vadd.f32 %v3030_v9, %v2990_v21 }
 0x5ec   : > { %v3141_v62 = vpop.f32.mrf.mxu1 }
 0x5ed   : > { %v7876_v20 = vadd.f32 %v3141_v62, %v3101_v50  ;;  %v3266_v50 = vld [vmem:[%s8462_s4] sm:$0xff] }
 0x5f0   : > { %v3065_v48 = vpop.f32.mrf.mxu2 }
 0x5f1   : > { %v3103_v1 = vpop.f32.mrf.mxu3  ;;  %v3066_v8 = vadd.f32 %v3065_v48, %v3025_v47 }
 0x5f2   : > { %v3104_v24 = vadd.f32 %v3103_v1, %v3063_v54  ;;  %v3033_v46 = vpop.f32.mrf.mxu0  ;;  %v3269_v54 = vld [vmem:[%s8462_s4 + $0x18] sm:$0xff] }
 0x5f3   : > { %v3034_v57 = vadd.f32 %v3033_v46, %v2993_v3 }
 0x5f4   : > { %v3144_v29 = vpop.f32.mrf.mxu1 }
 0x5f5   : > { %v7878_v40 = vadd.f32 %v3144_v29, %v3104_v24 }
 0x5f8   : > { %v3068_v52 = vpop.f32.mrf.mxu2 }
 0x5f9   : > { %v3106_v11 = vpop.f32.mrf.mxu3  ;;  %v3069_v43 = vadd.f32 %v3068_v52, %v3028_v7 }
 0x5fa   : > { %v3036_v13 = vpop.f32.mrf.mxu0  ;;  %v3107_v61 = vadd.f32 %v3106_v11, %v3066_v8 }
 0x5fb   : > { %v3037_v63 = vadd.f32 %v3036_v13, %v2996_v60 }
 0x5fc   : > { %v3147_v16 = vpop.f32.mrf.mxu1 }
 0x5fd   : > { %v7911_v14 = vadd.f32 %v3147_v16, %v3107_v61 }
 0x600   : > { %v3071_v51 = vpop.f32.mrf.mxu2 }
 0x601   : > { %v3109_v27 = vpop.f32.mrf.mxu3  ;;  %v3072_v23 = vadd.f32 %v3071_v51, %v3031_v55 }
 0x602   : > { %v3110_v28 = vadd.f32 %v3109_v27, %v3069_v43 }
 0x604   : > { %v3150_v17 = vpop.f32.mrf.mxu1 }
 0x605   : > { %v7909_v38 = vadd.f32 %v3150_v17, %v3110_v28 }
 0x608   : > { %v3074_v19 = vpop.f32.mrf.mxu2 }
 0x609   : > { %v3112_v56 = vpop.f32.mrf.mxu3  ;;  %v3075_v15 = vadd.f32 %v3074_v19, %v3034_v57 }
 0x60a   : > { %v3113_v42 = vadd.f32 %v3112_v56, %v3072_v23 }
 0x60c   : > { %v3153_v45 = vpop.f32.mrf.mxu1 }
 0x60d   : > { %v7901_v33 = vadd.f32 %v3153_v45, %v3113_v42 }
 0x610   : > { %v3077_v49 = vpop.f32.mrf.mxu2 }
 0x611   : > { %v3115_v59 = vpop.f32.mrf.mxu3  ;;  %v3078_v25 = vadd.f32 %v3077_v49, %v3037_v63 }
 0x612   : > { %v3116_v22 = vadd.f32 %v3115_v59, %v3075_v15 }
 0x614   : > { %v3156_v18 = vpop.f32.mrf.mxu1 }
 0x615   : > { %v7880_v41 = vadd.f32 %v3156_v18, %v3116_v22 }
 0x617   : > { %3182 = vrot.lane.b32.xlu1 %v7880_v41, %s5279_s30 }
 0x619   : > { %v3118_v26 = vpop.f32.mrf.mxu3 }
 0x61a   : > { %v3119_v34 = vadd.f32 %v3118_v26, %v3078_v25 }
 0x61c   : > { %v3159_v44 = vpop.f32.mrf.mxu1 }
 0x61d   : > { %v7887_v53 = vadd.f32 %v3159_v44, %v3119_v34 }
 0x61f   : > { %3216 = vrot.lane.b32.xlu2 %v7887_v53, %s5280_s16  ;;  %3184 = vrot.lane.b32.xlu0 %v7887_v53, %s5279_s30 }
 0x620   : > { %3214 = vrot.lane.b32.xlu1 %v7880_v41, %s5280_s16 }
 0x627   : > { %3248 = vrot.lane.b32.xlu2 %v7887_v53, %s5248_s25  ;;  %3180 = vrot.lane.b32.xlu0 %v7901_v33, %s5279_s30 }
 0x628   : > { %3212 = vrot.lane.b32.xlu1 %v7901_v33, %s5280_s16 }
 0x62f   : > { %3246 = vrot.lane.b32.xlu2 %v7880_v41, %s5248_s25  ;;  %3178 = vrot.lane.b32.xlu0 %v7909_v38, %s5279_s30 }
 0x630   : > { %3176 = vrot.lane.b32.xlu1 %v7911_v14, %s5279_s30 }
 0x637   : > { %3210 = vrot.lane.b32.xlu2 %v7909_v38, %s5280_s16  ;;  %3311 = vperm.xlu0 %4701, %v3273_v37  }
 0x638   : > { %3306 = vperm.xlu1 %4702, %v3272_v31  }
 0x63f   : > { %3244 = vrot.lane.b32.xlu0 %v7901_v33, %s5248_s25  ;;  %3174 = vrot.lane.b32.xlu2 %v7878_v40, %s5279_s30 }
 0x640   : > { %3242 = vrot.lane.b32.xlu1 %v7909_v38, %s5248_s25 }
 0x647   : > { %3208 = vrot.lane.b32.xlu0 %v7911_v14, %s5280_s16  ;;  %3301 = vperm.xlu2 %4700, %v3271_v58  }
 0x648   : > { %3206 = vrot.lane.b32.xlu1 %v7878_v40, %s5280_s16 }
 0x64f   : > { %3240 = vrot.lane.b32.xlu2 %v7911_v14, %s5248_s25  ;;  %3172 = vrot.lane.b32.xlu0 %v7876_v20, %s5279_s30 }
 0x650   : > { %3170 = vrot.lane.b32.xlu1 %v7874_v35, %s5279_s30 }
 0x657   : > { %3204 = vrot.lane.b32.xlu2 %v7876_v20, %s5280_s16  ;;  %3296 = vperm.xlu0 %4701, %v3270_v32  }
 0x658   : > { %3291 = vperm.xlu1 %4702, %v3269_v54  }
 0x65f   : > { %3238 = vrot.lane.b32.xlu0 %v7878_v40, %s5248_s25  ;;  %3202 = vrot.lane.b32.xlu2 %v7874_v35, %s5280_s16 }
 0x660   : > { %3286 = vperm.xlu1 %4702, %v3268_v0  }
 0x667   : > { %3236 = vrot.lane.b32.xlu0 %v7876_v20, %s5248_s25  ;;  %3234 = vrot.lane.b32.xlu2 %v7874_v35, %s5248_s25  ;;  %s5281_s25 = smov 125  }
 0x668   : > { %3276 = vperm.xlu1 %4702, %v3266_v50  }
 0x66f   : > { %3281 = vperm.xlu0 %4701, %v3267_v5  }
 0x679   : > { %v3217_v62 = vpop.permute.xlu2 %3216 }
 0x681   : > { %v3249_v1 = vpop.permute.xlu2 %3248 }
 0x689   : > { %v3183_v48 = vpop.permute.xlu1 %3182  ;;  %v3247_v30 = vpop.permute.xlu2 %3246 }
 0x68a   : > { %v3200_v17 = vmax.f32 %v7880_v41, %v3183_v48 }
 0x691   : > { %v3185_v24 = vpop.permute.xlu0 %3184  ;;  %v3211_v9 = vpop.permute.xlu2 %3210 }
 0x692   : > { %v3215_v29 = vpop.permute.xlu1 %3214  ;;  %v3201_v16 = vmax.f32 %v7887_v53, %v3185_v24 }
 0x693   : > { %v3232_v46 = vmax.f32 %v3200_v17, %v3215_v29 }
 0x694   : > { %v3233_v39 = vmax.f32 %v3201_v16, %v3217_v62 }
 0x695   : > { %v3264_v3 = vmax.f32 %v3232_v46, %v3247_v30 }
 0x696   : > { %v3265_v56 = vmax.f32 %v3233_v39, %v3249_v1 }
 0x699   : > { %v3181_v52 = vpop.permute.xlu0 %3180  ;;  %v3175_v10 = vpop.permute.xlu2 %3174 }
 0x69a   : > { %v3213_v11 = vpop.permute.xlu1 %3212  ;;  %v3199_v36 = vmax.f32 %v7901_v33, %v3181_v52  ;;  %v3196_v8 = vmax.f32 %v7878_v40, %v3175_v10 }
 0x69c   : > { %v3231_v21 = vmax.f32 %v3199_v36, %v3213_v11 }
 0x6a1   : > { %v3179_v51 = vpop.permute.xlu0 %3178  ;;  %v3302_v49 = vpop.permute.xlu2 %3301 }
 0x6a2   : > { %v3177_v27 = vpop.permute.xlu1 %3176  ;;  %v3198_v34 = vmax.f32 %v7909_v38, %v3179_v51 }
 0x6a3   : > { %v3197_v12 = vmax.f32 %v7911_v14, %v3177_v27 }
 0x6a4   : > { %v3230_v53 = vmax.f32 %v3198_v34, %v3211_v9 }
 0x6a9   : > { %v3312_v19 = vpop.permute.xlu0 %3311  ;;  %v3241_v25 = vpop.permute.xlu2 %3240 }
 0x6aa   : > { %v7973_v45 = vadd.f32 %v3312_v19, %v3265_v56  ;;  %v3307_v57 = vpop.permute.xlu1 %3306 }
 0x6ab   : > { %v7975_v15 = vadd.f32 %v3307_v57, %v3264_v3 }
 0x6ac   : > { %v3329_v59 = vmax.f32 %v7973_v45, 0.0  ;;  %v3411_v45 = vld [vmem:[%s8463_s5 + $0x8] sm:$0xff] }
 0x6ad   : > { %v3328_v22 = vmax.f32 %v7975_v15, 0.0  ;;  %v3410_v15 = vld [vmem:[%s8463_s5] sm:$0xff] }
 0x6af   : > { %v5148_v13 = vpack.i.bf16 %v3328_v22, %v3329_v59 }
 0x6b1   : > { %5149 = vrot.lane.b32.xlu0 %v5148_v13, %s8653_s18  ;;  %5139 = vrot.lane.b32.xlu2 %v5148_v13, %s5281_s25  ;;  %v3245_v60 = vpop.permute.xlu0 %3244  ;;  %v3205_v4 = vpop.permute.xlu2 %3204 }
 0x6b2   : > { %v3243_v18 = vpop.permute.xlu1 %3242  ;;  %v3263_v55 = vmax.f32 %v3231_v21, %v3245_v60 }
 0x6b3   : > { %v3262_v23 = vmax.f32 %v3230_v53, %v3243_v18 }
 0x6b4   : > { %v7987_v6 = vadd.f32 %v3302_v49, %v3263_v55 }
 0x6b6   : > { %v3327_v33 = vmax.f32 %v7987_v6, 0.0  ;;  %v3415_v6 = vld [vmem:[%s8463_s5 + $0x28] sm:$0xff] }
 0x6b9   : > { %v3209_v41 = vpop.permute.xlu0 %3208  ;;  %v3203_v58 = vpop.permute.xlu2 %3202 }
 0x6ba   : > { %v3207_v63 = vpop.permute.xlu1 %3206  ;;  %v3229_v47 = vmax.f32 %v3197_v12, %v3209_v41 }
 0x6bb   : > { %v3228_v61 = vmax.f32 %v3196_v8, %v3207_v63 }
 0x6bc   : > { %v3261_v38 = vmax.f32 %v3229_v47, %v3241_v25 }
 0x6c1   : > { %v3173_v26 = vpop.permute.xlu0 %3172  ;;  %v3235_v24 = vpop.permute.xlu2 %3234 }
 0x6c2   : > { %v3171_v44 = vpop.permute.xlu1 %3170  ;;  %v3195_v48 = vmax.f32 %v7876_v20, %v3173_v26 }
 0x6c3   : > { %v3194_v40 = vmax.f32 %v7874_v35, %v3171_v44 }
 0x6c4   : > { %v3227_v35 = vmax.f32 %v3195_v48, %v3205_v4  ;;  %v3424_v48 = vld [vmem:[%s8463_s5 + $0x70] sm:$0xff] }
 0x6c5   : > { %v3226_v1 = vmax.f32 %v3194_v40, %v3203_v58  ;;  %v3421_v40 = vld [vmem:[%s8463_s5 + $0x58] sm:$0xff] }
 0x6c7   : > { %v3258_v30 = vmax.f32 %v3226_v1, %v3235_v24  ;;  %v3427_v1 = vld [vmem:[%s8463_s5 + $0x88] sm:$0xff]  ;;  %v3426_v24 = vld [vmem:[%s8463_s5 + $0x80] sm:$0xff] }
 0x6c9   : > { %v3297_v42 = vpop.permute.xlu0 %3296 }
 0x6ca   : > { %v7990_v2 = vadd.f32 %v3297_v42, %v3262_v23  ;;  %v3292_v7 = vpop.permute.xlu1 %3291 }
 0x6cb   : > { %v8001_v37 = vadd.f32 %v3292_v7, %v3261_v38 }
 0x6cc   : > { %v3326_v43 = vmax.f32 %v7990_v2, 0.0  ;;  %v3414_v2 = vld [vmem:[%s8463_s5 + $0x20] sm:$0xff] }
 0x6cd   : > { %v3325_v0 = vmax.f32 %v8001_v37, 0.0  ;;  %v3419_v37 = vld [vmem:[%s8463_s5 + $0x48] sm:$0xff] }
 0x6ce   : > { %v5143_v28 = vpack.i.bf16 %v3326_v43, %v3327_v33 }
 0x6d0   : > { %5144 = vrot.lane.b32.xlu2 %v5143_v28, %s8653_s18  ;;  %5134 = vrot.lane.b32.xlu1 %v5143_v28, %s5281_s25 }
 0x6d1   : > { %v3239_v14 = vpop.permute.xlu0 %3238 }
 0x6d2   : > { %v3260_v31 = vmax.f32 %v3228_v61, %v3239_v14  ;;  %v3287_v32 = vpop.permute.xlu1 %3286 }
 0x6d4   : > { %v8003_v54 = vadd.f32 %v3287_v32, %v3260_v31 }
 0x6d6   : > { %v3324_v50 = vmax.f32 %v8003_v54, 0.0  ;;  %v3418_v54 = vld [vmem:[%s8463_s5 + $0x40] sm:$0xff] }
 0x6d8   : > { %v5158_v5 = vpack.i.bf16 %v3324_v50, %v3325_v0 }
 0x6d9   : > { %v3237_v62 = vpop.permute.xlu0 %3236 }
 0x6da   : > { %5159 = vrot.lane.b32.xlu1 %v5158_v5, %s8653_s18  ;;  %5154 = vrot.lane.b32.xlu0 %v5158_v5, %s5281_s25  ;;  %v3277_v29 = vpop.permute.xlu1 %3276  ;;  %v3259_v52 = vmax.f32 %v3227_v35, %v3237_v62  ;;  %v3425_v62 = vld [vmem:[%s8463_s5 + $0x78] sm:$0xff]  ;;  %v3428_v35 = vld [vmem:[%s8463_s5 + $0x90] sm:$0xff] }
 0x6db   : > { %v8015_v11 = vadd.f32 %v3277_v29, %v3258_v30  ;;  %v3429_v29 = vld [vmem:[%s8463_s5 + $0x98] sm:$0xff]  ;;  %v3431_v30 = vld [vmem:[%s8463_s5 + $0xa8] sm:$0xff] }
 0x6dd   : > { %v3322_v51 = vmax.f32 %v8015_v11, 0.0  ;;  %v3433_v11 = vld [vmem:[%s8463_s5 + $0xb8] sm:$0xff] }
 0x6e1   : > { %v3282_v16 = vpop.permute.xlu0 %3281 }
 0x6e2   : > { %v8017_v9 = vadd.f32 %v3282_v16, %v3259_v52  ;;  %5174 = vrot.lane.b32.xlu1 %v5148_v13, %s5270_s23  ;;  %v3430_v52 = vld [vmem:[%s8463_s5 + $0xa0] sm:$0xff]  ;;  %v3432_v16 = vld [vmem:[%s8463_s5 + $0xb0] sm:$0xff] }
 0x6e4   : > { %v3323_v20 = vmax.f32 %v8017_v9, 0.0  ;;  %v3435_v9 = vld [vmem:[%s8463_s5 + $0xc8] sm:$0xff] }
 0x6e6   : > { %v5168_v27 = vpack.i.bf16 %v3322_v51, %v3323_v20 }
 0x6e8   : > { %5169 = vrot.lane.b32.xlu0 %v5168_v27, %s8653_s18  ;;  %5164 = vrot.lane.b32.xlu2 %v5168_v27, %s5281_s25 }
 0x6ea   : > { %5189 = vrot.lane.b32.xlu1 %v5168_v27, %s5270_s23  ;;  %v3436_v27 = vld [vmem:[%s8463_s5 + $0xd0] sm:$0xff] }
 0x6f0   : > { %5184 = vrot.lane.b32.xlu0 %v5158_v5, %s5270_s23  ;;  %5179 = vrot.lane.b32.xlu2 %v5143_v28, %s5270_s23  ;;  %v3422_v5 = vld [vmem:[%s8463_s5 + $0x60] sm:$0xff] }
 0x70b   : > { %v5140_v17 = vpop.permute.xlu2 %5139 }
 0x70c   : > { %v5141_v39 = vunpack.i.l.bf16 %v5140_v17  ;;  %v5142_v46 = vunpack.i.h.bf16 %v5140_v17  ;;  %v3439_v17 = vld [vmem:[%s8463_s5 + $0xe8] sm:$0xff] }
 0x70e   : > { %3523 = vmatpush.msra.mxu2 %v5141_v39  ;;  %v3438_v39 = vld [vmem:[%s8463_s5 + $0xe0] sm:$0xff] }
 0x710   : > { %3524 = vmatpush.msra.mxu2 %v5142_v46  ;;  %v3441_v46 = vld [vmem:[%s8463_s5 + $0xf8] sm:$0xff] }
 0x723   : > { %v5150_v56 = vpop.permute.xlu0 %5149 }
 0x724   : > { %v5151_v19 = vunpack.i.l.bf16 %v5150_v56  ;;  %v5152_v3 = vunpack.i.h.bf16 %v5150_v56  ;;  %v3440_v56 = vld [vmem:[%s8463_s5 + $0xf0] sm:$0xff] }
 0x726   : > { %3458 = vmatpush.msra.mxu0 %v5151_v19  ;;  %v3442_v19 = vld [vmem:[%s8464_s6] sm:$0xff] }
 0x728   : > { %3459 = vmatpush.msra.mxu0 %v5152_v3 }
 0x72a   : > { %v5145_v57 = vpop.permute.xlu2 %5144 }
 0x72b   : > { %v5146_v10 = vunpack.i.l.bf16 %v5145_v57  ;;  %v5147_v13 = vunpack.i.h.bf16 %v5145_v57 }
 0x72d   : > { %3460 = vmatpush.msra.mxu0 %v5146_v10 }
 0x72f   : > { %3461 = vmatpush.msra.mxu0 %v5147_v13 }
 0x742   : > { %v5135_v60 = vpop.permute.xlu1 %5134  ;;  %v5165_v41 = vpop.permute.xlu2 %5164 }
 0x743   : > { %v5136_v18 = vunpack.i.l.bf16 %v5135_v60  ;;  %v5137_v49 = vunpack.i.h.bf16 %v5135_v60  ;;  %v5166_v44 = vunpack.i.l.bf16 %v5165_v41  ;;  %v5167_v55 = vunpack.i.h.bf16 %v5165_v41  ;;  %v3443_v60 = vld [vmem:[%s8464_s6 + $0x8] sm:$0xff] }
 0x745   : > { %3525 = vmatpush.msra.mxu2 %v5136_v18 }
 0x747   : > { %3526 = vmatpush.msra.mxu2 %v5137_v49 }
 0x74a   : > { %v5180_v4 = vpop.permute.xlu2 %5179 }
 0x74b   : > { %v5181_v12 = vunpack.i.l.bf16 %v5180_v4  ;;  %v5182_v47 = vunpack.i.h.bf16 %v5180_v4 }
 0x74c   : > { %v5155_v63 = vpop.permute.xlu0 %5154  ;;  %v5160_v36 = vpop.permute.xlu1 %5159 }
 0x74d   : > { %v5156_v25 = vunpack.i.l.bf16 %v5155_v63  ;;  %v5161_v26 = vunpack.i.l.bf16 %v5160_v36  ;;  %v5157_v34 = vunpack.i.h.bf16 %v5155_v63  ;;  %v5162_v21 = vunpack.i.h.bf16 %v5160_v36  ;;  %v3444_v36 = vld [vmem:[%s8464_s6 + $0x10] sm:$0xff] }
 0x74f   : > { %3462 = vmatpush.msra.mxu0 %v5161_v26  ;;  %3527 = vmatpush.msra.mxu2 %v5156_v25 }
 0x751   : > { %3463 = vmatpush.msra.mxu0 %v5162_v21  ;;  %3528 = vmatpush.msra.mxu2 %v5157_v34 }
 0x753   : > { %3529 = vmatpush.msra.mxu2 %v5166_v44  ;;  %v3445_v44 = vld [vmem:[%s8464_s6 + $0x18] sm:$0xff] }
 0x754   : > { %v5175_v53 = vpop.permute.xlu1 %5174 }
 0x755   : > { %v5176_v23 = vunpack.i.l.bf16 %v5175_v53  ;;  %3530 = vmatpush.msra.mxu2 %v5167_v55  ;;  %v5177_v42 = vunpack.i.h.bf16 %v5175_v53 }
 0x757   : > { %3531 = vmatpush.msra.mxu2 %v5176_v23 }
 0x759   : > { %3532 = vmatpush.msra.mxu2 %v5177_v42  ;;  %v3446_v42 = vld [vmem:[%s8464_s6 + $0x20] sm:$0xff] }
 0x75a   : > { %v5170_v7 = vpop.permute.xlu0 %5169 }
 0x75b   : > { %v5171_v8 = vunpack.i.l.bf16 %v5170_v7  ;;  %3533 = vmatpush.msra.mxu2 %v5181_v12  ;;  %v5172_v28 = vunpack.i.h.bf16 %v5170_v7 }
 0x75c   : > { %v5190_v14 = vpop.permute.xlu1 %5189 }
 0x75d   : > { %3464 = vmatpush.msra.mxu0 %v5171_v8  ;;  %3534 = vmatpush.msra.mxu2 %v5182_v47  ;;  %v5191_v58 = vunpack.i.l.bf16 %v5190_v14  ;;  %v5192_v32 = vunpack.i.h.bf16 %v5190_v14 }
 0x75f   : > { %3465 = vmatpush.msra.mxu0 %v5172_v28  ;;  %v3447_v28 = vld [vmem:[%s8464_s6 + $0x28] sm:$0xff] }
 0x761   : > { %3466 = vmatpush.msra.mxu0 %v3329_v59  ;;  %v3413_v59 = vld [vmem:[%s8463_s5 + $0x18] sm:$0xff] }
 0x762   : > { %v5185_v61 = vpop.permute.xlu0 %5184 }
 0x763   : > { %v5186_v38 = vunpack.i.l.bf16 %v5185_v61  ;;  %3467 = vmatpush.msra.mxu0 %v3328_v22  ;;  %v5187_v31 = vunpack.i.h.bf16 %v5185_v61  ;;  %v3412_v22 = vld [vmem:[%s8463_s5 + $0x10] sm:$0xff] }
 0x765   : > { %3468 = vmatpush.msra.mxu0 %v3327_v33  ;;  %3535 = vmatpush.msra.mxu2 %v5186_v38  ;;  %v3417_v33 = vld [vmem:[%s8463_s5 + $0x38] sm:$0xff] }
 0x767   : > { %3469 = vmatpush.msra.mxu0 %v3326_v43  ;;  %3536 = vmatpush.msra.mxu2 %v5187_v31  ;;  %v3416_v43 = vld [vmem:[%s8463_s5 + $0x30] sm:$0xff] }
 0x769   : > { %3470 = vmatpush.msra.mxu0 %v3325_v0  ;;  %3537 = vmatpush.msra.mxu2 %v5191_v58  ;;  %v3420_v0 = vld [vmem:[%s8463_s5 + $0x50] sm:$0xff] }
 0x76a   : > { %v3448_v58 = vld [vmem:[%s8464_s6 + $0x30] sm:$0xff] }
 0x76b   : > { %3471 = vmatpush.msra.mxu0 %v3324_v50  ;;  %3538 = vmatpush.msra.mxu2 %v5192_v32  ;;  %v3423_v50 = vld [vmem:[%s8463_s5 + $0x68] sm:$0xff] }
 0x76c   : > { %3539 = vmatmul.f32.vlgmr.msra.gmra.mxu2 %v3411_v45 }
 0x76d   : > { %3472 = vmatpush.msra.mxu0 %v3323_v20  ;;  %v3437_v20 = vld [vmem:[%s8463_s5 + $0xd8] sm:$0xff] }
 0x76f   : > { %3473 = vmatpush.msra.mxu0 %v3322_v51  ;;  %v3434_v51 = vld [vmem:[%s8463_s5 + $0xc0] sm:$0xff] }
 0x770   : > { %3474 = vmatmul.f32.vlgmr.msra.gmra.mxu0 %v3410_v15 }
 0x774   : > { %3542 = vmatmul.f32.gmra.mxu2 %v3413_v59 }
 0x778   : > { %3477 = vmatmul.f32.gmra.mxu0 %v3412_v22  ;;  %v3449_v22 = vld [vmem:[%s8464_s6 + $0x38] sm:$0xff] }
 0x77c   : > { %3545 = vmatmul.f32.gmra.mxu2 %v3415_v6 }
 0x780   : > { %3480 = vmatmul.f32.gmra.mxu0 %v3414_v2 }
 0x784   : > { %3548 = vmatmul.f32.gmra.mxu2 %v3417_v33 }
 0x788   : > { %3483 = vmatmul.f32.gmra.mxu0 %v3416_v43 }
 0x78c   : > { %3551 = vmatmul.f32.gmra.mxu2 %v3419_v37  ;;  %v3450_v37 = vld [vmem:[%s8464_s6 + $0x40] sm:$0xff] }
 0x790   : > { %3486 = vmatmul.f32.gmra.mxu0 %v3418_v54 }
 0x794   : > { %3554 = vmatmul.f32.gmra.mxu2 %v3421_v40 }
 0x798   : > { %3489 = vmatmul.f32.gmra.mxu0 %v3420_v0 }
 0x79c   : > { %3557 = vmatmul.f32.gmra.mxu2 %v3423_v50 }
 0x7a0   : > { %3492 = vmatmul.f32.gmra.mxu0 %v3422_v5 }
 0x7a4   : > { %3560 = vmatmul.f32.gmra.mxu2 %v3425_v62 }
 0x7a8   : > { %3495 = vmatmul.f32.gmra.mxu0 %v3424_v48 }
 0x7ac   : > { %3563 = vmatmul.f32.gmra.mxu2 %v3427_v1 }
 0x7b0   : > { %3498 = vmatmul.f32.gmra.mxu0 %v3426_v24 }
 0x7b4   : > { %3566 = vmatmul.f32.gmra.mxu2 %v3429_v29 }
 0x7b8   : > { %3501 = vmatmul.f32.gmra.mxu0 %v3428_v35 }
 0x7bc   : > { %3569 = vmatmul.f32.gmra.mxu2 %v3431_v30 }
 0x7c0   : > { %3504 = vmatmul.f32.gmra.mxu0 %v3430_v52 }
 0x7c4   : > { %3572 = vmatmul.f32.gmra.mxu2 %v3433_v11 }
 0x7c8   : > { %3507 = vmatmul.f32.gmra.mxu0 %v3432_v16 }
 0x7cc   : > { %3575 = vmatmul.f32.gmra.mxu2 %v3435_v9 }
 0x7d0   : > { %3510 = vmatmul.f32.gmra.mxu0 %v3434_v51  ;;  %v3456_v51 = vld [vmem:[%s8464_s6 + $0x70] sm:$0xff] }
 0x7d4   : > { %3578 = vmatmul.f32.gmra.mxu2 %v3437_v20  ;;  %v3455_v20 = vld [vmem:[%s8464_s6 + $0x68] sm:$0xff] }
 0x7d8   : > { %3513 = vmatmul.f32.gmra.mxu0 %v3436_v27  ;;  %v3457_v27 = vld [vmem:[%s8464_s6 + $0x78] sm:$0xff] }
 0x7dc   : > { %3581 = vmatmul.f32.gmra.mxu2 %v3439_v17 }
 0x7e0   : > { %3516 = vmatmul.f32.gmra.mxu0 %v3438_v39  ;;  %v3454_v39 = vld [vmem:[%s8464_s6 + $0x60] sm:$0xff] }
 0x7e4   : > { %3584 = vmatmul.f32.gmra.mxu2 %v3441_v46 }
 0x7e8   : > { %3519 = vmatmul.f32.gmra.mxu0 %v3440_v56 }
 0x7ed   : > { %v3475_v3 = vpop.f32.mrf.mxu0 }
 0x7ee   : > { %v3476_v57 = vadd.f32 %v3475_v3, %v3442_v19  ;;  %v3453_v3 = vld [vmem:[%s8464_s6 + $0x58] sm:$0xff] }
 0x7ef   : > { %v3540_v10 = vpop.f32.mrf.mxu2 }
 0x7f0   : > { %v8146_v13 = vadd.f32 %v3540_v10, %v3476_v57 }
 0x7f5   : > { %v3478_v18 = vpop.f32.mrf.mxu0 }
 0x7f6   : > { %v3479_v49 = vadd.f32 %v3478_v18, %v3443_v60 }
 0x7f7   : > { %v3543_v41 = vpop.f32.mrf.mxu2 }
 0x7f8   : > { %v8151_v63 = vadd.f32 %v3543_v41, %v3479_v49  ;;  %v3452_v49 = vld [vmem:[%s8464_s6 + $0x50] sm:$0xff] }
 0x7fd   : > { %v3481_v25 = vpop.f32.mrf.mxu0 }
 0x7fe   : > { %v3482_v26 = vadd.f32 %v3481_v25, %v3444_v36 }
 0x7ff   : > { %v3546_v34 = vpop.f32.mrf.mxu2 }
 0x800   : > { %v8156_v21 = vadd.f32 %v3546_v34, %v3482_v26  ;;  %v3451_v26 = vld [vmem:[%s8464_s6 + $0x48] sm:$0xff] }
 0x805   : > { %v3484_v55 = vpop.f32.mrf.mxu0 }
 0x806   : > { %v3485_v53 = vadd.f32 %v3484_v55, %v3445_v44 }
 0x807   : > { %v3549_v23 = vpop.f32.mrf.mxu2 }
 0x808   : > { %v8161_v4 = vadd.f32 %v3549_v23, %v3485_v53 }
 0x80d   : > { %v3487_v12 = vpop.f32.mrf.mxu0 }
 0x80e   : > { %v3488_v7 = vadd.f32 %v3487_v12, %v3446_v42 }
 0x80f   : > { %v3552_v47 = vpop.f32.mrf.mxu2 }
 0x810   : > { %v8166_v8 = vadd.f32 %v3552_v47, %v3488_v7 }
 0x815   : > { %v3490_v61 = vpop.f32.mrf.mxu0 }
 0x816   : > { %v3491_v38 = vadd.f32 %v3490_v61, %v3447_v28 }
 0x817   : > { %v3555_v14 = vpop.f32.mrf.mxu2 }
 0x818   : > { %v8171_v31 = vadd.f32 %v3555_v14, %v3491_v38 }
 0x81d   : > { %v3493_v32 = vpop.f32.mrf.mxu0 }
 0x81e   : > { %v3494_v45 = vadd.f32 %v3493_v32, %v3448_v58 }
 0x81f   : > { %v3558_v15 = vpop.f32.mrf.mxu2 }
 0x820   : > { %v8176_v59 = vadd.f32 %v3558_v15, %v3494_v45  ;;  %v3593_v45 = vmax.f32 %v8171_v31, 0.0  ;;  %v3592_v15 = vmax.f32 %v8166_v8, 0.0  ;;  %v3604_v31 = vld [vmem:[%s8465_s7] sm:$0xff]  ;;  %v3609_v8 = vld [vmem:[%s8465_s7 + $0x28] sm:$0xff] }
 0x822   : > { %v3594_v32 = vmax.f32 %v8176_v59, 0.0  ;;  %v3610_v59 = vld [vmem:[%s8465_s7 + $0x30] sm:$0xff] }
 0x825   : > { %v3496_v6 = vpop.f32.mrf.mxu0 }
 0x826   : > { %v3497_v2 = vadd.f32 %v3496_v6, %v3449_v22  ;;  %v3591_v22 = vmax.f32 %v8161_v4, 0.0  ;;  %v3590_v6 = vmax.f32 %v8156_v21, 0.0  ;;  %v3605_v4 = vld [vmem:[%s8465_s7 + $0x8] sm:$0xff]  ;;  %v3606_v21 = vld [vmem:[%s8465_s7 + $0x10] sm:$0xff] }
 0x827   : > { %v3561_v33 = vpop.f32.mrf.mxu2 }
 0x828   : > { %v3562_v43 = vadd.f32 %v3561_v33, %v3497_v2  ;;  %v3589_v2 = vmax.f32 %v8151_v63, 0.0  ;;  %v3588_v33 = vmax.f32 %v8146_v13, 0.0  ;;  %v3607_v13 = vld [vmem:[%s8465_s7 + $0x18] sm:$0xff]  ;;  %v3608_v63 = vld [vmem:[%s8465_s7 + $0x20] sm:$0xff] }
 0x82a   : > { %v3595_v58 = vmax.f32 %v3562_v43, 0.0  ;;  %v3611_v43 = vld [vmem:[%s8465_s7 + $0x38] sm:$0xff] }
 0x82d   : > { %v3499_v54 = vpop.f32.mrf.mxu0 }
 0x82e   : > { %v3500_v40 = vadd.f32 %v3499_v54, %v3450_v37  ;;  %v3612_v37 = vld [vmem:[%s8465_s7 + $0x40] sm:$0xff]  ;;  %v3613_v54 = vld [vmem:[%s8465_s7 + $0x48] sm:$0xff] }
 0x82f   : > { %v3564_v0 = vpop.f32.mrf.mxu2 }
 0x830   : > { %v3565_v50 = vadd.f32 %v3564_v0, %v3500_v40  ;;  %v3614_v40 = vld [vmem:[%s8465_s7 + $0x50] sm:$0xff]  ;;  %v3615_v0 = vld [vmem:[%s8465_s7 + $0x58] sm:$0xff] }
 0x832   : > { %v3596_v14 = vmax.f32 %v3565_v50, 0.0  ;;  %v3616_v50 = vld [vmem:[%s8465_s7 + $0x60] sm:$0xff] }
 0x835   : > { %v3502_v5 = vpop.f32.mrf.mxu0 }
 0x836   : > { %v3503_v53 = vadd.f32 %v3502_v5, %v3451_v26  ;;  %v3617_v5 = vld [vmem:[%s8465_s7 + $0x68] sm:$0xff] }
 0x837   : > { %v3567_v62 = vpop.f32.mrf.mxu2 }
 0x838   : > { %v3568_v47 = vadd.f32 %v3567_v62, %v3503_v53  ;;  %v3618_v62 = vld [vmem:[%s8465_s7 + $0x70] sm:$0xff]  ;;  %v3629_v53 = vld [vmem:[%s8812_s29 + $0x48] sm:$0xff] }
 0x83a   : > { %v3597_v38 = vmax.f32 %v3568_v47, 0.0 }
 0x83d   : > { %v3505_v48 = vpop.f32.mrf.mxu0 }
 0x83e   : > { %v3506_v34 = vadd.f32 %v3505_v48, %v3452_v49  ;;  %v3619_v48 = vld [vmem:[%s8465_s7 + $0x78] sm:$0xff] }
 0x83f   : > { %v3570_v1 = vpop.f32.mrf.mxu2 }
 0x840   : > { %v3571_v12 = vadd.f32 %v3570_v1, %v3506_v34  ;;  %v3630_v34 = vld [vmem:[%s8812_s29 + $0x50] sm:$0xff] }
 0x842   : > { %v3598_v61 = vmax.f32 %v3571_v12, 0.0  ;;  %v3628_v12 = vld [vmem:[%s8812_s29 + $0x40] sm:$0xff] }
 0x845   : > { %v3508_v24 = vpop.f32.mrf.mxu0 }
 0x846   : > { %v3509_v41 = vadd.f32 %v3508_v24, %v3453_v3  ;;  %v3633_v3 = vld [vmem:[%s8812_s29 + $0x68] sm:$0xff] }
 0x847   : > { %v3573_v29 = vpop.f32.mrf.mxu2 }
 0x848   : > { %v3574_v23 = vadd.f32 %v3573_v29, %v3509_v41 }
 0x84a   : > { %v3599_v28 = vmax.f32 %v3574_v23, 0.0 }
 0x84d   : > { %v3511_v35 = vpop.f32.mrf.mxu0 }
 0x84e   : > { %v3512_v10 = vadd.f32 %v3511_v35, %v3454_v39 }
 0x84f   : > { %v3576_v30 = vpop.f32.mrf.mxu2 }
 0x850   : > { %v3577_v44 = vadd.f32 %v3576_v30, %v3512_v10 }
 0x852   : > { %v3600_v7 = vmax.f32 %v3577_v44, 0.0 }
 0x855   : > { %v3514_v52 = vpop.f32.mrf.mxu0 }
 0x856   : > { %v3515_v56 = vadd.f32 %v3514_v52, %v3455_v20 }
 0x857   : > { %v3579_v11 = vpop.f32.mrf.mxu2 }
 0x858   : > { %v3580_v36 = vadd.f32 %v3579_v11, %v3515_v56  ;;  %v3634_v56 = vld [vmem:[%s8812_s29 + $0x70] sm:$0xff] }
 0x85a   : > { %v3601_v42 = vmax.f32 %v3580_v36, 0.0  ;;  %v3631_v36 = vld [vmem:[%s8812_s29 + $0x58] sm:$0xff] }
 0x85d   : > { %v3517_v16 = vpop.f32.mrf.mxu0 }
 0x85e   : > { %v3518_v17 = vadd.f32 %v3517_v16, %v3456_v51 }
 0x85f   : > { %v3582_v9 = vpop.f32.mrf.mxu2 }
 0x860   : > { %v3583_v60 = vadd.f32 %v3582_v9, %v3518_v17 }
 0x862   : > { %v3602_v55 = vmax.f32 %v3583_v60, 0.0 }
 0x865   : > { %v3520_v46 = vpop.f32.mrf.mxu0 }
 0x866   : > { %v3521_v19 = vadd.f32 %v3520_v46, %v3457_v27 }
 0x867   : > { %v3585_v57 = vpop.f32.mrf.mxu2 }
 0x868   : > { %v3586_v18 = vadd.f32 %v3585_v57, %v3521_v19  ;;  %v3635_v19 = vld [vmem:[%s8812_s29 + $0x78] sm:$0xff] }
 0x86a   : > { %v3603_v25 = vmax.f32 %v3586_v18, 0.0  ;;  %v3632_v18 = vld [vmem:[%s8812_s29 + $0x60] sm:$0xff] }
 0x86c   : > { %3636 = vmatpush.msra.mxu3 %v3603_v25 }
 0x86e   : > { %3637 = vmatpush.msra.mxu3 %v3602_v55 }
 0x870   : > { %3638 = vmatpush.msra.mxu3 %v3601_v42 }
 0x872   : > { %3639 = vmatpush.msra.mxu3 %v3600_v7 }
 0x874   : > { %3640 = vmatpush.msra.mxu3 %v3599_v28  ;;  %v3627_v28 = vld [vmem:[%s8812_s29 + $0x38] sm:$0xff] }
 0x876   : > { %3641 = vmatpush.msra.mxu3 %v3598_v61 }
 0x878   : > { %3642 = vmatpush.msra.mxu3 %v3597_v38 }
 0x87a   : > { %3643 = vmatpush.msra.mxu3 %v3596_v14  ;;  %v3626_v14 = vld [vmem:[%s8812_s29 + $0x30] sm:$0xff] }
 0x87c   : > { %3644 = vmatpush.msra.mxu3 %v3595_v58 }
 0x87e   : > { %3645 = vmatpush.msra.mxu3 %v3594_v32 }
 0x880   : > { %3646 = vmatpush.msra.mxu3 %v3593_v45  ;;  %v3625_v45 = vld [vmem:[%s8812_s29 + $0x28] sm:$0xff] }
 0x882   : > { %3647 = vmatpush.msra.mxu3 %v3592_v15 }
 0x884   : > { %3648 = vmatpush.msra.mxu3 %v3591_v22 }
 0x886   : > { %3649 = vmatpush.msra.mxu3 %v3590_v6  ;;  %v3624_v6 = vld [vmem:[%s8812_s29 + $0x20] sm:$0xff] }
 0x888   : > { %3650 = vmatpush.msra.mxu3 %v3589_v2 }
 0x88a   : > { %3651 = vmatpush.msra.mxu3 %v3588_v33 }
 0x88b   : > { %3652 = vmatmul.f32.vlgmr.msra.gmra.mxu3 %v3604_v31  ;;  %v3623_v31 = vld [vmem:[%s8812_s29 + $0x18] sm:$0xff] }
 0x893   : > { %3655 = vmatmul.f32.gmra.mxu3 %v3605_v4 }
 0x89b   : > { %3658 = vmatmul.f32.gmra.mxu3 %v3606_v21 }
 0x8a3   : > { %3661 = vmatmul.f32.gmra.mxu3 %v3607_v13  ;;  %v3622_v13 = vld [vmem:[%s8812_s29 + $0x10] sm:$0xff] }
 0x8ab   : > { %3664 = vmatmul.f32.gmra.mxu3 %v3608_v63 }
 0x8b3   : > { %3667 = vmatmul.f32.gmra.mxu3 %v3609_v8 }
 0x8bb   : > { %3670 = vmatmul.f32.gmra.mxu3 %v3610_v59  ;;  %v3621_v59 = vld [vmem:[%s8812_s29 + $0x8] sm:$0xff] }
 0x8c3   : > { %3673 = vmatmul.f32.gmra.mxu3 %v3611_v43 }
 0x8cb   : > { %3676 = vmatmul.f32.gmra.mxu3 %v3612_v37 }
 0x8d3   : > { %3679 = vmatmul.f32.gmra.mxu3 %v3613_v54  ;;  %v3620_v54 = vld [vmem:[%s8812_s29] sm:$0xff] }
 0x8db   : > { %3682 = vmatmul.f32.gmra.mxu3 %v3614_v40 }
 0x8e3   : > { %3685 = vmatmul.f32.gmra.mxu3 %v3615_v0 }
 0x8eb   : > { %3688 = vmatmul.f32.gmra.mxu3 %v3616_v50 }
 0x8f3   : > { %3691 = vmatmul.f32.gmra.mxu3 %v3617_v5 }
 0x8fb   : > { %3694 = vmatmul.f32.gmra.mxu3 %v3618_v62 }
 0x903   : > { %3697 = vmatmul.f32.gmra.mxu3 %v3619_v48 }
 0x90e   : > { %v8260_v1 = vpop.f32.mrf.mxu3 }
 0x90f   : > { %v3654_v50 = vadd.f32 %v8260_v1, %v3620_v54  ;;  %v3720_v1 = vld [vmem:[%s8813_s15 + $0x18] sm:$0xff] }
 0x911   : > { %v3701_v48 = vmax.f32 %v3654_v50, 0.0 }
 0x916   : > { %v8262_v24 = vpop.f32.mrf.mxu3 }
 0x917   : > { %v3657_v40 = vadd.f32 %v8262_v24, %v3621_v59  ;;  %v3721_v24 = vld [vmem:[%s8813_s15 + $0x20] sm:$0xff] }
 0x919   : > { %v3702_v62 = vmax.f32 %v3657_v40, 0.0  ;;  %v3747_v40 = vld [vmem:[%s8815_s13 + $0x70] sm:$0xff] }
 0x91e   : > { %v8264_v29 = vpop.f32.mrf.mxu3 }
 0x91f   : > { %v3660_v43 = vadd.f32 %v8264_v29, %v3622_v13  ;;  %v3719_v29 = vld [vmem:[%s8813_s15 + $0x10] sm:$0xff] }
 0x921   : > { %v3703_v5 = vmax.f32 %v3660_v43, 0.0  ;;  %v3746_v43 = vld [vmem:[%s8815_s13 + $0x68] sm:$0xff] }
 0x926   : > { %v8266_v35 = vpop.f32.mrf.mxu3 }
 0x927   : > { %v3663_v63 = vadd.f32 %v8266_v35, %v3623_v31  ;;  %v3722_v35 = vld [vmem:[%s8813_s15 + $0x28] sm:$0xff] }
 0x929   : > { %v3704_v0 = vmax.f32 %v3663_v63, 0.0  ;;  %v3745_v63 = vld [vmem:[%s8815_s13 + $0x60] sm:$0xff] }
 0x92e   : > { %v3665_v30 = vpop.f32.mrf.mxu3 }
 0x92f   : > { %v3666_v4 = vadd.f32 %v3665_v30, %v3624_v6  ;;  %v3723_v30 = vld [vmem:[%s8813_s15 + $0x30] sm:$0xff] }
 0x931   : > { %v3705_v37 = vmax.f32 %v3666_v4, 0.0  ;;  %v3744_v4 = vld [vmem:[%s8815_s13 + $0x58] sm:$0xff] }
 0x936   : > { %v3668_v52 = vpop.f32.mrf.mxu3 }
 0x937   : > { %v3669_v2 = vadd.f32 %v3668_v52, %v3625_v45  ;;  %v3724_v52 = vld [vmem:[%s8813_s15 + $0x38] sm:$0xff] }
 0x939   : > { %v3706_v8 = vmax.f32 %v3669_v2, 0.0  ;;  %v3734_v2 = vld [vmem:[%s8815_s13 + $0x8] sm:$0xff] }
 0x93e   : > { %v3671_v11 = vpop.f32.mrf.mxu3 }
 0x93f   : > { %v3672_v15 = vadd.f32 %v3671_v11, %v3626_v14  ;;  %v3725_v11 = vld [vmem:[%s8813_s15 + $0x40] sm:$0xff] }
 0x941   : > { %v3707_v21 = vmax.f32 %v3672_v15, 0.0  ;;  %v3743_v15 = vld [vmem:[%s8815_s13 + $0x50] sm:$0xff] }
 0x946   : > { %v3674_v16 = vpop.f32.mrf.mxu3 }
 0x947   : > { %v3675_v58 = vadd.f32 %v3674_v16, %v3627_v28  ;;  %v3726_v16 = vld [vmem:[%s8813_s15 + $0x48] sm:$0xff] }
 0x949   : > { %v3708_v33 = vmax.f32 %v3675_v58, 0.0  ;;  %v3733_v58 = vld [vmem:[%s8815_s13] sm:$0xff] }
 0x94e   : > { %v3677_v9 = vpop.f32.mrf.mxu3 }
 0x94f   : > { %v3678_v61 = vadd.f32 %v3677_v9, %v3628_v12  ;;  %v3717_v9 = vld [vmem:[%s8813_s15] sm:$0xff] }
 0x951   : > { %v3709_v22 = vmax.f32 %v3678_v61, 0.0  ;;  %v3742_v61 = vld [vmem:[%s8815_s13 + $0x48] sm:$0xff] }
 0x956   : > { %v3680_v51 = vpop.f32.mrf.mxu3 }
 0x957   : > { %v3681_v7 = vadd.f32 %v3680_v51, %v3629_v53  ;;  %v3727_v51 = vld [vmem:[%s8813_s15 + $0x50] sm:$0xff] }
 0x959   : > { %v3710_v32 = vmax.f32 %v3681_v7, 0.0  ;;  %v3741_v7 = vld [vmem:[%s8815_s13 + $0x40] sm:$0xff] }
 0x95e   : > { %v3683_v20 = vpop.f32.mrf.mxu3 }
 0x95f   : > { %v3684_v23 = vadd.f32 %v3683_v20, %v3630_v34  ;;  %v3718_v20 = vld [vmem:[%s8813_s15 + $0x8] sm:$0xff] }
 0x961   : > { %v3711_v38 = vmax.f32 %v3684_v23, 0.0  ;;  %v3740_v23 = vld [vmem:[%s8815_s13 + $0x38] sm:$0xff] }
 0x966   : > { %v3686_v27 = vpop.f32.mrf.mxu3 }
 0x967   : > { %v3687_v44 = vadd.f32 %v3686_v27, %v3631_v36  ;;  %v3728_v27 = vld [vmem:[%s8813_s15 + $0x58] sm:$0xff] }
 0x969   : > { %v3712_v47 = vmax.f32 %v3687_v44, 0.0  ;;  %v3739_v44 = vld [vmem:[%s8815_s13 + $0x30] sm:$0xff] }
 0x96e   : > { %v3689_v17 = vpop.f32.mrf.mxu3 }
 0x96f   : > { %v3690_v25 = vadd.f32 %v3689_v17, %v3632_v18  ;;  %v3729_v17 = vld [vmem:[%s8813_s15 + $0x60] sm:$0xff] }
 0x971   : > { %v3713_v42 = vmax.f32 %v3690_v25, 0.0  ;;  %v3738_v25 = vld [vmem:[%s8815_s13 + $0x28] sm:$0xff] }
 0x976   : > { %v3692_v39 = vpop.f32.mrf.mxu3 }
 0x977   : > { %v3693_v49 = vadd.f32 %v3692_v39, %v3633_v3  ;;  %v3730_v39 = vld [vmem:[%s8813_s15 + $0x68] sm:$0xff] }
 0x979   : > { %v3714_v55 = vmax.f32 %v3693_v49, 0.0  ;;  %v3737_v49 = vld [vmem:[%s8815_s13 + $0x20] sm:$0xff] }
 0x97e   : > { %v3695_v46 = vpop.f32.mrf.mxu3 }
 0x97f   : > { %v3696_v10 = vadd.f32 %v3695_v46, %v3634_v56  ;;  %v3731_v46 = vld [vmem:[%s8813_s15 + $0x70] sm:$0xff]  ;;  %v3732_v56 = vld [vmem:[%s8813_s15 + $0x78] sm:$0xff] }
 0x981   : > { %v3715_v26 = vmax.f32 %v3696_v10, 0.0  ;;  %v3736_v10 = vld [vmem:[%s8815_s13 + $0x18] sm:$0xff] }
 0x986   : > { %v3698_v57 = vpop.f32.mrf.mxu3 }
 0x987   : > { %v3699_v60 = vadd.f32 %v3698_v57, %v3635_v19  ;;  %v3735_v19 = vld [vmem:[%s8815_s13 + $0x10] sm:$0xff] }
 0x989   : > { %v3716_v41 = vmax.f32 %v3699_v60, 0.0 }
 0x98b   : > { %3749 = vmatpush.msrb.mxu0 %v3716_v41  ;;  %3929 = vmatpush.msrb.mxu1 %v3716_v41 }
 0x98d   : > { %3750 = vmatpush.msrb.mxu0 %v3715_v26  ;;  %3930 = vmatpush.msrb.mxu1 %v3715_v26 }
 0x98f   : > { %3751 = vmatpush.msrb.mxu0 %v3714_v55  ;;  %3931 = vmatpush.msrb.mxu1 %v3714_v55 }
 0x991   : > { %3752 = vmatpush.msrb.mxu0 %v3713_v42  ;;  %3932 = vmatpush.msrb.mxu1 %v3713_v42 }
 0x993   : > { %3753 = vmatpush.msrb.mxu0 %v3712_v47  ;;  %3933 = vmatpush.msrb.mxu1 %v3712_v47 }
 0x995   : > { %3754 = vmatpush.msrb.mxu0 %v3711_v38  ;;  %3934 = vmatpush.msrb.mxu1 %v3711_v38 }
 0x997   : > { %3755 = vmatpush.msrb.mxu0 %v3710_v32  ;;  %3935 = vmatpush.msrb.mxu1 %v3710_v32 }
 0x999   : > { %3756 = vmatpush.msrb.mxu0 %v3709_v22  ;;  %3936 = vmatpush.msrb.mxu1 %v3709_v22 }
 0x99b   : > { %3757 = vmatpush.msrb.mxu0 %v3708_v33  ;;  %3937 = vmatpush.msrb.mxu1 %v3708_v33 }
 0x99d   : > { %3758 = vmatpush.msrb.mxu0 %v3707_v21  ;;  %3938 = vmatpush.msrb.mxu1 %v3707_v21 }
 0x99f   : > { %3759 = vmatpush.msrb.mxu0 %v3706_v8  ;;  %3939 = vmatpush.msrb.mxu1 %v3706_v8 }
 0x9a1   : > { %3760 = vmatpush.msrb.mxu0 %v3705_v37  ;;  %3940 = vmatpush.msrb.mxu1 %v3705_v37 }
 0x9a3   : > { %3761 = vmatpush.msrb.mxu0 %v3704_v0  ;;  %3941 = vmatpush.msrb.mxu1 %v3704_v0 }
 0x9a5   : > { %3762 = vmatpush.msrb.mxu0 %v3703_v5  ;;  %3942 = vmatpush.msrb.mxu1 %v3703_v5  ;;  %v3748_v5 = vld [vmem:[%s8815_s13 + $0x78] sm:$0xff] }
 0x9a7   : > { %3763 = vmatpush.msrb.mxu0 %v3702_v62  ;;  %3943 = vmatpush.msrb.mxu1 %v3702_v62 }
 0x9a9   : > { %3764 = vmatpush.msrb.mxu0 %v3701_v48  ;;  %3944 = vmatpush.msrb.mxu1 %v3701_v48 }
 0x9aa   : > { %3771 = vmatmul.f32.vlgmr.msrb.gmra.mxu1 %v3719_v29  ;;  %3765 = vmatmul.f32.vlgmr.msrb.gmra.mxu0 %v3717_v9 }
 0x9b2   : > { %3774 = vmatmul.f32.gmra.mxu1 %v3720_v1  ;;  %3768 = vmatmul.f32.gmra.mxu0 %v3718_v20 }
 0x9ba   : > { %3777 = vmatmul.f32.gmra.mxu1 %v3721_v24 }
 0x9c2   : > { %3780 = vmatmul.f32.gmra.mxu1 %v3722_v35 }
 0x9ca   : > { %3783 = vmatmul.f32.gmra.mxu1 %v3723_v30 }
 0x9d2   : > { %3786 = vmatmul.f32.gmra.mxu1 %v3724_v52 }
 0x9da   : > { %3789 = vmatmul.f32.gmra.mxu1 %v3725_v11 }
 0x9e2   : > { %3792 = vmatmul.f32.gmra.mxu1 %v3726_v16 }
 0x9ea   : > { %3795 = vmatmul.f32.gmra.mxu1 %v3727_v51 }
 0x9f2   : > { %3798 = vmatmul.f32.gmra.mxu1 %v3728_v27 }
 0x9fa   : > { %3801 = vmatmul.f32.gmra.mxu1 %v3729_v17 }
 0xa02   : > { %3804 = vmatmul.f32.gmra.mxu1 %v3730_v39 }
 0xa0a   : > { %3807 = vmatmul.f32.gmra.mxu1 %v3731_v46 }
 0xa12   : > { %3810 = vmatmul.f32.gmra.mxu1 %v3732_v56 }
 0xa27   : > { %v3772_v3 = vpop.f32.mrf.mxu1  ;;  %v3766_v32 = vpop.f32.mrf.mxu0 }
 0xa28   : > { %v3773_v57 = vadd.f32 %v3772_v3, %v3735_v19  ;;  %v3767_v45 = vadd.f32 %v3766_v32, %v3733_v58 }
 0xa2a   : > { %3817 = vst.msk [vmem:[%s8376_s11 + $0x10] sm:$0xff] %vm3814_vm0, %v3773_v57 }
 0xa2b   : > { %3815 = vst.msk [vmem:[%s8376_s11] sm:$0xff] %vm3814_vm0, %v3767_v45 }
 0xa2f   : > { %v3775_v60 = vpop.f32.mrf.mxu1  ;;  %v3769_v33 = vpop.f32.mrf.mxu0 }
 0xa30   : > { %v3776_v18 = vadd.f32 %v3775_v60, %v3736_v10  ;;  %v3770_v31 = vadd.f32 %v3769_v33, %v3734_v2 }
 0xa32   : > { %3818 = vst.msk [vmem:[%s8376_s11 + $0x18] sm:$0xff] %vm3814_vm0, %v3776_v18 }
 0xa33   : > { %3816 = vst.msk [vmem:[%s8376_s11 + $0x8] sm:$0xff] %vm3814_vm0, %v3770_v31 }
 0xa37   : > { %v3778_v41 = vpop.f32.mrf.mxu1 }
 0xa38   : > { %v3779_v36 = vadd.f32 %v3778_v41, %v3737_v49 }
 0xa3a   : > { %3819 = vst.msk [vmem:[%s8376_s11 + $0x20] sm:$0xff] %vm3814_vm0, %v3779_v36 }
 0xa3f   : > { %v3781_v26 = vpop.f32.mrf.mxu1 }
 0xa40   : > { %v3782_v34 = vadd.f32 %v3781_v26, %v3738_v25 }
 0xa42   : > { %3820 = vst.msk [vmem:[%s8376_s11 + $0x28] sm:$0xff] %vm3814_vm0, %v3782_v34 }
 0xa47   : > { %v3784_v55 = vpop.f32.mrf.mxu1 }
 0xa48   : > { %v3785_v53 = vadd.f32 %v3784_v55, %v3739_v44 }
 0xa4a   : > { %3821 = vst.msk [vmem:[%s8376_s11 + $0x30] sm:$0xff] %vm3814_vm0, %v3785_v53 }
 0xa4f   : > { %v3787_v42 = vpop.f32.mrf.mxu1 }
 0xa50   : > { %v3788_v12 = vadd.f32 %v3787_v42, %v3740_v23 }
 0xa52   : > { %3822 = vst.msk [vmem:[%s8376_s11 + $0x38] sm:$0xff] %vm3814_vm0, %v3788_v12 }
 0xa57   : > { %v3790_v47 = vpop.f32.mrf.mxu1 }
 0xa58   : > { %v3791_v28 = vadd.f32 %v3790_v47, %v3741_v7 }
 0xa5a   : > { %3823 = vst.msk [vmem:[%s8376_s11 + $0x40] sm:$0xff] %vm3814_vm0, %v3791_v28 }
 0xa5f   : > { %v3793_v38 = vpop.f32.mrf.mxu1 }
 0xa60   : > { %v3794_v14 = vadd.f32 %v3793_v38, %v3742_v61 }
 0xa62   : > { %3824 = vst.msk [vmem:[%s8376_s11 + $0x48] sm:$0xff] %vm3814_vm0, %v3794_v14 }
 0xa67   : > { %v3796_v22 = vpop.f32.mrf.mxu1 }
 0xa68   : > { %v3797_v6 = vadd.f32 %v3796_v22, %v3743_v15 }
 0xa6a   : > { %3825 = vst.msk [vmem:[%s8376_s11 + $0x50] sm:$0xff] %vm3814_vm0, %v3797_v6 }
 0xa6f   : > { %v3799_v21 = vpop.f32.mrf.mxu1 }
 0xa70   : > { %v3800_v13 = vadd.f32 %v3799_v21, %v3744_v4 }
 0xa72   : > { %3826 = vst.msk [vmem:[%s8376_s11 + $0x58] sm:$0xff] %vm3814_vm0, %v3800_v13 }
 0xa77   : > { %v3802_v8 = vpop.f32.mrf.mxu1 }
 0xa78   : > { %v3803_v59 = vadd.f32 %v3802_v8, %v3745_v63 }
 0xa7a   : > { %3827 = vst.msk [vmem:[%s8376_s11 + $0x60] sm:$0xff] %vm3814_vm0, %v3803_v59 }
 0xa7f   : > { %v3805_v37 = vpop.f32.mrf.mxu1 }
 0xa80   : > { %v3806_v54 = vadd.f32 %v3805_v37, %v3746_v43 }
 0xa82   : > { %3828 = vst.msk [vmem:[%s8376_s11 + $0x68] sm:$0xff] %vm3814_vm0, %v3806_v54 }
 0xa87   : > { %v3808_v0 = vpop.f32.mrf.mxu1 }
 0xa88   : > { %v3809_v50 = vadd.f32 %v3808_v0, %v3747_v40 }
 0xa8a   : > { %3829 = vst.msk [vmem:[%s8376_s11 + $0x70] sm:$0xff] %vm3814_vm0, %v3809_v50 }
 0xa8f   : > { %v3811_v62 = vpop.f32.mrf.mxu1 }
 0xa90   : > { %v3812_v48 = vadd.f32 %v3811_v62, %v3748_v5 }
 0xa92   : > { %3830 = vst.msk [vmem:[%s8376_s11 + $0x78] sm:$0xff] %vm3814_vm0, %v3812_v48 }
 0xa93 PF: > { %s8818_s24 = sld [smem:[#allocation2_spill]] }
 0xa99   : > { %s21_s17 = sadd.s32 1, %s8818_s24  }
 0xa9a   : > { %p18_p4 = scmp.ge.s32.totalorder %s21_s17, 4  }
 0xa9c   :  { %20 = sbr.rel (!%p18_p4) target bundleno = 6 (0x6), region = 109 }

</bundles_post_ra>
